<compile_context>
chip_gen: v7x
topology: tpu7x:2x2x1
jax: 0.10.0
libtpu: 0.0.40
codegen_flags: <defaults>
</compile_context>

<pallas_src>
import functools

import jax
import jax.numpy as jnp
from jax.experimental import pallas as pl
from jax.experimental.pallas import tpu as pltpu


# ------------------------------ Pallas kernel ------------------------------ #

def _conv_row_kernel(*refs, k, ow, ow_pad, fuse_mean, inv_s):
    """One output row of ZeroPad2d(1)+Conv2d(k, stride=2)+ReLU, optionally fused
    with the running spatial mean.

    refs = (x_row[kh=0], ..., x_row[kh=k-1], w_taps, bias, out[, mean_scratch])
      x_row[kh] : (2, W2, C) bf16  -- even/odd column phases of padded-input row 2*r+kh
      w_taps    : (k*k, C, N) bf16 -- one (C, N) weight tap per kernel position
      bias      : (1, N) f32
    """
    x_rows = refs[:k]
    w_ref = refs[k]
    b_ref = refs[k + 1]
    o_ref = refs[k + 2]

    n = w_ref.shape[-1]
    acc = jnp.zeros((ow_pad, n), jnp.float32)
    for kh in range(k):
        xr = x_rows[kh]                          # (2, W2, C)
        for kw in range(k):
            p, q = kw % 2, kw // 2
            win = xr[p, q:q + ow_pad, :]         # (ow_pad, C) contiguous slice
            acc = acc + jnp.dot(win, w_ref[kh * k + kw],
                                preferred_element_type=jnp.float32)
    acc = jnp.maximum(acc + b_ref[...], 0.0)     # bias + ReLU in f32

    if fuse_mean:
        acc_ref = refs[k + 3]                    # (1, N) f32 VMEM scratch
        r = pl.program_id(1)

        @pl.when(r == 0)
        def _init():
            acc_ref[...] = jnp.zeros_like(acc_ref)

        acc_ref[...] += jnp.sum(acc[:ow], axis=0, keepdims=True)

        @pl.when(r == pl.num_programs(1) - 1)
        def _finalize():
            o_ref[...] = (acc_ref[...] * inv_s).astype(o_ref.dtype)
    else:
        o_ref[...] = acc[:ow].astype(o_ref.dtype)


# ------------------------------- conv wrapper ------------------------------- #

def _conv2d_relu_rows(x_nhwc, w_oihw, bias, *, fuse_mean=False):
    """ZeroPad2d(1) -> Conv2d(k, stride=2, pad=0, bias) -> ReLU [-> spatial mean]."""
    stride = 2
    cout, cin, k, k2 = w_oihw.shape
    assert k == k2 and k % 2 == 1
    B, H, W, C = x_nhwc.shape
    assert C == cin

    Hp, Wp = H + 2, W + 2
    OH = (Hp - k) // stride + 1
    OW = (Wp - k) // stride + 1
    OW_pad = ((OW + 7) // 8) * 8            # sublane-align the matmul M dim
    q_max = (k - 1) // 2
    W2 = q_max + OW_pad                     # columns per phase (covers all taps)

    # ZeroPad2d(1) plus extra zero columns on the right so the even/odd split is exact.
    xpad = jnp.pad(x_nhwc, ((0, 0), (1, 1), (1, 2 * W2 - Wp + 1), (0, 0)))
    # Even/odd column phase split: tap windows become contiguous in-kernel slices.
    xph = xpad.reshape(B, Hp, W2, 2, C).transpose(0, 1, 3, 2, 4)
    xph = xph.reshape(B * Hp, 2, W2, C).astype(jnp.bfloat16)

    # (O, I, kh, kw) -> (kh*k + kw, I, O)
    wt = jnp.transpose(w_oihw, (2, 3, 1, 0)).reshape(k * k, cin, cout)
    wt = wt.astype(jnp.bfloat16)
    b2 = bias.reshape(1, cout).astype(jnp.float32)

    grid = (B, OH)
    x_specs = [
        pl.BlockSpec((None, 2, W2, C),
                     lambda b, r, _kh=kh: (b * Hp + stride * r + _kh, 0, 0, 0))
        for kh in range(k)
    ]
    w_spec = pl.BlockSpec((k * k, cin, cout), lambda b, r: (0, 0, 0))
    b_spec = pl.BlockSpec((1, cout), lambda b, r: (0, 0))

    if fuse_mean:
        out_shape = jax.ShapeDtypeStruct((B, 1, cout), jnp.float32)
        out_spec = pl.BlockSpec((None, 1, cout), lambda b, r: (b, 0, 0))
        scratch = [pltpu.VMEM((1, cout), jnp.float32)]
        semantics = ("parallel", "arbitrary")   # row axis accumulates into the mean
        out_bytes = B * cout * 4
    else:
        out_shape = jax.ShapeDtypeStruct((B * OH, OW, cout), jnp.bfloat16)
        out_spec = pl.BlockSpec((None, OW, cout), lambda b, r: (b * OH + r, 0, 0))
        scratch = []
        semantics = ("parallel", "parallel")
        out_bytes = B * OH * OW * cout * 2

    kern = functools.partial(_conv_row_kernel, k=k, ow=OW, ow_pad=OW_pad,
                             fuse_mean=fuse_mean, inv_s=1.0 / (OH * OW))

    flops = 2 * B * OH * OW * k * k * cin * cout
    bytes_accessed = (B * OH * k * 2 * W2 * cin * 2   # bf16 input rows (re-read per kh)
                      + k * k * cin * cout * 2        # bf16 weights
                      + out_bytes)

    out = pl.pallas_call(
        kern,
        out_shape=out_shape,
        grid=grid,
        in_specs=x_specs + [w_spec, b_spec],
        out_specs=out_spec,
        scratch_shapes=scratch,
        compiler_params=pltpu.CompilerParams(
            dimension_semantics=semantics,
            vmem_limit_bytes=32 * 1024 * 1024),
        cost_estimate=pl.CostEstimate(flops=flops, transcendentals=0,
                                      bytes_accessed=bytes_accessed),
    )(*([xph] * k), wt, b2)

    if fuse_mean:
        return out.reshape(B, cout)
    return out.reshape(B, OH, OW, cout)


# --------------------------- StyleEncodernorelu fwd -------------------------- #

def style_encoder_norelu(x_nchw, y_nchw, params):
    """Forward pass of StyleEncodernorelu.  NCHW inputs, (B, nf) output."""
    x = jnp.transpose(x_nchw, (0, 2, 3, 1))
    y = jnp.transpose(y_nchw, (0, 2, 3, 1))
    z = jnp.concatenate([x, y], axis=-1)

    # Pad the small input-channel count up to a multiple of 8 (sublane alignment);
    # zero channels are numerically a no-op.
    cin = z.shape[-1]
    cin_pad = ((cin + 7) // 8) * 8
    w1 = params["w1"]
    if cin_pad != cin:
        z = jnp.pad(z, ((0, 0), (0, 0), (0, 0), (0, cin_pad - cin)))
        w1 = jnp.pad(w1, ((0, 0), (0, cin_pad - cin), (0, 0), (0, 0)))

    a1 = _conv2d_relu_rows(z, w1, params["b1"])                    # conv1 (k=7, s=2) + ReLU, bf16
    a2 = _conv2d_relu_rows(a1, params["w2"], params["b2"])         # conv2 (k=3, s=2) + ReLU, bf16
    return _conv2d_relu_rows(a2, params["w3"], params["b3"],
                             fuse_mean=True)                       # conv3 + ReLU + spatial mean, f32


# -------------------------------- pure-JAX ref ------------------------------- #

def _ref_forward(x_nchw, y_nchw, params, *, match_kernel_precision=False):
    """lax.conv reference.  match_kernel_precision=True rounds matmul operands to
    bf16 (f32 accumulation) like the Pallas path; False is the exact f32 model."""
    op_dtype = jnp.bfloat16 if match_kernel_precision else jnp.float32
    z = jnp.concatenate([x_nchw, y_nchw], axis=1)

    def conv_relu(z, w, b, last):
        z = jnp.pad(z, ((0, 0), (0, 0), (1, 1), (1, 1)))
        out = jax.lax.conv_general_dilated(
            z.astype(op_dtype), w.astype(op_dtype), (2, 2), "VALID",
            dimension_numbers=("NCHW", "OIHW", "NCHW"),
            preferred_element_type=jnp.float32)
        out = jax.nn.relu(out + b[None, :, None, None])
        if match_kernel_precision and not last:
            out = out.astype(jnp.bfloat16)
        return out

    z = conv_relu(z, params["w1"], params["b1"], last=False)
    z = conv_relu(z, params["w2"], params["b2"], last=False)
    z = conv_relu(z, params["w3"], params["b3"], last=True)
    return jnp.mean(z, axis=(2, 3))


# ----------------------------------- main ------------------------------------ #

if __name__ == "__main__":
    in_nc = 3 * 2   # 3+3 channels after concat of x and y
    nf = 32
    B, Cin, H, W = 2, 3, 16, 16

    key = jax.random.PRNGKey(0)
    k_x, k_y, k1, k2, k3, k4, k5, k6 = jax.random.split(key, 8)

    x = jax.random.normal(k_x, (B, Cin, H, W), jnp.float32)
    y = jax.random.normal(k_y, (B, Cin, H, W), jnp.float32)

    params = {
        "w1": 0.05 * jax.random.normal(k1, (nf, in_nc, 7, 7), jnp.float32),
        "b1": 0.01 * jax.random.normal(k2, (nf,), jnp.float32),
        "w2": 0.05 * jax.random.normal(k3, (nf, nf, 3, 3), jnp.float32),
        "b2": 0.01 * jax.random.normal(k4, (nf,), jnp.float32),
        "w3": 0.05 * jax.random.normal(k5, (nf, nf, 3, 3), jnp.float32),
        "b3": 0.01 * jax.random.normal(k6, (nf,), jnp.float32),
    }

    out = jax.block_until_ready(jax.jit(style_encoder_norelu)(x, y, params))
    assert out.shape == (B, nf), out.shape

    # Tight check vs. a reference with the kernel's precision (bf16 operands, f32 accum).
    ref_match = jax.block_until_ready(
        _ref_forward(x, y, params, match_kernel_precision=True))
    err_m = float(jnp.max(jnp.abs(out - ref_match)))
    assert jnp.allclose(out, ref_match, rtol=1e-2, atol=1e-3), err_m

    # Loose check vs. the exact f32 PyTorch-equivalent reference.
    ref_f32 = jax.block_until_ready(
        _ref_forward(x, y, params, match_kernel_precision=False))
    err_f = float(jnp.max(jnp.abs(out - ref_f32)))
    assert jnp.allclose(out, ref_f32, rtol=5e-2, atol=5e-2), err_f

    print("KERNEL_OK")
</pallas_src>

<mosaic_0001>
module attributes {stable_mosaic.version = 11 : i64} {
  func.func @_conv_row_kernel(%arg0: i32, %arg1: i32, %arg2: memref<1x2x11x8xbf16, #tpu.memory_space<vmem>>, %arg3: memref<1x2x11x8xbf16, #tpu.memory_space<vmem>>, %arg4: memref<1x2x11x8xbf16, #tpu.memory_space<vmem>>, %arg5: memref<1x2x11x8xbf16, #tpu.memory_space<vmem>>, %arg6: memref<1x2x11x8xbf16, #tpu.memory_space<vmem>>, %arg7: memref<1x2x11x8xbf16, #tpu.memory_space<vmem>>, %arg8: memref<1x2x11x8xbf16, #tpu.memory_space<vmem>>, %arg9: memref<49x8x32xbf16, #tpu.memory_space<vmem>>, %arg10: memref<1x32xf32, #tpu.memory_space<vmem>>, %arg11: memref<1x6x32xbf16, #tpu.memory_space<vmem>>) attributes {dimension_semantics = [#tpu.dimension_semantics<parallel>, #tpu.dimension_semantics<parallel>], iteration_bounds = array<i64: 2, 6>, scalar_prefetch = 0 : i64, scratch_operands = 0 : i64, tpu.core_type = #tpu.core_type<tc>, window_params = [{transform_indices = @transform_0, window_bounds = array<i64: 1, 2, 11, 8>}, {transform_indices = @transform_1, window_bounds = array<i64: 1, 2, 11, 8>}, {transform_indices = @transform_2, window_bounds = array<i64: 1, 2, 11, 8>}, {transform_indices = @transform_3, window_bounds = array<i64: 1, 2, 11, 8>}, {transform_indices = @transform_4, window_bounds = array<i64: 1, 2, 11, 8>}, {transform_indices = @transform_5, window_bounds = array<i64: 1, 2, 11, 8>}, {transform_indices = @transform_6, window_bounds = array<i64: 1, 2, 11, 8>}, {pipeline_mode = #tpu.pipeline_mode<synchronous>, transform_indices = @transform_7, window_bounds = array<i64: 49, 8, 32>}, {pipeline_mode = #tpu.pipeline_mode<synchronous>, transform_indices = @transform_8, window_bounds = array<i64: 1, 32>}, {transform_indices = @transform_9, window_bounds = array<i64: 1, 6, 32>}]} {
    %cst = arith.constant 0.000000e+00 : f32
    %0 = vector.broadcast %cst : f32 to vector<8x32xf32>
    %c0 = arith.constant 0 : index
    %c0_0 = arith.constant 0 : index
    %c0_1 = arith.constant 0 : index
    %c0_2 = arith.constant 0 : index
    %1 = vector.load %arg2[%c0, %c0_0, %c0_1, %c0_2] : memref<1x2x11x8xbf16, #tpu.memory_space<vmem>>, vector<1x1x8x8xbf16>
    %2 = vector.shape_cast %1 : vector<1x1x8x8xbf16> to vector<8x8xbf16>
    %c0_3 = arith.constant 0 : index
    %c0_4 = arith.constant 0 : index
    %c0_5 = arith.constant 0 : index
    %3 = vector.load %arg9[%c0_3, %c0_4, %c0_5] : memref<49x8x32xbf16, #tpu.memory_space<vmem>>, vector<1x8x32xbf16>
    %4 = vector.shape_cast %3 : vector<1x8x32xbf16> to vector<8x32xbf16>
    %cst_6 = arith.constant dense<0.000000e+00> : vector<8x32xf32>
    %5 = tpu.matmul %2, %4, %cst_6 {dimension_numbers = #tpu.dot_dimension_numbers<[1], [0], [0], [1], [0, 0, 1, 1], [], []>} : vector<8x8xbf16>, vector<8x32xbf16>, vector<8x32xf32> -> vector<8x32xf32>
    %6 = arith.addf %0, %5 : vector<8x32xf32>
    %c0_7 = arith.constant 0 : index
    %c1 = arith.constant 1 : index
    %c0_8 = arith.constant 0 : index
    %c0_9 = arith.constant 0 : index
    %7 = vector.load %arg2[%c0_7, %c1, %c0_8, %c0_9] : memref<1x2x11x8xbf16, #tpu.memory_space<vmem>>, vector<1x1x8x8xbf16>
    %8 = vector.shape_cast %7 : vector<1x1x8x8xbf16> to vector<8x8xbf16>
    %c1_10 = arith.constant 1 : index
    %c0_11 = arith.constant 0 : index
    %c0_12 = arith.constant 0 : index
    %9 = vector.load %arg9[%c1_10, %c0_11, %c0_12] : memref<49x8x32xbf16, #tpu.memory_space<vmem>>, vector<1x8x32xbf16>
    %10 = vector.shape_cast %9 : vector<1x8x32xbf16> to vector<8x32xbf16>
    %cst_13 = arith.constant dense<0.000000e+00> : vector<8x32xf32>
    %11 = tpu.matmul %8, %10, %cst_13 {dimension_numbers = #tpu.dot_dimension_numbers<[1], [0], [0], [1], [0, 0, 1, 1], [], []>} : vector<8x8xbf16>, vector<8x32xbf16>, vector<8x32xf32> -> vector<8x32xf32>
    %12 = arith.addf %6, %11 : vector<8x32xf32>
    %c0_14 = arith.constant 0 : index
    %c0_15 = arith.constant 0 : index
    %c1_16 = arith.constant 1 : index
    %c0_17 = arith.constant 0 : index
    %13 = vector.load %arg2[%c0_14, %c0_15, %c1_16, %c0_17] : memref<1x2x11x8xbf16, #tpu.memory_space<vmem>>, vector<1x1x8x8xbf16>
    %14 = vector.shape_cast %13 : vector<1x1x8x8xbf16> to vector<8x8xbf16>
    %c2 = arith.constant 2 : index
    %c0_18 = arith.constant 0 : index
    %c0_19 = arith.constant 0 : index
    %15 = vector.load %arg9[%c2, %c0_18, %c0_19] : memref<49x8x32xbf16, #tpu.memory_space<vmem>>, vector<1x8x32xbf16>
    %16 = vector.shape_cast %15 : vector<1x8x32xbf16> to vector<8x32xbf16>
    %cst_20 = arith.constant dense<0.000000e+00> : vector<8x32xf32>
    %17 = tpu.matmul %14, %16, %cst_20 {dimension_numbers = #tpu.dot_dimension_numbers<[1], [0], [0], [1], [0, 0, 1, 1], [], []>} : vector<8x8xbf16>, vector<8x32xbf16>, vector<8x32xf32> -> vector<8x32xf32>
    %18 = arith.addf %12, %17 : vector<8x32xf32>
    %c0_21 = arith.constant 0 : index
    %c1_22 = arith.constant 1 : index
    %c1_23 = arith.constant 1 : index
    %c0_24 = arith.constant 0 : index
    %19 = vector.load %arg2[%c0_21, %c1_22, %c1_23, %c0_24] : memref<1x2x11x8xbf16, #tpu.memory_space<vmem>>, vector<1x1x8x8xbf16>
    %20 = vector.shape_cast %19 : vector<1x1x8x8xbf16> to vector<8x8xbf16>
    %c3 = arith.constant 3 : index
    %c0_25 = arith.constant 0 : index
    %c0_26 = arith.constant 0 : index
    %21 = vector.load %arg9[%c3, %c0_25, %c0_26] : memref<49x8x32xbf16, #tpu.memory_space<vmem>>, vector<1x8x32xbf16>
    %22 = vector.shape_cast %21 : vector<1x8x32xbf16> to vector<8x32xbf16>
    %cst_27 = arith.constant dense<0.000000e+00> : vector<8x32xf32>
    %23 = tpu.matmul %20, %22, %cst_27 {dimension_numbers = #tpu.dot_dimension_numbers<[1], [0], [0], [1], [0, 0, 1, 1], [], []>} : vector<8x8xbf16>, vector<8x32xbf16>, vector<8x32xf32> -> vector<8x32xf32>
    %24 = arith.addf %18, %23 : vector<8x32xf32>
    %c0_28 = arith.constant 0 : index
    %c0_29 = arith.constant 0 : index
    %c2_30 = arith.constant 2 : index
    %c0_31 = arith.constant 0 : index
    %25 = vector.load %arg2[%c0_28, %c0_29, %c2_30, %c0_31] : memref<1x2x11x8xbf16, #tpu.memory_space<vmem>>, vector<1x1x8x8xbf16>
    %26 = vector.shape_cast %25 : vector<1x1x8x8xbf16> to vector<8x8xbf16>
    %c4 = arith.constant 4 : index
    %c0_32 = arith.constant 0 : index
    %c0_33 = arith.constant 0 : index
    %27 = vector.load %arg9[%c4, %c0_32, %c0_33] : memref<49x8x32xbf16, #tpu.memory_space<vmem>>, vector<1x8x32xbf16>
    %28 = vector.shape_cast %27 : vector<1x8x32xbf16> to vector<8x32xbf16>
    %cst_34 = arith.constant dense<0.000000e+00> : vector<8x32xf32>
    %29 = tpu.matmul %26, %28, %cst_34 {dimension_numbers = #tpu.dot_dimension_numbers<[1], [0], [0], [1], [0, 0, 1, 1], [], []>} : vector<8x8xbf16>, vector<8x32xbf16>, vector<8x32xf32> -> vector<8x32xf32>
    %30 = arith.addf %24, %29 : vector<8x32xf32>
    %c0_35 = arith.constant 0 : index
    %c1_36 = arith.constant 1 : index
    %c2_37 = arith.constant 2 : index
    %c0_38 = arith.constant 0 : index
    %31 = vector.load %arg2[%c0_35, %c1_36, %c2_37, %c0_38] : memref<1x2x11x8xbf16, #tpu.memory_space<vmem>>, vector<1x1x8x8xbf16>
    %32 = vector.shape_cast %31 : vector<1x1x8x8xbf16> to vector<8x8xbf16>
    %c5 = arith.constant 5 : index
    %c0_39 = arith.constant 0 : index
    %c0_40 = arith.constant 0 : index
    %33 = vector.load %arg9[%c5, %c0_39, %c0_40] : memref<49x8x32xbf16, #tpu.memory_space<vmem>>, vector<1x8x32xbf16>
    %34 = vector.shape_cast %33 : vector<1x8x32xbf16> to vector<8x32xbf16>
    %cst_41 = arith.constant dense<0.000000e+00> : vector<8x32xf32>
    %35 = tpu.matmul %32, %34, %cst_41 {dimension_numbers = #tpu.dot_dimension_numbers<[1], [0], [0], [1], [0, 0, 1, 1], [], []>} : vector<8x8xbf16>, vector<8x32xbf16>, vector<8x32xf32> -> vector<8x32xf32>
    %36 = arith.addf %30, %35 : vector<8x32xf32>
    %c0_42 = arith.constant 0 : index
    %c0_43 = arith.constant 0 : index
    %c3_44 = arith.constant 3 : index
    %c0_45 = arith.constant 0 : index
    %37 = vector.load %arg2[%c0_42, %c0_43, %c3_44, %c0_45] : memref<1x2x11x8xbf16, #tpu.memory_space<vmem>>, vector<1x1x8x8xbf16>
    %38 = vector.shape_cast %37 : vector<1x1x8x8xbf16> to vector<8x8xbf16>
    %c6 = arith.constant 6 : index
    %c0_46 = arith.constant 0 : index
    %c0_47 = arith.constant 0 : index
    %39 = vector.load %arg9[%c6, %c0_46, %c0_47] : memref<49x8x32xbf16, #tpu.memory_space<vmem>>, vector<1x8x32xbf16>
    %40 = vector.shape_cast %39 : vector<1x8x32xbf16> to vector<8x32xbf16>
    %cst_48 = arith.constant dense<0.000000e+00> : vector<8x32xf32>
    %41 = tpu.matmul %38, %40, %cst_48 {dimension_numbers = #tpu.dot_dimension_numbers<[1], [0], [0], [1], [0, 0, 1, 1], [], []>} : vector<8x8xbf16>, vector<8x32xbf16>, vector<8x32xf32> -> vector<8x32xf32>
    %42 = arith.addf %36, %41 : vector<8x32xf32>
    %c0_49 = arith.constant 0 : index
    %c0_50 = arith.constant 0 : index
    %c0_51 = arith.constant 0 : index
    %c0_52 = arith.constant 0 : index
    %43 = vector.load %arg3[%c0_49, %c0_50, %c0_51, %c0_52] : memref<1x2x11x8xbf16, #tpu.memory_space<vmem>>, vector<1x1x8x8xbf16>
    %44 = vector.shape_cast %43 : vector<1x1x8x8xbf16> to vector<8x8xbf16>
    %c7 = arith.constant 7 : index
    %c0_53 = arith.constant 0 : index
    %c0_54 = arith.constant 0 : index
    %45 = vector.load %arg9[%c7, %c0_53, %c0_54] : memref<49x8x32xbf16, #tpu.memory_space<vmem>>, vector<1x8x32xbf16>
    %46 = vector.shape_cast %45 : vector<1x8x32xbf16> to vector<8x32xbf16>
    %cst_55 = arith.constant dense<0.000000e+00> : vector<8x32xf32>
    %47 = tpu.matmul %44, %46, %cst_55 {dimension_numbers = #tpu.dot_dimension_numbers<[1], [0], [0], [1], [0, 0, 1, 1], [], []>} : vector<8x8xbf16>, vector<8x32xbf16>, vector<8x32xf32> -> vector<8x32xf32>
    %48 = arith.addf %42, %47 : vector<8x32xf32>
    %c0_56 = arith.constant 0 : index
    %c1_57 = arith.constant 1 : index
    %c0_58 = arith.constant 0 : index
    %c0_59 = arith.constant 0 : index
    %49 = vector.load %arg3[%c0_56, %c1_57, %c0_58, %c0_59] : memref<1x2x11x8xbf16, #tpu.memory_space<vmem>>, vector<1x1x8x8xbf16>
    %50 = vector.shape_cast %49 : vector<1x1x8x8xbf16> to vector<8x8xbf16>
    %c8 = arith.constant 8 : index
    %c0_60 = arith.constant 0 : index
    %c0_61 = arith.constant 0 : index
    %51 = vector.load %arg9[%c8, %c0_60, %c0_61] : memref<49x8x32xbf16, #tpu.memory_space<vmem>>, vector<1x8x32xbf16>
    %52 = vector.shape_cast %51 : vector<1x8x32xbf16> to vector<8x32xbf16>
    %cst_62 = arith.constant dense<0.000000e+00> : vector<8x32xf32>
    %53 = tpu.matmul %50, %52, %cst_62 {dimension_numbers = #tpu.dot_dimension_numbers<[1], [0], [0], [1], [0, 0, 1, 1], [], []>} : vector<8x8xbf16>, vector<8x32xbf16>, vector<8x32xf32> -> vector<8x32xf32>
    %54 = arith.addf %48, %53 : vector<8x32xf32>
    %c0_63 = arith.constant 0 : index
    %c0_64 = arith.constant 0 : index
    %c1_65 = arith.constant 1 : index
    %c0_66 = arith.constant 0 : index
    %55 = vector.load %arg3[%c0_63, %c0_64, %c1_65, %c0_66] : memref<1x2x11x8xbf16, #tpu.memory_space<vmem>>, vector<1x1x8x8xbf16>
    %56 = vector.shape_cast %55 : vector<1x1x8x8xbf16> to vector<8x8xbf16>
    %c9 = arith.constant 9 : index
    %c0_67 = arith.constant 0 : index
    %c0_68 = arith.constant 0 : index
    %57 = vector.load %arg9[%c9, %c0_67, %c0_68] : memref<49x8x32xbf16, #tpu.memory_space<vmem>>, vector<1x8x32xbf16>
    %58 = vector.shape_cast %57 : vector<1x8x32xbf16> to vector<8x32xbf16>
    %cst_69 = arith.constant dense<0.000000e+00> : vector<8x32xf32>
    %59 = tpu.matmul %56, %58, %cst_69 {dimension_numbers = #tpu.dot_dimension_numbers<[1], [0], [0], [1], [0, 0, 1, 1], [], []>} : vector<8x8xbf16>, vector<8x32xbf16>, vector<8x32xf32> -> vector<8x32xf32>
    %60 = arith.addf %54, %59 : vector<8x32xf32>
    %c0_70 = arith.constant 0 : index
    %c1_71 = arith.constant 1 : index
    %c1_72 = arith.constant 1 : index
    %c0_73 = arith.constant 0 : index
    %61 = vector.load %arg3[%c0_70, %c1_71, %c1_72, %c0_73] : memref<1x2x11x8xbf16, #tpu.memory_space<vmem>>, vector<1x1x8x8xbf16>
    %62 = vector.shape_cast %61 : vector<1x1x8x8xbf16> to vector<8x8xbf16>
    %c10 = arith.constant 10 : index
    %c0_74 = arith.constant 0 : index
    %c0_75 = arith.constant 0 : index
    %63 = vector.load %arg9[%c10, %c0_74, %c0_75] : memref<49x8x32xbf16, #tpu.memory_space<vmem>>, vector<1x8x32xbf16>
    %64 = vector.shape_cast %63 : vector<1x8x32xbf16> to vector<8x32xbf16>
    %cst_76 = arith.constant dense<0.000000e+00> : vector<8x32xf32>
    %65 = tpu.matmul %62, %64, %cst_76 {dimension_numbers = #tpu.dot_dimension_numbers<[1], [0], [0], [1], [0, 0, 1, 1], [], []>} : vector<8x8xbf16>, vector<8x32xbf16>, vector<8x32xf32> -> vector<8x32xf32>
    %66 = arith.addf %60, %65 : vector<8x32xf32>
    %c0_77 = arith.constant 0 : index
    %c0_78 = arith.constant 0 : index
    %c2_79 = arith.constant 2 : index
    %c0_80 = arith.constant 0 : index
    %67 = vector.load %arg3[%c0_77, %c0_78, %c2_79, %c0_80] : memref<1x2x11x8xbf16, #tpu.memory_space<vmem>>, vector<1x1x8x8xbf16>
    %68 = vector.shape_cast %67 : vector<1x1x8x8xbf16> to vector<8x8xbf16>
    %c11 = arith.constant 11 : index
    %c0_81 = arith.constant 0 : index
    %c0_82 = arith.constant 0 : index
    %69 = vector.load %arg9[%c11, %c0_81, %c0_82] : memref<49x8x32xbf16, #tpu.memory_space<vmem>>, vector<1x8x32xbf16>
    %70 = vector.shape_cast %69 : vector<1x8x32xbf16> to vector<8x32xbf16>
    %cst_83 = arith.constant dense<0.000000e+00> : vector<8x32xf32>
    %71 = tpu.matmul %68, %70, %cst_83 {dimension_numbers = #tpu.dot_dimension_numbers<[1], [0], [0], [1], [0, 0, 1, 1], [], []>} : vector<8x8xbf16>, vector<8x32xbf16>, vector<8x32xf32> -> vector<8x32xf32>
    %72 = arith.addf %66, %71 : vector<8x32xf32>
    %c0_84 = arith.constant 0 : index
    %c1_85 = arith.constant 1 : index
    %c2_86 = arith.constant 2 : index
    %c0_87 = arith.constant 0 : index
    %73 = vector.load %arg3[%c0_84, %c1_85, %c2_86, %c0_87] : memref<1x2x11x8xbf16, #tpu.memory_space<vmem>>, vector<1x1x8x8xbf16>
    %74 = vector.shape_cast %73 : vector<1x1x8x8xbf16> to vector<8x8xbf16>
    %c12 = arith.constant 12 : index
    %c0_88 = arith.constant 0 : index
    %c0_89 = arith.constant 0 : index
    %75 = vector.load %arg9[%c12, %c0_88, %c0_89] : memref<49x8x32xbf16, #tpu.memory_space<vmem>>, vector<1x8x32xbf16>
    %76 = vector.shape_cast %75 : vector<1x8x32xbf16> to vector<8x32xbf16>
    %cst_90 = arith.constant dense<0.000000e+00> : vector<8x32xf32>
    %77 = tpu.matmul %74, %76, %cst_90 {dimension_numbers = #tpu.dot_dimension_numbers<[1], [0], [0], [1], [0, 0, 1, 1], [], []>} : vector<8x8xbf16>, vector<8x32xbf16>, vector<8x32xf32> -> vector<8x32xf32>
    %78 = arith.addf %72, %77 : vector<8x32xf32>
    %c0_91 = arith.constant 0 : index
    %c0_92 = arith.constant 0 : index
    %c3_93 = arith.constant 3 : index
    %c0_94 = arith.constant 0 : index
    %79 = vector.load %arg3[%c0_91, %c0_92, %c3_93, %c0_94] : memref<1x2x11x8xbf16, #tpu.memory_space<vmem>>, vector<1x1x8x8xbf16>
    %80 = vector.shape_cast %79 : vector<1x1x8x8xbf16> to vector<8x8xbf16>
    %c13 = arith.constant 13 : index
    %c0_95 = arith.constant 0 : index
    %c0_96 = arith.constant 0 : index
    %81 = vector.load %arg9[%c13, %c0_95, %c0_96] : memref<49x8x32xbf16, #tpu.memory_space<vmem>>, vector<1x8x32xbf16>
    %82 = vector.shape_cast %81 : vector<1x8x32xbf16> to vector<8x32xbf16>
    %cst_97 = arith.constant dense<0.000000e+00> : vector<8x32xf32>
    %83 = tpu.matmul %80, %82, %cst_97 {dimension_numbers = #tpu.dot_dimension_numbers<[1], [0], [0], [1], [0, 0, 1, 1], [], []>} : vector<8x8xbf16>, vector<8x32xbf16>, vector<8x32xf32> -> vector<8x32xf32>
    %84 = arith.addf %78, %83 : vector<8x32xf32>
    %c0_98 = arith.constant 0 : index
    %c0_99 = arith.constant 0 : index
    %c0_100 = arith.constant 0 : index
    %c0_101 = arith.constant 0 : index
    %85 = vector.load %arg4[%c0_98, %c0_99, %c0_100, %c0_101] : memref<1x2x11x8xbf16, #tpu.memory_space<vmem>>, vector<1x1x8x8xbf16>
    %86 = vector.shape_cast %85 : vector<1x1x8x8xbf16> to vector<8x8xbf16>
    %c14 = arith.constant 14 : index
    %c0_102 = arith.constant 0 : index
    %c0_103 = arith.constant 0 : index
    %87 = vector.load %arg9[%c14, %c0_102, %c0_103] : memref<49x8x32xbf16, #tpu.memory_space<vmem>>, vector<1x8x32xbf16>
    %88 = vector.shape_cast %87 : vector<1x8x32xbf16> to vector<8x32xbf16>
    %cst_104 = arith.constant dense<0.000000e+00> : vector<8x32xf32>
    %89 = tpu.matmul %86, %88, %cst_104 {dimension_numbers = #tpu.dot_dimension_numbers<[1], [0], [0], [1], [0, 0, 1, 1], [], []>} : vector<8x8xbf16>, vector<8x32xbf16>, vector<8x32xf32> -> vector<8x32xf32>
    %90 = arith.addf %84, %89 : vector<8x32xf32>
    %c0_105 = arith.constant 0 : index
    %c1_106 = arith.constant 1 : index
    %c0_107 = arith.constant 0 : index
    %c0_108 = arith.constant 0 : index
    %91 = vector.load %arg4[%c0_105, %c1_106, %c0_107, %c0_108] : memref<1x2x11x8xbf16, #tpu.memory_space<vmem>>, vector<1x1x8x8xbf16>
    %92 = vector.shape_cast %91 : vector<1x1x8x8xbf16> to vector<8x8xbf16>
    %c15 = arith.constant 15 : index
    %c0_109 = arith.constant 0 : index
    %c0_110 = arith.constant 0 : index
    %93 = vector.load %arg9[%c15, %c0_109, %c0_110] : memref<49x8x32xbf16, #tpu.memory_space<vmem>>, vector<1x8x32xbf16>
    %94 = vector.shape_cast %93 : vector<1x8x32xbf16> to vector<8x32xbf16>
    %cst_111 = arith.constant dense<0.000000e+00> : vector<8x32xf32>
    %95 = tpu.matmul %92, %94, %cst_111 {dimension_numbers = #tpu.dot_dimension_numbers<[1], [0], [0], [1], [0, 0, 1, 1], [], []>} : vector<8x8xbf16>, vector<8x32xbf16>, vector<8x32xf32> -> vector<8x32xf32>
    %96 = arith.addf %90, %95 : vector<8x32xf32>
    %c0_112 = arith.constant 0 : index
    %c0_113 = arith.constant 0 : index
    %c1_114 = arith.constant 1 : index
    %c0_115 = arith.constant 0 : index
    %97 = vector.load %arg4[%c0_112, %c0_113, %c1_114, %c0_115] : memref<1x2x11x8xbf16, #tpu.memory_space<vmem>>, vector<1x1x8x8xbf16>
    %98 = vector.shape_cast %97 : vector<1x1x8x8xbf16> to vector<8x8xbf16>
    %c16 = arith.constant 16 : index
    %c0_116 = arith.constant 0 : index
    %c0_117 = arith.constant 0 : index
    %99 = vector.load %arg9[%c16, %c0_116, %c0_117] : memref<49x8x32xbf16, #tpu.memory_space<vmem>>, vector<1x8x32xbf16>
    %100 = vector.shape_cast %99 : vector<1x8x32xbf16> to vector<8x32xbf16>
    %cst_118 = arith.constant dense<0.000000e+00> : vector<8x32xf32>
    %101 = tpu.matmul %98, %100, %cst_118 {dimension_numbers = #tpu.dot_dimension_numbers<[1], [0], [0], [1], [0, 0, 1, 1], [], []>} : vector<8x8xbf16>, vector<8x32xbf16>, vector<8x32xf32> -> vector<8x32xf32>
    %102 = arith.addf %96, %101 : vector<8x32xf32>
    %c0_119 = arith.constant 0 : index
    %c1_120 = arith.constant 1 : index
    %c1_121 = arith.constant 1 : index
    %c0_122 = arith.constant 0 : index
    %103 = vector.load %arg4[%c0_119, %c1_120, %c1_121, %c0_122] : memref<1x2x11x8xbf16, #tpu.memory_space<vmem>>, vector<1x1x8x8xbf16>
    %104 = vector.shape_cast %103 : vector<1x1x8x8xbf16> to vector<8x8xbf16>
    %c17 = arith.constant 17 : index
    %c0_123 = arith.constant 0 : index
    %c0_124 = arith.constant 0 : index
    %105 = vector.load %arg9[%c17, %c0_123, %c0_124] : memref<49x8x32xbf16, #tpu.memory_space<vmem>>, vector<1x8x32xbf16>
    %106 = vector.shape_cast %105 : vector<1x8x32xbf16> to vector<8x32xbf16>
    %cst_125 = arith.constant dense<0.000000e+00> : vector<8x32xf32>
    %107 = tpu.matmul %104, %106, %cst_125 {dimension_numbers = #tpu.dot_dimension_numbers<[1], [0], [0], [1], [0, 0, 1, 1], [], []>} : vector<8x8xbf16>, vector<8x32xbf16>, vector<8x32xf32> -> vector<8x32xf32>
    %108 = arith.addf %102, %107 : vector<8x32xf32>
    %c0_126 = arith.constant 0 : index
    %c0_127 = arith.constant 0 : index
    %c2_128 = arith.constant 2 : index
    %c0_129 = arith.constant 0 : index
    %109 = vector.load %arg4[%c0_126, %c0_127, %c2_128, %c0_129] : memref<1x2x11x8xbf16, #tpu.memory_space<vmem>>, vector<1x1x8x8xbf16>
    %110 = vector.shape_cast %109 : vector<1x1x8x8xbf16> to vector<8x8xbf16>
    %c18 = arith.constant 18 : index
    %c0_130 = arith.constant 0 : index
    %c0_131 = arith.constant 0 : index
    %111 = vector.load %arg9[%c18, %c0_130, %c0_131] : memref<49x8x32xbf16, #tpu.memory_space<vmem>>, vector<1x8x32xbf16>
    %112 = vector.shape_cast %111 : vector<1x8x32xbf16> to vector<8x32xbf16>
    %cst_132 = arith.constant dense<0.000000e+00> : vector<8x32xf32>
    %113 = tpu.matmul %110, %112, %cst_132 {dimension_numbers = #tpu.dot_dimension_numbers<[1], [0], [0], [1], [0, 0, 1, 1], [], []>} : vector<8x8xbf16>, vector<8x32xbf16>, vector<8x32xf32> -> vector<8x32xf32>
    %114 = arith.addf %108, %113 : vector<8x32xf32>
    %c0_133 = arith.constant 0 : index
    %c1_134 = arith.constant 1 : index
    %c2_135 = arith.constant 2 : index
    %c0_136 = arith.constant 0 : index
    %115 = vector.load %arg4[%c0_133, %c1_134, %c2_135, %c0_136] : memref<1x2x11x8xbf16, #tpu.memory_space<vmem>>, vector<1x1x8x8xbf16>
    %116 = vector.shape_cast %115 : vector<1x1x8x8xbf16> to vector<8x8xbf16>
    %c19 = arith.constant 19 : index
    %c0_137 = arith.constant 0 : index
    %c0_138 = arith.constant 0 : index
    %117 = vector.load %arg9[%c19, %c0_137, %c0_138] : memref<49x8x32xbf16, #tpu.memory_space<vmem>>, vector<1x8x32xbf16>
    %118 = vector.shape_cast %117 : vector<1x8x32xbf16> to vector<8x32xbf16>
    %cst_139 = arith.constant dense<0.000000e+00> : vector<8x32xf32>
    %119 = tpu.matmul %116, %118, %cst_139 {dimension_numbers = #tpu.dot_dimension_numbers<[1], [0], [0], [1], [0, 0, 1, 1], [], []>} : vector<8x8xbf16>, vector<8x32xbf16>, vector<8x32xf32> -> vector<8x32xf32>
    %120 = arith.addf %114, %119 : vector<8x32xf32>
    %c0_140 = arith.constant 0 : index
    %c0_141 = arith.constant 0 : index
    %c3_142 = arith.constant 3 : index
    %c0_143 = arith.constant 0 : index
    %121 = vector.load %arg4[%c0_140, %c0_141, %c3_142, %c0_143] : memref<1x2x11x8xbf16, #tpu.memory_space<vmem>>, vector<1x1x8x8xbf16>
    %122 = vector.shape_cast %121 : vector<1x1x8x8xbf16> to vector<8x8xbf16>
    %c20 = arith.constant 20 : index
    %c0_144 = arith.constant 0 : index
    %c0_145 = arith.constant 0 : index
    %123 = vector.load %arg9[%c20, %c0_144, %c0_145] : memref<49x8x32xbf16, #tpu.memory_space<vmem>>, vector<1x8x32xbf16>
    %124 = vector.shape_cast %123 : vector<1x8x32xbf16> to vector<8x32xbf16>
    %cst_146 = arith.constant dense<0.000000e+00> : vector<8x32xf32>
    %125 = tpu.matmul %122, %124, %cst_146 {dimension_numbers = #tpu.dot_dimension_numbers<[1], [0], [0], [1], [0, 0, 1, 1], [], []>} : vector<8x8xbf16>, vector<8x32xbf16>, vector<8x32xf32> -> vector<8x32xf32>
    %126 = arith.addf %120, %125 : vector<8x32xf32>
    %c0_147 = arith.constant 0 : index
    %c0_148 = arith.constant 0 : index
    %c0_149 = arith.constant 0 : index
    %c0_150 = arith.constant 0 : index
    %127 = vector.load %arg5[%c0_147, %c0_148, %c0_149, %c0_150] : memref<1x2x11x8xbf16, #tpu.memory_space<vmem>>, vector<1x1x8x8xbf16>
    %128 = vector.shape_cast %127 : vector<1x1x8x8xbf16> to vector<8x8xbf16>
    %c21 = arith.constant 21 : index
    %c0_151 = arith.constant 0 : index
    %c0_152 = arith.constant 0 : index
    %129 = vector.load %arg9[%c21, %c0_151, %c0_152] : memref<49x8x32xbf16, #tpu.memory_space<vmem>>, vector<1x8x32xbf16>
    %130 = vector.shape_cast %129 : vector<1x8x32xbf16> to vector<8x32xbf16>
    %cst_153 = arith.constant dense<0.000000e+00> : vector<8x32xf32>
    %131 = tpu.matmul %128, %130, %cst_153 {dimension_numbers = #tpu.dot_dimension_numbers<[1], [0], [0], [1], [0, 0, 1, 1], [], []>} : vector<8x8xbf16>, vector<8x32xbf16>, vector<8x32xf32> -> vector<8x32xf32>
    %132 = arith.addf %126, %131 : vector<8x32xf32>
    %c0_154 = arith.constant 0 : index
    %c1_155 = arith.constant 1 : index
    %c0_156 = arith.constant 0 : index
    %c0_157 = arith.constant 0 : index
    %133 = vector.load %arg5[%c0_154, %c1_155, %c0_156, %c0_157] : memref<1x2x11x8xbf16, #tpu.memory_space<vmem>>, vector<1x1x8x8xbf16>
    %134 = vector.shape_cast %133 : vector<1x1x8x8xbf16> to vector<8x8xbf16>
    %c22 = arith.constant 22 : index
    %c0_158 = arith.constant 0 : index
    %c0_159 = arith.constant 0 : index
    %135 = vector.load %arg9[%c22, %c0_158, %c0_159] : memref<49x8x32xbf16, #tpu.memory_space<vmem>>, vector<1x8x32xbf16>
    %136 = vector.shape_cast %135 : vector<1x8x32xbf16> to vector<8x32xbf16>
    %cst_160 = arith.constant dense<0.000000e+00> : vector<8x32xf32>
    %137 = tpu.matmul %134, %136, %cst_160 {dimension_numbers = #tpu.dot_dimension_numbers<[1], [0], [0], [1], [0, 0, 1, 1], [], []>} : vector<8x8xbf16>, vector<8x32xbf16>, vector<8x32xf32> -> vector<8x32xf32>
    %138 = arith.addf %132, %137 : vector<8x32xf32>
    %c0_161 = arith.constant 0 : index
    %c0_162 = arith.constant 0 : index
    %c1_163 = arith.constant 1 : index
    %c0_164 = arith.constant 0 : index
    %139 = vector.load %arg5[%c0_161, %c0_162, %c1_163, %c0_164] : memref<1x2x11x8xbf16, #tpu.memory_space<vmem>>, vector<1x1x8x8xbf16>
    %140 = vector.shape_cast %139 : vector<1x1x8x8xbf16> to vector<8x8xbf16>
    %c23 = arith.constant 23 : index
    %c0_165 = arith.constant 0 : index
    %c0_166 = arith.constant 0 : index
    %141 = vector.load %arg9[%c23, %c0_165, %c0_166] : memref<49x8x32xbf16, #tpu.memory_space<vmem>>, vector<1x8x32xbf16>
    %142 = vector.shape_cast %141 : vector<1x8x32xbf16> to vector<8x32xbf16>
    %cst_167 = arith.constant dense<0.000000e+00> : vector<8x32xf32>
    %143 = tpu.matmul %140, %142, %cst_167 {dimension_numbers = #tpu.dot_dimension_numbers<[1], [0], [0], [1], [0, 0, 1, 1], [], []>} : vector<8x8xbf16>, vector<8x32xbf16>, vector<8x32xf32> -> vector<8x32xf32>
    %144 = arith.addf %138, %143 : vector<8x32xf32>
    %c0_168 = arith.constant 0 : index
    %c1_169 = arith.constant 1 : index
    %c1_170 = arith.constant 1 : index
    %c0_171 = arith.constant 0 : index
    %145 = vector.load %arg5[%c0_168, %c1_169, %c1_170, %c0_171] : memref<1x2x11x8xbf16, #tpu.memory_space<vmem>>, vector<1x1x8x8xbf16>
    %146 = vector.shape_cast %145 : vector<1x1x8x8xbf16> to vector<8x8xbf16>
    %c24 = arith.constant 24 : index
    %c0_172 = arith.constant 0 : index
    %c0_173 = arith.constant 0 : index
    %147 = vector.load %arg9[%c24, %c0_172, %c0_173] : memref<49x8x32xbf16, #tpu.memory_space<vmem>>, vector<1x8x32xbf16>
    %148 = vector.shape_cast %147 : vector<1x8x32xbf16> to vector<8x32xbf16>
    %cst_174 = arith.constant dense<0.000000e+00> : vector<8x32xf32>
    %149 = tpu.matmul %146, %148, %cst_174 {dimension_numbers = #tpu.dot_dimension_numbers<[1], [0], [0], [1], [0, 0, 1, 1], [], []>} : vector<8x8xbf16>, vector<8x32xbf16>, vector<8x32xf32> -> vector<8x32xf32>
    %150 = arith.addf %144, %149 : vector<8x32xf32>
    %c0_175 = arith.constant 0 : index
    %c0_176 = arith.constant 0 : index
    %c2_177 = arith.constant 2 : index
    %c0_178 = arith.constant 0 : index
    %151 = vector.load %arg5[%c0_175, %c0_176, %c2_177, %c0_178] : memref<1x2x11x8xbf16, #tpu.memory_space<vmem>>, vector<1x1x8x8xbf16>
    %152 = vector.shape_cast %151 : vector<1x1x8x8xbf16> to vector<8x8xbf16>
    %c25 = arith.constant 25 : index
    %c0_179 = arith.constant 0 : index
    %c0_180 = arith.constant 0 : index
    %153 = vector.load %arg9[%c25, %c0_179, %c0_180] : memref<49x8x32xbf16, #tpu.memory_space<vmem>>, vector<1x8x32xbf16>
    %154 = vector.shape_cast %153 : vector<1x8x32xbf16> to vector<8x32xbf16>
    %cst_181 = arith.constant dense<0.000000e+00> : vector<8x32xf32>
    %155 = tpu.matmul %152, %154, %cst_181 {dimension_numbers = #tpu.dot_dimension_numbers<[1], [0], [0], [1], [0, 0, 1, 1], [], []>} : vector<8x8xbf16>, vector<8x32xbf16>, vector<8x32xf32> -> vector<8x32xf32>
    %156 = arith.addf %150, %155 : vector<8x32xf32>
    %c0_182 = arith.constant 0 : index
    %c1_183 = arith.constant 1 : index
    %c2_184 = arith.constant 2 : index
    %c0_185 = arith.constant 0 : index
    %157 = vector.load %arg5[%c0_182, %c1_183, %c2_184, %c0_185] : memref<1x2x11x8xbf16, #tpu.memory_space<vmem>>, vector<1x1x8x8xbf16>
    %158 = vector.shape_cast %157 : vector<1x1x8x8xbf16> to vector<8x8xbf16>
    %c26 = arith.constant 26 : index
    %c0_186 = arith.constant 0 : index
    %c0_187 = arith.constant 0 : index
    %159 = vector.load %arg9[%c26, %c0_186, %c0_187] : memref<49x8x32xbf16, #tpu.memory_space<vmem>>, vector<1x8x32xbf16>
    %160 = vector.shape_cast %159 : vector<1x8x32xbf16> to vector<8x32xbf16>
    %cst_188 = arith.constant dense<0.000000e+00> : vector<8x32xf32>
    %161 = tpu.matmul %158, %160, %cst_188 {dimension_numbers = #tpu.dot_dimension_numbers<[1], [0], [0], [1], [0, 0, 1, 1], [], []>} : vector<8x8xbf16>, vector<8x32xbf16>, vector<8x32xf32> -> vector<8x32xf32>
    %162 = arith.addf %156, %161 : vector<8x32xf32>
    %c0_189 = arith.constant 0 : index
    %c0_190 = arith.constant 0 : index
    %c3_191 = arith.constant 3 : index
    %c0_192 = arith.constant 0 : index
    %163 = vector.load %arg5[%c0_189, %c0_190, %c3_191, %c0_192] : memref<1x2x11x8xbf16, #tpu.memory_space<vmem>>, vector<1x1x8x8xbf16>
    %164 = vector.shape_cast %163 : vector<1x1x8x8xbf16> to vector<8x8xbf16>
    %c27 = arith.constant 27 : index
    %c0_193 = arith.constant 0 : index
    %c0_194 = arith.constant 0 : index
    %165 = vector.load %arg9[%c27, %c0_193, %c0_194] : memref<49x8x32xbf16, #tpu.memory_space<vmem>>, vector<1x8x32xbf16>
    %166 = vector.shape_cast %165 : vector<1x8x32xbf16> to vector<8x32xbf16>
    %cst_195 = arith.constant dense<0.000000e+00> : vector<8x32xf32>
    %167 = tpu.matmul %164, %166, %cst_195 {dimension_numbers = #tpu.dot_dimension_numbers<[1], [0], [0], [1], [0, 0, 1, 1], [], []>} : vector<8x8xbf16>, vector<8x32xbf16>, vector<8x32xf32> -> vector<8x32xf32>
    %168 = arith.addf %162, %167 : vector<8x32xf32>
    %c0_196 = arith.constant 0 : index
    %c0_197 = arith.constant 0 : index
    %c0_198 = arith.constant 0 : index
    %c0_199 = arith.constant 0 : index
    %169 = vector.load %arg6[%c0_196, %c0_197, %c0_198, %c0_199] : memref<1x2x11x8xbf16, #tpu.memory_space<vmem>>, vector<1x1x8x8xbf16>
    %170 = vector.shape_cast %169 : vector<1x1x8x8xbf16> to vector<8x8xbf16>
    %c28 = arith.constant 28 : index
    %c0_200 = arith.constant 0 : index
    %c0_201 = arith.constant 0 : index
    %171 = vector.load %arg9[%c28, %c0_200, %c0_201] : memref<49x8x32xbf16, #tpu.memory_space<vmem>>, vector<1x8x32xbf16>
    %172 = vector.shape_cast %171 : vector<1x8x32xbf16> to vector<8x32xbf16>
    %cst_202 = arith.constant dense<0.000000e+00> : vector<8x32xf32>
    %173 = tpu.matmul %170, %172, %cst_202 {dimension_numbers = #tpu.dot_dimension_numbers<[1], [0], [0], [1], [0, 0, 1, 1], [], []>} : vector<8x8xbf16>, vector<8x32xbf16>, vector<8x32xf32> -> vector<8x32xf32>
    %174 = arith.addf %168, %173 : vector<8x32xf32>
    %c0_203 = arith.constant 0 : index
    %c1_204 = arith.constant 1 : index
    %c0_205 = arith.constant 0 : index
    %c0_206 = arith.constant 0 : index
    %175 = vector.load %arg6[%c0_203, %c1_204, %c0_205, %c0_206] : memref<1x2x11x8xbf16, #tpu.memory_space<vmem>>, vector<1x1x8x8xbf16>
    %176 = vector.shape_cast %175 : vector<1x1x8x8xbf16> to vector<8x8xbf16>
    %c29 = arith.constant 29 : index
    %c0_207 = arith.constant 0 : index
    %c0_208 = arith.constant 0 : index
    %177 = vector.load %arg9[%c29, %c0_207, %c0_208] : memref<49x8x32xbf16, #tpu.memory_space<vmem>>, vector<1x8x32xbf16>
    %178 = vector.shape_cast %177 : vector<1x8x32xbf16> to vector<8x32xbf16>
    %cst_209 = arith.constant dense<0.000000e+00> : vector<8x32xf32>
    %179 = tpu.matmul %176, %178, %cst_209 {dimension_numbers = #tpu.dot_dimension_numbers<[1], [0], [0], [1], [0, 0, 1, 1], [], []>} : vector<8x8xbf16>, vector<8x32xbf16>, vector<8x32xf32> -> vector<8x32xf32>
    %180 = arith.addf %174, %179 : vector<8x32xf32>
    %c0_210 = arith.constant 0 : index
    %c0_211 = arith.constant 0 : index
    %c1_212 = arith.constant 1 : index
    %c0_213 = arith.constant 0 : index
    %181 = vector.load %arg6[%c0_210, %c0_211, %c1_212, %c0_213] : memref<1x2x11x8xbf16, #tpu.memory_space<vmem>>, vector<1x1x8x8xbf16>
    %182 = vector.shape_cast %181 : vector<1x1x8x8xbf16> to vector<8x8xbf16>
    %c30 = arith.constant 30 : index
    %c0_214 = arith.constant 0 : index
    %c0_215 = arith.constant 0 : index
    %183 = vector.load %arg9[%c30, %c0_214, %c0_215] : memref<49x8x32xbf16, #tpu.memory_space<vmem>>, vector<1x8x32xbf16>
    %184 = vector.shape_cast %183 : vector<1x8x32xbf16> to vector<8x32xbf16>
    %cst_216 = arith.constant dense<0.000000e+00> : vector<8x32xf32>
    %185 = tpu.matmul %182, %184, %cst_216 {dimension_numbers = #tpu.dot_dimension_numbers<[1], [0], [0], [1], [0, 0, 1, 1], [], []>} : vector<8x8xbf16>, vector<8x32xbf16>, vector<8x32xf32> -> vector<8x32xf32>
    %186 = arith.addf %180, %185 : vector<8x32xf32>
    %c0_217 = arith.constant 0 : index
    %c1_218 = arith.constant 1 : index
    %c1_219 = arith.constant 1 : index
    %c0_220 = arith.constant 0 : index
    %187 = vector.load %arg6[%c0_217, %c1_218, %c1_219, %c0_220] : memref<1x2x11x8xbf16, #tpu.memory_space<vmem>>, vector<1x1x8x8xbf16>
    %188 = vector.shape_cast %187 : vector<1x1x8x8xbf16> to vector<8x8xbf16>
    %c31 = arith.constant 31 : index
    %c0_221 = arith.constant 0 : index
    %c0_222 = arith.constant 0 : index
    %189 = vector.load %arg9[%c31, %c0_221, %c0_222] : memref<49x8x32xbf16, #tpu.memory_space<vmem>>, vector<1x8x32xbf16>
    %190 = vector.shape_cast %189 : vector<1x8x32xbf16> to vector<8x32xbf16>
    %cst_223 = arith.constant dense<0.000000e+00> : vector<8x32xf32>
    %191 = tpu.matmul %188, %190, %cst_223 {dimension_numbers = #tpu.dot_dimension_numbers<[1], [0], [0], [1], [0, 0, 1, 1], [], []>} : vector<8x8xbf16>, vector<8x32xbf16>, vector<8x32xf32> -> vector<8x32xf32>
    %192 = arith.addf %186, %191 : vector<8x32xf32>
    %c0_224 = arith.constant 0 : index
    %c0_225 = arith.constant 0 : index
    %c2_226 = arith.constant 2 : index
    %c0_227 = arith.constant 0 : index
    %193 = vector.load %arg6[%c0_224, %c0_225, %c2_226, %c0_227] : memref<1x2x11x8xbf16, #tpu.memory_space<vmem>>, vector<1x1x8x8xbf16>
    %194 = vector.shape_cast %193 : vector<1x1x8x8xbf16> to vector<8x8xbf16>
    %c32 = arith.constant 32 : index
    %c0_228 = arith.constant 0 : index
    %c0_229 = arith.constant 0 : index
    %195 = vector.load %arg9[%c32, %c0_228, %c0_229] : memref<49x8x32xbf16, #tpu.memory_space<vmem>>, vector<1x8x32xbf16>
    %196 = vector.shape_cast %195 : vector<1x8x32xbf16> to vector<8x32xbf16>
    %cst_230 = arith.constant dense<0.000000e+00> : vector<8x32xf32>
    %197 = tpu.matmul %194, %196, %cst_230 {dimension_numbers = #tpu.dot_dimension_numbers<[1], [0], [0], [1], [0, 0, 1, 1], [], []>} : vector<8x8xbf16>, vector<8x32xbf16>, vector<8x32xf32> -> vector<8x32xf32>
    %198 = arith.addf %192, %197 : vector<8x32xf32>
    %c0_231 = arith.constant 0 : index
    %c1_232 = arith.constant 1 : index
    %c2_233 = arith.constant 2 : index
    %c0_234 = arith.constant 0 : index
    %199 = vector.load %arg6[%c0_231, %c1_232, %c2_233, %c0_234] : memref<1x2x11x8xbf16, #tpu.memory_space<vmem>>, vector<1x1x8x8xbf16>
    %200 = vector.shape_cast %199 : vector<1x1x8x8xbf16> to vector<8x8xbf16>
    %c33 = arith.constant 33 : index
    %c0_235 = arith.constant 0 : index
    %c0_236 = arith.constant 0 : index
    %201 = vector.load %arg9[%c33, %c0_235, %c0_236] : memref<49x8x32xbf16, #tpu.memory_space<vmem>>, vector<1x8x32xbf16>
    %202 = vector.shape_cast %201 : vector<1x8x32xbf16> to vector<8x32xbf16>
    %cst_237 = arith.constant dense<0.000000e+00> : vector<8x32xf32>
    %203 = tpu.matmul %200, %202, %cst_237 {dimension_numbers = #tpu.dot_dimension_numbers<[1], [0], [0], [1], [0, 0, 1, 1], [], []>} : vector<8x8xbf16>, vector<8x32xbf16>, vector<8x32xf32> -> vector<8x32xf32>
    %204 = arith.addf %198, %203 : vector<8x32xf32>
    %c0_238 = arith.constant 0 : index
    %c0_239 = arith.constant 0 : index
    %c3_240 = arith.constant 3 : index
    %c0_241 = arith.constant 0 : index
    %205 = vector.load %arg6[%c0_238, %c0_239, %c3_240, %c0_241] : memref<1x2x11x8xbf16, #tpu.memory_space<vmem>>, vector<1x1x8x8xbf16>
    %206 = vector.shape_cast %205 : vector<1x1x8x8xbf16> to vector<8x8xbf16>
    %c34 = arith.constant 34 : index
    %c0_242 = arith.constant 0 : index
    %c0_243 = arith.constant 0 : index
    %207 = vector.load %arg9[%c34, %c0_242, %c0_243] : memref<49x8x32xbf16, #tpu.memory_space<vmem>>, vector<1x8x32xbf16>
    %208 = vector.shape_cast %207 : vector<1x8x32xbf16> to vector<8x32xbf16>
    %cst_244 = arith.constant dense<0.000000e+00> : vector<8x32xf32>
    %209 = tpu.matmul %206, %208, %cst_244 {dimension_numbers = #tpu.dot_dimension_numbers<[1], [0], [0], [1], [0, 0, 1, 1], [], []>} : vector<8x8xbf16>, vector<8x32xbf16>, vector<8x32xf32> -> vector<8x32xf32>
    %210 = arith.addf %204, %209 : vector<8x32xf32>
    %c0_245 = arith.constant 0 : index
    %c0_246 = arith.constant 0 : index
    %c0_247 = arith.constant 0 : index
    %c0_248 = arith.constant 0 : index
    %211 = vector.load %arg7[%c0_245, %c0_246, %c0_247, %c0_248] : memref<1x2x11x8xbf16, #tpu.memory_space<vmem>>, vector<1x1x8x8xbf16>
    %212 = vector.shape_cast %211 : vector<1x1x8x8xbf16> to vector<8x8xbf16>
    %c35 = arith.constant 35 : index
    %c0_249 = arith.constant 0 : index
    %c0_250 = arith.constant 0 : index
    %213 = vector.load %arg9[%c35, %c0_249, %c0_250] : memref<49x8x32xbf16, #tpu.memory_space<vmem>>, vector<1x8x32xbf16>
    %214 = vector.shape_cast %213 : vector<1x8x32xbf16> to vector<8x32xbf16>
    %cst_251 = arith.constant dense<0.000000e+00> : vector<8x32xf32>
    %215 = tpu.matmul %212, %214, %cst_251 {dimension_numbers = #tpu.dot_dimension_numbers<[1], [0], [0], [1], [0, 0, 1, 1], [], []>} : vector<8x8xbf16>, vector<8x32xbf16>, vector<8x32xf32> -> vector<8x32xf32>
    %216 = arith.addf %210, %215 : vector<8x32xf32>
    %c0_252 = arith.constant 0 : index
    %c1_253 = arith.constant 1 : index
    %c0_254 = arith.constant 0 : index
    %c0_255 = arith.constant 0 : index
    %217 = vector.load %arg7[%c0_252, %c1_253, %c0_254, %c0_255] : memref<1x2x11x8xbf16, #tpu.memory_space<vmem>>, vector<1x1x8x8xbf16>
    %218 = vector.shape_cast %217 : vector<1x1x8x8xbf16> to vector<8x8xbf16>
    %c36 = arith.constant 36 : index
    %c0_256 = arith.constant 0 : index
    %c0_257 = arith.constant 0 : index
    %219 = vector.load %arg9[%c36, %c0_256, %c0_257] : memref<49x8x32xbf16, #tpu.memory_space<vmem>>, vector<1x8x32xbf16>
    %220 = vector.shape_cast %219 : vector<1x8x32xbf16> to vector<8x32xbf16>
    %cst_258 = arith.constant dense<0.000000e+00> : vector<8x32xf32>
    %221 = tpu.matmul %218, %220, %cst_258 {dimension_numbers = #tpu.dot_dimension_numbers<[1], [0], [0], [1], [0, 0, 1, 1], [], []>} : vector<8x8xbf16>, vector<8x32xbf16>, vector<8x32xf32> -> vector<8x32xf32>
    %222 = arith.addf %216, %221 : vector<8x32xf32>
    %c0_259 = arith.constant 0 : index
    %c0_260 = arith.constant 0 : index
    %c1_261 = arith.constant 1 : index
    %c0_262 = arith.constant 0 : index
    %223 = vector.load %arg7[%c0_259, %c0_260, %c1_261, %c0_262] : memref<1x2x11x8xbf16, #tpu.memory_space<vmem>>, vector<1x1x8x8xbf16>
    %224 = vector.shape_cast %223 : vector<1x1x8x8xbf16> to vector<8x8xbf16>
    %c37 = arith.constant 37 : index
    %c0_263 = arith.constant 0 : index
    %c0_264 = arith.constant 0 : index
    %225 = vector.load %arg9[%c37, %c0_263, %c0_264] : memref<49x8x32xbf16, #tpu.memory_space<vmem>>, vector<1x8x32xbf16>
    %226 = vector.shape_cast %225 : vector<1x8x32xbf16> to vector<8x32xbf16>
    %cst_265 = arith.constant dense<0.000000e+00> : vector<8x32xf32>
    %227 = tpu.matmul %224, %226, %cst_265 {dimension_numbers = #tpu.dot_dimension_numbers<[1], [0], [0], [1], [0, 0, 1, 1], [], []>} : vector<8x8xbf16>, vector<8x32xbf16>, vector<8x32xf32> -> vector<8x32xf32>
    %228 = arith.addf %222, %227 : vector<8x32xf32>
    %c0_266 = arith.constant 0 : index
    %c1_267 = arith.constant 1 : index
    %c1_268 = arith.constant 1 : index
    %c0_269 = arith.constant 0 : index
    %229 = vector.load %arg7[%c0_266, %c1_267, %c1_268, %c0_269] : memref<1x2x11x8xbf16, #tpu.memory_space<vmem>>, vector<1x1x8x8xbf16>
    %230 = vector.shape_cast %229 : vector<1x1x8x8xbf16> to vector<8x8xbf16>
    %c38 = arith.constant 38 : index
    %c0_270 = arith.constant 0 : index
    %c0_271 = arith.constant 0 : index
    %231 = vector.load %arg9[%c38, %c0_270, %c0_271] : memref<49x8x32xbf16, #tpu.memory_space<vmem>>, vector<1x8x32xbf16>
    %232 = vector.shape_cast %231 : vector<1x8x32xbf16> to vector<8x32xbf16>
    %cst_272 = arith.constant dense<0.000000e+00> : vector<8x32xf32>
    %233 = tpu.matmul %230, %232, %cst_272 {dimension_numbers = #tpu.dot_dimension_numbers<[1], [0], [0], [1], [0, 0, 1, 1], [], []>} : vector<8x8xbf16>, vector<8x32xbf16>, vector<8x32xf32> -> vector<8x32xf32>
    %234 = arith.addf %228, %233 : vector<8x32xf32>
    %c0_273 = arith.constant 0 : index
    %c0_274 = arith.constant 0 : index
    %c2_275 = arith.constant 2 : index
    %c0_276 = arith.constant 0 : index
    %235 = vector.load %arg7[%c0_273, %c0_274, %c2_275, %c0_276] : memref<1x2x11x8xbf16, #tpu.memory_space<vmem>>, vector<1x1x8x8xbf16>
    %236 = vector.shape_cast %235 : vector<1x1x8x8xbf16> to vector<8x8xbf16>
    %c39 = arith.constant 39 : index
    %c0_277 = arith.constant 0 : index
    %c0_278 = arith.constant 0 : index
    %237 = vector.load %arg9[%c39, %c0_277, %c0_278] : memref<49x8x32xbf16, #tpu.memory_space<vmem>>, vector<1x8x32xbf16>
    %238 = vector.shape_cast %237 : vector<1x8x32xbf16> to vector<8x32xbf16>
    %cst_279 = arith.constant dense<0.000000e+00> : vector<8x32xf32>
    %239 = tpu.matmul %236, %238, %cst_279 {dimension_numbers = #tpu.dot_dimension_numbers<[1], [0], [0], [1], [0, 0, 1, 1], [], []>} : vector<8x8xbf16>, vector<8x32xbf16>, vector<8x32xf32> -> vector<8x32xf32>
    %240 = arith.addf %234, %239 : vector<8x32xf32>
    %c0_280 = arith.constant 0 : index
    %c1_281 = arith.constant 1 : index
    %c2_282 = arith.constant 2 : index
    %c0_283 = arith.constant 0 : index
    %241 = vector.load %arg7[%c0_280, %c1_281, %c2_282, %c0_283] : memref<1x2x11x8xbf16, #tpu.memory_space<vmem>>, vector<1x1x8x8xbf16>
    %242 = vector.shape_cast %241 : vector<1x1x8x8xbf16> to vector<8x8xbf16>
    %c40 = arith.constant 40 : index
    %c0_284 = arith.constant 0 : index
    %c0_285 = arith.constant 0 : index
    %243 = vector.load %arg9[%c40, %c0_284, %c0_285] : memref<49x8x32xbf16, #tpu.memory_space<vmem>>, vector<1x8x32xbf16>
    %244 = vector.shape_cast %243 : vector<1x8x32xbf16> to vector<8x32xbf16>
    %cst_286 = arith.constant dense<0.000000e+00> : vector<8x32xf32>
    %245 = tpu.matmul %242, %244, %cst_286 {dimension_numbers = #tpu.dot_dimension_numbers<[1], [0], [0], [1], [0, 0, 1, 1], [], []>} : vector<8x8xbf16>, vector<8x32xbf16>, vector<8x32xf32> -> vector<8x32xf32>
    %246 = arith.addf %240, %245 : vector<8x32xf32>
    %c0_287 = arith.constant 0 : index
    %c0_288 = arith.constant 0 : index
    %c3_289 = arith.constant 3 : index
    %c0_290 = arith.constant 0 : index
    %247 = vector.load %arg7[%c0_287, %c0_288, %c3_289, %c0_290] : memref<1x2x11x8xbf16, #tpu.memory_space<vmem>>, vector<1x1x8x8xbf16>
    %248 = vector.shape_cast %247 : vector<1x1x8x8xbf16> to vector<8x8xbf16>
    %c41 = arith.constant 41 : index
    %c0_291 = arith.constant 0 : index
    %c0_292 = arith.constant 0 : index
    %249 = vector.load %arg9[%c41, %c0_291, %c0_292] : memref<49x8x32xbf16, #tpu.memory_space<vmem>>, vector<1x8x32xbf16>
    %250 = vector.shape_cast %249 : vector<1x8x32xbf16> to vector<8x32xbf16>
    %cst_293 = arith.constant dense<0.000000e+00> : vector<8x32xf32>
    %251 = tpu.matmul %248, %250, %cst_293 {dimension_numbers = #tpu.dot_dimension_numbers<[1], [0], [0], [1], [0, 0, 1, 1], [], []>} : vector<8x8xbf16>, vector<8x32xbf16>, vector<8x32xf32> -> vector<8x32xf32>
    %252 = arith.addf %246, %251 : vector<8x32xf32>
    %c0_294 = arith.constant 0 : index
    %c0_295 = arith.constant 0 : index
    %c0_296 = arith.constant 0 : index
    %c0_297 = arith.constant 0 : index
    %253 = vector.load %arg8[%c0_294, %c0_295, %c0_296, %c0_297] : memref<1x2x11x8xbf16, #tpu.memory_space<vmem>>, vector<1x1x8x8xbf16>
    %254 = vector.shape_cast %253 : vector<1x1x8x8xbf16> to vector<8x8xbf16>
    %c42 = arith.constant 42 : index
    %c0_298 = arith.constant 0 : index
    %c0_299 = arith.constant 0 : index
    %255 = vector.load %arg9[%c42, %c0_298, %c0_299] : memref<49x8x32xbf16, #tpu.memory_space<vmem>>, vector<1x8x32xbf16>
    %256 = vector.shape_cast %255 : vector<1x8x32xbf16> to vector<8x32xbf16>
    %cst_300 = arith.constant dense<0.000000e+00> : vector<8x32xf32>
    %257 = tpu.matmul %254, %256, %cst_300 {dimension_numbers = #tpu.dot_dimension_numbers<[1], [0], [0], [1], [0, 0, 1, 1], [], []>} : vector<8x8xbf16>, vector<8x32xbf16>, vector<8x32xf32> -> vector<8x32xf32>
    %258 = arith.addf %252, %257 : vector<8x32xf32>
    %c0_301 = arith.constant 0 : index
    %c1_302 = arith.constant 1 : index
    %c0_303 = arith.constant 0 : index
    %c0_304 = arith.constant 0 : index
    %259 = vector.load %arg8[%c0_301, %c1_302, %c0_303, %c0_304] : memref<1x2x11x8xbf16, #tpu.memory_space<vmem>>, vector<1x1x8x8xbf16>
    %260 = vector.shape_cast %259 : vector<1x1x8x8xbf16> to vector<8x8xbf16>
    %c43 = arith.constant 43 : index
    %c0_305 = arith.constant 0 : index
    %c0_306 = arith.constant 0 : index
    %261 = vector.load %arg9[%c43, %c0_305, %c0_306] : memref<49x8x32xbf16, #tpu.memory_space<vmem>>, vector<1x8x32xbf16>
    %262 = vector.shape_cast %261 : vector<1x8x32xbf16> to vector<8x32xbf16>
    %cst_307 = arith.constant dense<0.000000e+00> : vector<8x32xf32>
    %263 = tpu.matmul %260, %262, %cst_307 {dimension_numbers = #tpu.dot_dimension_numbers<[1], [0], [0], [1], [0, 0, 1, 1], [], []>} : vector<8x8xbf16>, vector<8x32xbf16>, vector<8x32xf32> -> vector<8x32xf32>
    %264 = arith.addf %258, %263 : vector<8x32xf32>
    %c0_308 = arith.constant 0 : index
    %c0_309 = arith.constant 0 : index
    %c1_310 = arith.constant 1 : index
    %c0_311 = arith.constant 0 : index
    %265 = vector.load %arg8[%c0_308, %c0_309, %c1_310, %c0_311] : memref<1x2x11x8xbf16, #tpu.memory_space<vmem>>, vector<1x1x8x8xbf16>
    %266 = vector.shape_cast %265 : vector<1x1x8x8xbf16> to vector<8x8xbf16>
    %c44 = arith.constant 44 : index
    %c0_312 = arith.constant 0 : index
    %c0_313 = arith.constant 0 : index
    %267 = vector.load %arg9[%c44, %c0_312, %c0_313] : memref<49x8x32xbf16, #tpu.memory_space<vmem>>, vector<1x8x32xbf16>
    %268 = vector.shape_cast %267 : vector<1x8x32xbf16> to vector<8x32xbf16>
    %cst_314 = arith.constant dense<0.000000e+00> : vector<8x32xf32>
    %269 = tpu.matmul %266, %268, %cst_314 {dimension_numbers = #tpu.dot_dimension_numbers<[1], [0], [0], [1], [0, 0, 1, 1], [], []>} : vector<8x8xbf16>, vector<8x32xbf16>, vector<8x32xf32> -> vector<8x32xf32>
    %270 = arith.addf %264, %269 : vector<8x32xf32>
    %c0_315 = arith.constant 0 : index
    %c1_316 = arith.constant 1 : index
    %c1_317 = arith.constant 1 : index
    %c0_318 = arith.constant 0 : index
    %271 = vector.load %arg8[%c0_315, %c1_316, %c1_317, %c0_318] : memref<1x2x11x8xbf16, #tpu.memory_space<vmem>>, vector<1x1x8x8xbf16>
    %272 = vector.shape_cast %271 : vector<1x1x8x8xbf16> to vector<8x8xbf16>
    %c45 = arith.constant 45 : index
    %c0_319 = arith.constant 0 : index
    %c0_320 = arith.constant 0 : index
    %273 = vector.load %arg9[%c45, %c0_319, %c0_320] : memref<49x8x32xbf16, #tpu.memory_space<vmem>>, vector<1x8x32xbf16>
    %274 = vector.shape_cast %273 : vector<1x8x32xbf16> to vector<8x32xbf16>
    %cst_321 = arith.constant dense<0.000000e+00> : vector<8x32xf32>
    %275 = tpu.matmul %272, %274, %cst_321 {dimension_numbers = #tpu.dot_dimension_numbers<[1], [0], [0], [1], [0, 0, 1, 1], [], []>} : vector<8x8xbf16>, vector<8x32xbf16>, vector<8x32xf32> -> vector<8x32xf32>
    %276 = arith.addf %270, %275 : vector<8x32xf32>
    %c0_322 = arith.constant 0 : index
    %c0_323 = arith.constant 0 : index
    %c2_324 = arith.constant 2 : index
    %c0_325 = arith.constant 0 : index
    %277 = vector.load %arg8[%c0_322, %c0_323, %c2_324, %c0_325] : memref<1x2x11x8xbf16, #tpu.memory_space<vmem>>, vector<1x1x8x8xbf16>
    %278 = vector.shape_cast %277 : vector<1x1x8x8xbf16> to vector<8x8xbf16>
    %c46 = arith.constant 46 : index
    %c0_326 = arith.constant 0 : index
    %c0_327 = arith.constant 0 : index
    %279 = vector.load %arg9[%c46, %c0_326, %c0_327] : memref<49x8x32xbf16, #tpu.memory_space<vmem>>, vector<1x8x32xbf16>
    %280 = vector.shape_cast %279 : vector<1x8x32xbf16> to vector<8x32xbf16>
    %cst_328 = arith.constant dense<0.000000e+00> : vector<8x32xf32>
    %281 = tpu.matmul %278, %280, %cst_328 {dimension_numbers = #tpu.dot_dimension_numbers<[1], [0], [0], [1], [0, 0, 1, 1], [], []>} : vector<8x8xbf16>, vector<8x32xbf16>, vector<8x32xf32> -> vector<8x32xf32>
    %282 = arith.addf %276, %281 : vector<8x32xf32>
    %c0_329 = arith.constant 0 : index
    %c1_330 = arith.constant 1 : index
    %c2_331 = arith.constant 2 : index
    %c0_332 = arith.constant 0 : index
    %283 = vector.load %arg8[%c0_329, %c1_330, %c2_331, %c0_332] : memref<1x2x11x8xbf16, #tpu.memory_space<vmem>>, vector<1x1x8x8xbf16>
    %284 = vector.shape_cast %283 : vector<1x1x8x8xbf16> to vector<8x8xbf16>
    %c47 = arith.constant 47 : index
    %c0_333 = arith.constant 0 : index
    %c0_334 = arith.constant 0 : index
    %285 = vector.load %arg9[%c47, %c0_333, %c0_334] : memref<49x8x32xbf16, #tpu.memory_space<vmem>>, vector<1x8x32xbf16>
    %286 = vector.shape_cast %285 : vector<1x8x32xbf16> to vector<8x32xbf16>
    %cst_335 = arith.constant dense<0.000000e+00> : vector<8x32xf32>
    %287 = tpu.matmul %284, %286, %cst_335 {dimension_numbers = #tpu.dot_dimension_numbers<[1], [0], [0], [1], [0, 0, 1, 1], [], []>} : vector<8x8xbf16>, vector<8x32xbf16>, vector<8x32xf32> -> vector<8x32xf32>
    %288 = arith.addf %282, %287 : vector<8x32xf32>
    %c0_336 = arith.constant 0 : index
    %c0_337 = arith.constant 0 : index
    %c3_338 = arith.constant 3 : index
    %c0_339 = arith.constant 0 : index
    %289 = vector.load %arg8[%c0_336, %c0_337, %c3_338, %c0_339] : memref<1x2x11x8xbf16, #tpu.memory_space<vmem>>, vector<1x1x8x8xbf16>
    %290 = vector.shape_cast %289 : vector<1x1x8x8xbf16> to vector<8x8xbf16>
    %c48 = arith.constant 48 : index
    %c0_340 = arith.constant 0 : index
    %c0_341 = arith.constant 0 : index
    %291 = vector.load %arg9[%c48, %c0_340, %c0_341] : memref<49x8x32xbf16, #tpu.memory_space<vmem>>, vector<1x8x32xbf16>
    %292 = vector.shape_cast %291 : vector<1x8x32xbf16> to vector<8x32xbf16>
    %cst_342 = arith.constant dense<0.000000e+00> : vector<8x32xf32>
    %293 = tpu.matmul %290, %292, %cst_342 {dimension_numbers = #tpu.dot_dimension_numbers<[1], [0], [0], [1], [0, 0, 1, 1], [], []>} : vector<8x8xbf16>, vector<8x32xbf16>, vector<8x32xf32> -> vector<8x32xf32>
    %294 = arith.addf %288, %293 : vector<8x32xf32>
    %c0_343 = arith.constant 0 : index
    %c0_344 = arith.constant 0 : index
    %295 = vector.load %arg10[%c0_343, %c0_344] : memref<1x32xf32, #tpu.memory_space<vmem>>, vector<1x32xf32>
    %296 = vector.broadcast %295 : vector<1x32xf32> to vector<8x32xf32>
    %297 = arith.addf %294, %296 : vector<8x32xf32>
    %cst_345 = arith.constant 0.000000e+00 : f32
    %298 = vector.broadcast %cst_345 : f32 to vector<8x32xf32>
    %299 = arith.maximumf %297, %298 : vector<8x32xf32>
    %300 = vector.extract_strided_slice %299 {offsets = [0, 0], sizes = [6, 32], strides = [1, 1]} : vector<8x32xf32> to vector<6x32xf32>
    %301 = arith.truncf %300 : vector<6x32xf32> to vector<6x32xbf16>
    %c0_346 = arith.constant 0 : index
    %c0_347 = arith.constant 0 : index
    %c0_348 = arith.constant 0 : index
    %302 = vector.load %arg11[%c0_346, %c0_347, %c0_348] : memref<1x6x32xbf16, #tpu.memory_space<vmem>>, vector<1x6x32xbf16>
    %303 = vector.shape_cast %302 : vector<1x6x32xbf16> to vector<6x32xbf16>
    %304 = vector.shape_cast %301 : vector<6x32xbf16> to vector<1x6x32xbf16>
    tpu.vector_store %arg11[%c0_346, %c0_347, %c0_348], %304 {strides = array<i32>} : memref<1x6x32xbf16, #tpu.memory_space<vmem>>, vector<1x6x32xbf16>,
    return
  }
  func.func @transform_0(%arg0: i32, %arg1: i32) -> (i32, i32, i32, i32) {
    %c18_i32 = arith.constant 18 : i32
    %0 = arith.muli %arg0, %c18_i32 : i32
    %c2_i32 = arith.constant 2 : i32
    %1 = arith.muli %c2_i32, %arg1 : i32
    %2 = arith.addi %0, %1 : i32
    %c0_i32 = arith.constant 0 : i32
    %3 = arith.addi %2, %c0_i32 : i32
    %c0_i32_0 = arith.constant 0 : i32
    %c0_i32_1 = arith.constant 0 : i32
    %c0_i32_2 = arith.constant 0 : i32
    %c0_i32_3 = arith.constant 0 : i32
    return %3, %c0_i32_0, %c0_i32_1, %c0_i32_2 : i32, i32, i32, i32
  }
  func.func @transform_1(%arg0: i32, %arg1: i32) -> (i32, i32, i32, i32) {
    %c18_i32 = arith.constant 18 : i32
    %0 = arith.muli %arg0, %c18_i32 : i32
    %c2_i32 = arith.constant 2 : i32
    %1 = arith.muli %c2_i32, %arg1 : i32
    %2 = arith.addi %0, %1 : i32
    %c1_i32 = arith.constant 1 : i32
    %3 = arith.addi %2, %c1_i32 : i32
    %c0_i32 = arith.constant 0 : i32
    %c0_i32_0 = arith.constant 0 : i32
    %c0_i32_1 = arith.constant 0 : i32
    %c0_i32_2 = arith.constant 0 : i32
    return %3, %c0_i32, %c0_i32_0, %c0_i32_1 : i32, i32, i32, i32
  }
  func.func @transform_2(%arg0: i32, %arg1: i32) -> (i32, i32, i32, i32) {
    %c18_i32 = arith.constant 18 : i32
    %0 = arith.muli %arg0, %c18_i32 : i32
    %c2_i32 = arith.constant 2 : i32
    %1 = arith.muli %c2_i32, %arg1 : i32
    %2 = arith.addi %0, %1 : i32
    %c2_i32_0 = arith.constant 2 : i32
    %3 = arith.addi %2, %c2_i32_0 : i32
    %c0_i32 = arith.constant 0 : i32
    %c0_i32_1 = arith.constant 0 : i32
    %c0_i32_2 = arith.constant 0 : i32
    %c0_i32_3 = arith.constant 0 : i32
    return %3, %c0_i32, %c0_i32_1, %c0_i32_2 : i32, i32, i32, i32
  }
  func.func @transform_3(%arg0: i32, %arg1: i32) -> (i32, i32, i32, i32) {
    %c18_i32 = arith.constant 18 : i32
    %0 = arith.muli %arg0, %c18_i32 : i32
    %c2_i32 = arith.constant 2 : i32
    %1 = arith.muli %c2_i32, %arg1 : i32
    %2 = arith.addi %0, %1 : i32
    %c3_i32 = arith.constant 3 : i32
    %3 = arith.addi %2, %c3_i32 : i32
    %c0_i32 = arith.constant 0 : i32
    %c0_i32_0 = arith.constant 0 : i32
    %c0_i32_1 = arith.constant 0 : i32
    %c0_i32_2 = arith.constant 0 : i32
    return %3, %c0_i32, %c0_i32_0, %c0_i32_1 : i32, i32, i32, i32
  }
  func.func @transform_4(%arg0: i32, %arg1: i32) -> (i32, i32, i32, i32) {
    %c18_i32 = arith.constant 18 : i32
    %0 = arith.muli %arg0, %c18_i32 : i32
    %c2_i32 = arith.constant 2 : i32
    %1 = arith.muli %c2_i32, %arg1 : i32
    %2 = arith.addi %0, %1 : i32
    %c4_i32 = arith.constant 4 : i32
    %3 = arith.addi %2, %c4_i32 : i32
    %c0_i32 = arith.constant 0 : i32
    %c0_i32_0 = arith.constant 0 : i32
    %c0_i32_1 = arith.constant 0 : i32
    %c0_i32_2 = arith.constant 0 : i32
    return %3, %c0_i32, %c0_i32_0, %c0_i32_1 : i32, i32, i32, i32
  }
  func.func @transform_5(%arg0: i32, %arg1: i32) -> (i32, i32, i32, i32) {
    %c18_i32 = arith.constant 18 : i32
    %0 = arith.muli %arg0, %c18_i32 : i32
    %c2_i32 = arith.constant 2 : i32
    %1 = arith.muli %c2_i32, %arg1 : i32
    %2 = arith.addi %0, %1 : i32
    %c5_i32 = arith.constant 5 : i32
    %3 = arith.addi %2, %c5_i32 : i32
    %c0_i32 = arith.constant 0 : i32
    %c0_i32_0 = arith.constant 0 : i32
    %c0_i32_1 = arith.constant 0 : i32
    %c0_i32_2 = arith.constant 0 : i32
    return %3, %c0_i32, %c0_i32_0, %c0_i32_1 : i32, i32, i32, i32
  }
  func.func @transform_6(%arg0: i32, %arg1: i32) -> (i32, i32, i32, i32) {
    %c18_i32 = arith.constant 18 : i32
    %0 = arith.muli %arg0, %c18_i32 : i32
    %c2_i32 = arith.constant 2 : i32
    %1 = arith.muli %c2_i32, %arg1 : i32
    %2 = arith.addi %0, %1 : i32
    %c6_i32 = arith.constant 6 : i32
    %3 = arith.addi %2, %c6_i32 : i32
    %c0_i32 = arith.constant 0 : i32
    %c0_i32_0 = arith.constant 0 : i32
    %c0_i32_1 = arith.constant 0 : i32
    %c0_i32_2 = arith.constant 0 : i32
    return %3, %c0_i32, %c0_i32_0, %c0_i32_1 : i32, i32, i32, i32
  }
  func.func @transform_7(%arg0: i32, %arg1: i32) -> (i32, i32, i32) {
    %c0_i32 = arith.constant 0 : i32
    %c0_i32_0 = arith.constant 0 : i32
    %c0_i32_1 = arith.constant 0 : i32
    %c0_i32_2 = arith.constant 0 : i32
    return %c0_i32, %c0_i32_0, %c0_i32_1 : i32, i32, i32
  }
  func.func @transform_8(%arg0: i32, %arg1: i32) -> (i32, i32) {
    %c0_i32 = arith.constant 0 : i32
    %c0_i32_0 = arith.constant 0 : i32
    %c0_i32_1 = arith.constant 0 : i32
    return %c0_i32, %c0_i32_0 : i32, i32
  }
  func.func @transform_9(%arg0: i32, %arg1: i32) -> (i32, i32, i32) {
    %c6_i32 = arith.constant 6 : i32
    %0 = arith.muli %arg0, %c6_i32 : i32
    %1 = arith.addi %0, %arg1 : i32
    %c0_i32 = arith.constant 0 : i32
    %c0_i32_0 = arith.constant 0 : i32
    %c0_i32_1 = arith.constant 0 : i32
    return %1, %c0_i32, %c0_i32_0 : i32, i32, i32
  }
}

module attributes {stable_mosaic.version = 11 : i64} {
  func.func @_conv_row_kernel(%arg0: i32, %arg1: i32, %arg2: memref<1x2x9x32xbf16, #tpu.memory_space<vmem>>, %arg3: memref<1x2x9x32xbf16, #tpu.memory_space<vmem>>, %arg4: memref<1x2x9x32xbf16, #tpu.memory_space<vmem>>, %arg5: memref<9x32x32xbf16, #tpu.memory_space<vmem>>, %arg6: memref<1x32xf32, #tpu.memory_space<vmem>>, %arg7: memref<1x3x32xbf16, #tpu.memory_space<vmem>>) attributes {dimension_semantics = [#tpu.dimension_semantics<parallel>, #tpu.dimension_semantics<parallel>], iteration_bounds = array<i64: 2, 3>, scalar_prefetch = 0 : i64, scratch_operands = 0 : i64, tpu.core_type = #tpu.core_type<tc>, window_params = [{transform_indices = @transform_0, window_bounds = array<i64: 1, 2, 9, 32>}, {transform_indices = @transform_1, window_bounds = array<i64: 1, 2, 9, 32>}, {transform_indices = @transform_2, window_bounds = array<i64: 1, 2, 9, 32>}, {pipeline_mode = #tpu.pipeline_mode<synchronous>, transform_indices = @transform_3, window_bounds = array<i64: 9, 32, 32>}, {pipeline_mode = #tpu.pipeline_mode<synchronous>, transform_indices = @transform_4, window_bounds = array<i64: 1, 32>}, {transform_indices = @transform_5, window_bounds = array<i64: 1, 3, 32>}]} {
    %cst = arith.constant 0.000000e+00 : f32
    %0 = vector.broadcast %cst : f32 to vector<8x32xf32>
    %c0 = arith.constant 0 : index
    %c0_0 = arith.constant 0 : index
    %c0_1 = arith.constant 0 : index
    %c0_2 = arith.constant 0 : index
    %1 = vector.load %arg2[%c0, %c0_0, %c0_1, %c0_2] : memref<1x2x9x32xbf16, #tpu.memory_space<vmem>>, vector<1x1x8x32xbf16>
    %2 = vector.shape_cast %1 : vector<1x1x8x32xbf16> to vector<8x32xbf16>
    %c0_3 = arith.constant 0 : index
    %c0_4 = arith.constant 0 : index
    %c0_5 = arith.constant 0 : index
    %3 = vector.load %arg5[%c0_3, %c0_4, %c0_5] : memref<9x32x32xbf16, #tpu.memory_space<vmem>>, vector<1x32x32xbf16>
    %4 = vector.shape_cast %3 : vector<1x32x32xbf16> to vector<32x32xbf16>
    %cst_6 = arith.constant dense<0.000000e+00> : vector<8x32xf32>
    %5 = tpu.matmul %2, %4, %cst_6 {dimension_numbers = #tpu.dot_dimension_numbers<[1], [0], [0], [1], [0, 0, 1, 1], [], []>} : vector<8x32xbf16>, vector<32x32xbf16>, vector<8x32xf32> -> vector<8x32xf32>
    %6 = arith.addf %0, %5 : vector<8x32xf32>
    %c0_7 = arith.constant 0 : index
    %c1 = arith.constant 1 : index
    %c0_8 = arith.constant 0 : index
    %c0_9 = arith.constant 0 : index
    %7 = vector.load %arg2[%c0_7, %c1, %c0_8, %c0_9] : memref<1x2x9x32xbf16, #tpu.memory_space<vmem>>, vector<1x1x8x32xbf16>
    %8 = vector.shape_cast %7 : vector<1x1x8x32xbf16> to vector<8x32xbf16>
    %c1_10 = arith.constant 1 : index
    %c0_11 = arith.constant 0 : index
    %c0_12 = arith.constant 0 : index
    %9 = vector.load %arg5[%c1_10, %c0_11, %c0_12] : memref<9x32x32xbf16, #tpu.memory_space<vmem>>, vector<1x32x32xbf16>
    %10 = vector.shape_cast %9 : vector<1x32x32xbf16> to vector<32x32xbf16>
    %cst_13 = arith.constant dense<0.000000e+00> : vector<8x32xf32>
    %11 = tpu.matmul %8, %10, %cst_13 {dimension_numbers = #tpu.dot_dimension_numbers<[1], [0], [0], [1], [0, 0, 1, 1], [], []>} : vector<8x32xbf16>, vector<32x32xbf16>, vector<8x32xf32> -> vector<8x32xf32>
    %12 = arith.addf %6, %11 : vector<8x32xf32>
    %c0_14 = arith.constant 0 : index
    %c0_15 = arith.constant 0 : index
    %c1_16 = arith.constant 1 : index
    %c0_17 = arith.constant 0 : index
    %13 = vector.load %arg2[%c0_14, %c0_15, %c1_16, %c0_17] : memref<1x2x9x32xbf16, #tpu.memory_space<vmem>>, vector<1x1x8x32xbf16>
    %14 = vector.shape_cast %13 : vector<1x1x8x32xbf16> to vector<8x32xbf16>
    %c2 = arith.constant 2 : index
    %c0_18 = arith.constant 0 : index
    %c0_19 = arith.constant 0 : index
    %15 = vector.load %arg5[%c2, %c0_18, %c0_19] : memref<9x32x32xbf16, #tpu.memory_space<vmem>>, vector<1x32x32xbf16>
    %16 = vector.shape_cast %15 : vector<1x32x32xbf16> to vector<32x32xbf16>
    %cst_20 = arith.constant dense<0.000000e+00> : vector<8x32xf32>
    %17 = tpu.matmul %14, %16, %cst_20 {dimension_numbers = #tpu.dot_dimension_numbers<[1], [0], [0], [1], [0, 0, 1, 1], [], []>} : vector<8x32xbf16>, vector<32x32xbf16>, vector<8x32xf32> -> vector<8x32xf32>
    %18 = arith.addf %12, %17 : vector<8x32xf32>
    %c0_21 = arith.constant 0 : index
    %c0_22 = arith.constant 0 : index
    %c0_23 = arith.constant 0 : index
    %c0_24 = arith.constant 0 : index
    %19 = vector.load %arg3[%c0_21, %c0_22, %c0_23, %c0_24] : memref<1x2x9x32xbf16, #tpu.memory_space<vmem>>, vector<1x1x8x32xbf16>
    %20 = vector.shape_cast %19 : vector<1x1x8x32xbf16> to vector<8x32xbf16>
    %c3 = arith.constant 3 : index
    %c0_25 = arith.constant 0 : index
    %c0_26 = arith.constant 0 : index
    %21 = vector.load %arg5[%c3, %c0_25, %c0_26] : memref<9x32x32xbf16, #tpu.memory_space<vmem>>, vector<1x32x32xbf16>
    %22 = vector.shape_cast %21 : vector<1x32x32xbf16> to vector<32x32xbf16>
    %cst_27 = arith.constant dense<0.000000e+00> : vector<8x32xf32>
    %23 = tpu.matmul %20, %22, %cst_27 {dimension_numbers = #tpu.dot_dimension_numbers<[1], [0], [0], [1], [0, 0, 1, 1], [], []>} : vector<8x32xbf16>, vector<32x32xbf16>, vector<8x32xf32> -> vector<8x32xf32>
    %24 = arith.addf %18, %23 : vector<8x32xf32>
    %c0_28 = arith.constant 0 : index
    %c1_29 = arith.constant 1 : index
    %c0_30 = arith.constant 0 : index
    %c0_31 = arith.constant 0 : index
    %25 = vector.load %arg3[%c0_28, %c1_29, %c0_30, %c0_31] : memref<1x2x9x32xbf16, #tpu.memory_space<vmem>>, vector<1x1x8x32xbf16>
    %26 = vector.shape_cast %25 : vector<1x1x8x32xbf16> to vector<8x32xbf16>
    %c4 = arith.constant 4 : index
    %c0_32 = arith.constant 0 : index
    %c0_33 = arith.constant 0 : index
    %27 = vector.load %arg5[%c4, %c0_32, %c0_33] : memref<9x32x32xbf16, #tpu.memory_space<vmem>>, vector<1x32x32xbf16>
    %28 = vector.shape_cast %27 : vector<1x32x32xbf16> to vector<32x32xbf16>
    %cst_34 = arith.constant dense<0.000000e+00> : vector<8x32xf32>
    %29 = tpu.matmul %26, %28, %cst_34 {dimension_numbers = #tpu.dot_dimension_numbers<[1], [0], [0], [1], [0, 0, 1, 1], [], []>} : vector<8x32xbf16>, vector<32x32xbf16>, vector<8x32xf32> -> vector<8x32xf32>
    %30 = arith.addf %24, %29 : vector<8x32xf32>
    %c0_35 = arith.constant 0 : index
    %c0_36 = arith.constant 0 : index
    %c1_37 = arith.constant 1 : index
    %c0_38 = arith.constant 0 : index
    %31 = vector.load %arg3[%c0_35, %c0_36, %c1_37, %c0_38] : memref<1x2x9x32xbf16, #tpu.memory_space<vmem>>, vector<1x1x8x32xbf16>
    %32 = vector.shape_cast %31 : vector<1x1x8x32xbf16> to vector<8x32xbf16>
    %c5 = arith.constant 5 : index
    %c0_39 = arith.constant 0 : index
    %c0_40 = arith.constant 0 : index
    %33 = vector.load %arg5[%c5, %c0_39, %c0_40] : memref<9x32x32xbf16, #tpu.memory_space<vmem>>, vector<1x32x32xbf16>
    %34 = vector.shape_cast %33 : vector<1x32x32xbf16> to vector<32x32xbf16>
    %cst_41 = arith.constant dense<0.000000e+00> : vector<8x32xf32>
    %35 = tpu.matmul %32, %34, %cst_41 {dimension_numbers = #tpu.dot_dimension_numbers<[1], [0], [0], [1], [0, 0, 1, 1], [], []>} : vector<8x32xbf16>, vector<32x32xbf16>, vector<8x32xf32> -> vector<8x32xf32>
    %36 = arith.addf %30, %35 : vector<8x32xf32>
    %c0_42 = arith.constant 0 : index
    %c0_43 = arith.constant 0 : index
    %c0_44 = arith.constant 0 : index
    %c0_45 = arith.constant 0 : index
    %37 = vector.load %arg4[%c0_42, %c0_43, %c0_44, %c0_45] : memref<1x2x9x32xbf16, #tpu.memory_space<vmem>>, vector<1x1x8x32xbf16>
    %38 = vector.shape_cast %37 : vector<1x1x8x32xbf16> to vector<8x32xbf16>
    %c6 = arith.constant 6 : index
    %c0_46 = arith.constant 0 : index
    %c0_47 = arith.constant 0 : index
    %39 = vector.load %arg5[%c6, %c0_46, %c0_47] : memref<9x32x32xbf16, #tpu.memory_space<vmem>>, vector<1x32x32xbf16>
    %40 = vector.shape_cast %39 : vector<1x32x32xbf16> to vector<32x32xbf16>
    %cst_48 = arith.constant dense<0.000000e+00> : vector<8x32xf32>
    %41 = tpu.matmul %38, %40, %cst_48 {dimension_numbers = #tpu.dot_dimension_numbers<[1], [0], [0], [1], [0, 0, 1, 1], [], []>} : vector<8x32xbf16>, vector<32x32xbf16>, vector<8x32xf32> -> vector<8x32xf32>
    %42 = arith.addf %36, %41 : vector<8x32xf32>
    %c0_49 = arith.constant 0 : index
    %c1_50 = arith.constant 1 : index
    %c0_51 = arith.constant 0 : index
    %c0_52 = arith.constant 0 : index
    %43 = vector.load %arg4[%c0_49, %c1_50, %c0_51, %c0_52] : memref<1x2x9x32xbf16, #tpu.memory_space<vmem>>, vector<1x1x8x32xbf16>
    %44 = vector.shape_cast %43 : vector<1x1x8x32xbf16> to vector<8x32xbf16>
    %c7 = arith.constant 7 : index
    %c0_53 = arith.constant 0 : index
    %c0_54 = arith.constant 0 : index
    %45 = vector.load %arg5[%c7, %c0_53, %c0_54] : memref<9x32x32xbf16, #tpu.memory_space<vmem>>, vector<1x32x32xbf16>
    %46 = vector.shape_cast %45 : vector<1x32x32xbf16> to vector<32x32xbf16>
    %cst_55 = arith.constant dense<0.000000e+00> : vector<8x32xf32>
    %47 = tpu.matmul %44, %46, %cst_55 {dimension_numbers = #tpu.dot_dimension_numbers<[1], [0], [0], [1], [0, 0, 1, 1], [], []>} : vector<8x32xbf16>, vector<32x32xbf16>, vector<8x32xf32> -> vector<8x32xf32>
    %48 = arith.addf %42, %47 : vector<8x32xf32>
    %c0_56 = arith.constant 0 : index
    %c0_57 = arith.constant 0 : index
    %c1_58 = arith.constant 1 : index
    %c0_59 = arith.constant 0 : index
    %49 = vector.load %arg4[%c0_56, %c0_57, %c1_58, %c0_59] : memref<1x2x9x32xbf16, #tpu.memory_space<vmem>>, vector<1x1x8x32xbf16>
    %50 = vector.shape_cast %49 : vector<1x1x8x32xbf16> to vector<8x32xbf16>
    %c8 = arith.constant 8 : index
    %c0_60 = arith.constant 0 : index
    %c0_61 = arith.constant 0 : index
    %51 = vector.load %arg5[%c8, %c0_60, %c0_61] : memref<9x32x32xbf16, #tpu.memory_space<vmem>>, vector<1x32x32xbf16>
    %52 = vector.shape_cast %51 : vector<1x32x32xbf16> to vector<32x32xbf16>
    %cst_62 = arith.constant dense<0.000000e+00> : vector<8x32xf32>
    %53 = tpu.matmul %50, %52, %cst_62 {dimension_numbers = #tpu.dot_dimension_numbers<[1], [0], [0], [1], [0, 0, 1, 1], [], []>} : vector<8x32xbf16>, vector<32x32xbf16>, vector<8x32xf32> -> vector<8x32xf32>
    %54 = arith.addf %48, %53 : vector<8x32xf32>
    %c0_63 = arith.constant 0 : index
    %c0_64 = arith.constant 0 : index
    %55 = vector.load %arg6[%c0_63, %c0_64] : memref<1x32xf32, #tpu.memory_space<vmem>>, vector<1x32xf32>
    %56 = vector.broadcast %55 : vector<1x32xf32> to vector<8x32xf32>
    %57 = arith.addf %54, %56 : vector<8x32xf32>
    %cst_65 = arith.constant 0.000000e+00 : f32
    %58 = vector.broadcast %cst_65 : f32 to vector<8x32xf32>
    %59 = arith.maximumf %57, %58 : vector<8x32xf32>
    %60 = vector.extract_strided_slice %59 {offsets = [0, 0], sizes = [3, 32], strides = [1, 1]} : vector<8x32xf32> to vector<3x32xf32>
    %61 = arith.truncf %60 : vector<3x32xf32> to vector<3x32xbf16>
    %c0_66 = arith.constant 0 : index
    %c0_67 = arith.constant 0 : index
    %c0_68 = arith.constant 0 : index
    %62 = vector.load %arg7[%c0_66, %c0_67, %c0_68] : memref<1x3x32xbf16, #tpu.memory_space<vmem>>, vector<1x3x32xbf16>
    %63 = vector.shape_cast %62 : vector<1x3x32xbf16> to vector<3x32xbf16>
    %64 = vector.shape_cast %61 : vector<3x32xbf16> to vector<1x3x32xbf16>
    tpu.vector_store %arg7[%c0_66, %c0_67, %c0_68], %64 {strides = array<i32>} : memref<1x3x32xbf16, #tpu.memory_space<vmem>>, vector<1x3x32xbf16>,
    return
  }
  func.func @transform_0(%arg0: i32, %arg1: i32) -> (i32, i32, i32, i32) {
    %c8_i32 = arith.constant 8 : i32
    %0 = arith.muli %arg0, %c8_i32 : i32
    %c2_i32 = arith.constant 2 : i32
    %1 = arith.muli %c2_i32, %arg1 : i32
    %2 = arith.addi %0, %1 : i32
    %c0_i32 = arith.constant 0 : i32
    %3 = arith.addi %2, %c0_i32 : i32
    %c0_i32_0 = arith.constant 0 : i32
    %c0_i32_1 = arith.constant 0 : i32
    %c0_i32_2 = arith.constant 0 : i32
    %c0_i32_3 = arith.constant 0 : i32
    return %3, %c0_i32_0, %c0_i32_1, %c0_i32_2 : i32, i32, i32, i32
  }
  func.func @transform_1(%arg0: i32, %arg1: i32) -> (i32, i32, i32, i32) {
    %c8_i32 = arith.constant 8 : i32
    %0 = arith.muli %arg0, %c8_i32 : i32
    %c2_i32 = arith.constant 2 : i32
    %1 = arith.muli %c2_i32, %arg1 : i32
    %2 = arith.addi %0, %1 : i32
    %c1_i32 = arith.constant 1 : i32
    %3 = arith.addi %2, %c1_i32 : i32
    %c0_i32 = arith.constant 0 : i32
    %c0_i32_0 = arith.constant 0 : i32
    %c0_i32_1 = arith.constant 0 : i32
    %c0_i32_2 = arith.constant 0 : i32
    return %3, %c0_i32, %c0_i32_0, %c0_i32_1 : i32, i32, i32, i32
  }
  func.func @transform_2(%arg0: i32, %arg1: i32) -> (i32, i32, i32, i32) {
    %c8_i32 = arith.constant 8 : i32
    %0 = arith.muli %arg0, %c8_i32 : i32
    %c2_i32 = arith.constant 2 : i32
    %1 = arith.muli %c2_i32, %arg1 : i32
    %2 = arith.addi %0, %1 : i32
    %c2_i32_0 = arith.constant 2 : i32
    %3 = arith.addi %2, %c2_i32_0 : i32
    %c0_i32 = arith.constant 0 : i32
    %c0_i32_1 = arith.constant 0 : i32
    %c0_i32_2 = arith.constant 0 : i32
    %c0_i32_3 = arith.constant 0 : i32
    return %3, %c0_i32, %c0_i32_1, %c0_i32_2 : i32, i32, i32, i32
  }
  func.func @transform_3(%arg0: i32, %arg1: i32) -> (i32, i32, i32) {
    %c0_i32 = arith.constant 0 : i32
    %c0_i32_0 = arith.constant 0 : i32
    %c0_i32_1 = arith.constant 0 : i32
    %c0_i32_2 = arith.constant 0 : i32
    return %c0_i32, %c0_i32_0, %c0_i32_1 : i32, i32, i32
  }
  func.func @transform_4(%arg0: i32, %arg1: i32) -> (i32, i32) {
    %c0_i32 = arith.constant 0 : i32
    %c0_i32_0 = arith.constant 0 : i32
    %c0_i32_1 = arith.constant 0 : i32
    return %c0_i32, %c0_i32_0 : i32, i32
  }
  func.func @transform_5(%arg0: i32, %arg1: i32) -> (i32, i32, i32) {
    %c3_i32 = arith.constant 3 : i32
    %0 = arith.muli %arg0, %c3_i32 : i32
    %1 = arith.addi %0, %arg1 : i32
    %c0_i32 = arith.constant 0 : i32
    %c0_i32_0 = arith.constant 0 : i32
    %c0_i32_1 = arith.constant 0 : i32
    return %1, %c0_i32, %c0_i32_0 : i32, i32, i32
  }
}

module attributes {stable_mosaic.version = 11 : i64} {
  func.func @_conv_row_kernel(%arg0: i32, %arg1: i32, %arg2: memref<1x2x9x32xbf16, #tpu.memory_space<vmem>>, %arg3: memref<1x2x9x32xbf16, #tpu.memory_space<vmem>>, %arg4: memref<1x2x9x32xbf16, #tpu.memory_space<vmem>>, %arg5: memref<9x32x32xbf16, #tpu.memory_space<vmem>>, %arg6: memref<1x32xf32, #tpu.memory_space<vmem>>, %arg7: memref<1x1x32xf32, #tpu.memory_space<vmem>>, %arg8: memref<1x32xf32, #tpu.memory_space<vmem>>) attributes {dimension_semantics = [#tpu.dimension_semantics<parallel>, #tpu.dimension_semantics<arbitrary>], iteration_bounds = array<i64: 2, 2>, scalar_prefetch = 0 : i64, scratch_operands = 1 : i64, tpu.core_type = #tpu.core_type<tc>, window_params = [{transform_indices = @transform_0, window_bounds = array<i64: 1, 2, 9, 32>}, {transform_indices = @transform_1, window_bounds = array<i64: 1, 2, 9, 32>}, {transform_indices = @transform_2, window_bounds = array<i64: 1, 2, 9, 32>}, {pipeline_mode = #tpu.pipeline_mode<synchronous>, transform_indices = @transform_3, window_bounds = array<i64: 9, 32, 32>}, {pipeline_mode = #tpu.pipeline_mode<synchronous>, transform_indices = @transform_4, window_bounds = array<i64: 1, 32>}, {transform_indices = @transform_5, window_bounds = array<i64: 1, 1, 32>}]} {
    %cst = arith.constant 0.000000e+00 : f32
    %0 = vector.broadcast %cst : f32 to vector<8x32xf32>
    %c0 = arith.constant 0 : index
    %c0_0 = arith.constant 0 : index
    %c0_1 = arith.constant 0 : index
    %c0_2 = arith.constant 0 : index
    %1 = vector.load %arg2[%c0, %c0_0, %c0_1, %c0_2] : memref<1x2x9x32xbf16, #tpu.memory_space<vmem>>, vector<1x1x8x32xbf16>
    %2 = vector.shape_cast %1 : vector<1x1x8x32xbf16> to vector<8x32xbf16>
    %c0_3 = arith.constant 0 : index
    %c0_4 = arith.constant 0 : index
    %c0_5 = arith.constant 0 : index
    %3 = vector.load %arg5[%c0_3, %c0_4, %c0_5] : memref<9x32x32xbf16, #tpu.memory_space<vmem>>, vector<1x32x32xbf16>
    %4 = vector.shape_cast %3 : vector<1x32x32xbf16> to vector<32x32xbf16>
    %cst_6 = arith.constant dense<0.000000e+00> : vector<8x32xf32>
    %5 = tpu.matmul %2, %4, %cst_6 {dimension_numbers = #tpu.dot_dimension_numbers<[1], [0], [0], [1], [0, 0, 1, 1], [], []>} : vector<8x32xbf16>, vector<32x32xbf16>, vector<8x32xf32> -> vector<8x32xf32>
    %6 = arith.addf %0, %5 : vector<8x32xf32>
    %c0_7 = arith.constant 0 : index
    %c1 = arith.constant 1 : index
    %c0_8 = arith.constant 0 : index
    %c0_9 = arith.constant 0 : index
    %7 = vector.load %arg2[%c0_7, %c1, %c0_8, %c0_9] : memref<1x2x9x32xbf16, #tpu.memory_space<vmem>>, vector<1x1x8x32xbf16>
    %8 = vector.shape_cast %7 : vector<1x1x8x32xbf16> to vector<8x32xbf16>
    %c1_10 = arith.constant 1 : index
    %c0_11 = arith.constant 0 : index
    %c0_12 = arith.constant 0 : index
    %9 = vector.load %arg5[%c1_10, %c0_11, %c0_12] : memref<9x32x32xbf16, #tpu.memory_space<vmem>>, vector<1x32x32xbf16>
    %10 = vector.shape_cast %9 : vector<1x32x32xbf16> to vector<32x32xbf16>
    %cst_13 = arith.constant dense<0.000000e+00> : vector<8x32xf32>
    %11 = tpu.matmul %8, %10, %cst_13 {dimension_numbers = #tpu.dot_dimension_numbers<[1], [0], [0], [1], [0, 0, 1, 1], [], []>} : vector<8x32xbf16>, vector<32x32xbf16>, vector<8x32xf32> -> vector<8x32xf32>
    %12 = arith.addf %6, %11 : vector<8x32xf32>
    %c0_14 = arith.constant 0 : index
    %c0_15 = arith.constant 0 : index
    %c1_16 = arith.constant 1 : index
    %c0_17 = arith.constant 0 : index
    %13 = vector.load %arg2[%c0_14, %c0_15, %c1_16, %c0_17] : memref<1x2x9x32xbf16, #tpu.memory_space<vmem>>, vector<1x1x8x32xbf16>
    %14 = vector.shape_cast %13 : vector<1x1x8x32xbf16> to vector<8x32xbf16>
    %c2 = arith.constant 2 : index
    %c0_18 = arith.constant 0 : index
    %c0_19 = arith.constant 0 : index
    %15 = vector.load %arg5[%c2, %c0_18, %c0_19] : memref<9x32x32xbf16, #tpu.memory_space<vmem>>, vector<1x32x32xbf16>
    %16 = vector.shape_cast %15 : vector<1x32x32xbf16> to vector<32x32xbf16>
    %cst_20 = arith.constant dense<0.000000e+00> : vector<8x32xf32>
    %17 = tpu.matmul %14, %16, %cst_20 {dimension_numbers = #tpu.dot_dimension_numbers<[1], [0], [0], [1], [0, 0, 1, 1], [], []>} : vector<8x32xbf16>, vector<32x32xbf16>, vector<8x32xf32> -> vector<8x32xf32>
    %18 = arith.addf %12, %17 : vector<8x32xf32>
    %c0_21 = arith.constant 0 : index
    %c0_22 = arith.constant 0 : index
    %c0_23 = arith.constant 0 : index
    %c0_24 = arith.constant 0 : index
    %19 = vector.load %arg3[%c0_21, %c0_22, %c0_23, %c0_24] : memref<1x2x9x32xbf16, #tpu.memory_space<vmem>>, vector<1x1x8x32xbf16>
    %20 = vector.shape_cast %19 : vector<1x1x8x32xbf16> to vector<8x32xbf16>
    %c3 = arith.constant 3 : index
    %c0_25 = arith.constant 0 : index
    %c0_26 = arith.constant 0 : index
    %21 = vector.load %arg5[%c3, %c0_25, %c0_26] : memref<9x32x32xbf16, #tpu.memory_space<vmem>>, vector<1x32x32xbf16>
    %22 = vector.shape_cast %21 : vector<1x32x32xbf16> to vector<32x32xbf16>
    %cst_27 = arith.constant dense<0.000000e+00> : vector<8x32xf32>
    %23 = tpu.matmul %20, %22, %cst_27 {dimension_numbers = #tpu.dot_dimension_numbers<[1], [0], [0], [1], [0, 0, 1, 1], [], []>} : vector<8x32xbf16>, vector<32x32xbf16>, vector<8x32xf32> -> vector<8x32xf32>
    %24 = arith.addf %18, %23 : vector<8x32xf32>
    %c0_28 = arith.constant 0 : index
    %c1_29 = arith.constant 1 : index
    %c0_30 = arith.constant 0 : index
    %c0_31 = arith.constant 0 : index
    %25 = vector.load %arg3[%c0_28, %c1_29, %c0_30, %c0_31] : memref<1x2x9x32xbf16, #tpu.memory_space<vmem>>, vector<1x1x8x32xbf16>
    %26 = vector.shape_cast %25 : vector<1x1x8x32xbf16> to vector<8x32xbf16>
    %c4 = arith.constant 4 : index
    %c0_32 = arith.constant 0 : index
    %c0_33 = arith.constant 0 : index
    %27 = vector.load %arg5[%c4, %c0_32, %c0_33] : memref<9x32x32xbf16, #tpu.memory_space<vmem>>, vector<1x32x32xbf16>
    %28 = vector.shape_cast %27 : vector<1x32x32xbf16> to vector<32x32xbf16>
    %cst_34 = arith.constant dense<0.000000e+00> : vector<8x32xf32>
    %29 = tpu.matmul %26, %28, %cst_34 {dimension_numbers = #tpu.dot_dimension_numbers<[1], [0], [0], [1], [0, 0, 1, 1], [], []>} : vector<8x32xbf16>, vector<32x32xbf16>, vector<8x32xf32> -> vector<8x32xf32>
    %30 = arith.addf %24, %29 : vector<8x32xf32>
    %c0_35 = arith.constant 0 : index
    %c0_36 = arith.constant 0 : index
    %c1_37 = arith.constant 1 : index
    %c0_38 = arith.constant 0 : index
    %31 = vector.load %arg3[%c0_35, %c0_36, %c1_37, %c0_38] : memref<1x2x9x32xbf16, #tpu.memory_space<vmem>>, vector<1x1x8x32xbf16>
    %32 = vector.shape_cast %31 : vector<1x1x8x32xbf16> to vector<8x32xbf16>
    %c5 = arith.constant 5 : index
    %c0_39 = arith.constant 0 : index
    %c0_40 = arith.constant 0 : index
    %33 = vector.load %arg5[%c5, %c0_39, %c0_40] : memref<9x32x32xbf16, #tpu.memory_space<vmem>>, vector<1x32x32xbf16>
    %34 = vector.shape_cast %33 : vector<1x32x32xbf16> to vector<32x32xbf16>
    %cst_41 = arith.constant dense<0.000000e+00> : vector<8x32xf32>
    %35 = tpu.matmul %32, %34, %cst_41 {dimension_numbers = #tpu.dot_dimension_numbers<[1], [0], [0], [1], [0, 0, 1, 1], [], []>} : vector<8x32xbf16>, vector<32x32xbf16>, vector<8x32xf32> -> vector<8x32xf32>
    %36 = arith.addf %30, %35 : vector<8x32xf32>
    %c0_42 = arith.constant 0 : index
    %c0_43 = arith.constant 0 : index
    %c0_44 = arith.constant 0 : index
    %c0_45 = arith.constant 0 : index
    %37 = vector.load %arg4[%c0_42, %c0_43, %c0_44, %c0_45] : memref<1x2x9x32xbf16, #tpu.memory_space<vmem>>, vector<1x1x8x32xbf16>
    %38 = vector.shape_cast %37 : vector<1x1x8x32xbf16> to vector<8x32xbf16>
    %c6 = arith.constant 6 : index
    %c0_46 = arith.constant 0 : index
    %c0_47 = arith.constant 0 : index
    %39 = vector.load %arg5[%c6, %c0_46, %c0_47] : memref<9x32x32xbf16, #tpu.memory_space<vmem>>, vector<1x32x32xbf16>
    %40 = vector.shape_cast %39 : vector<1x32x32xbf16> to vector<32x32xbf16>
    %cst_48 = arith.constant dense<0.000000e+00> : vector<8x32xf32>
    %41 = tpu.matmul %38, %40, %cst_48 {dimension_numbers = #tpu.dot_dimension_numbers<[1], [0], [0], [1], [0, 0, 1, 1], [], []>} : vector<8x32xbf16>, vector<32x32xbf16>, vector<8x32xf32> -> vector<8x32xf32>
    %42 = arith.addf %36, %41 : vector<8x32xf32>
    %c0_49 = arith.constant 0 : index
    %c1_50 = arith.constant 1 : index
    %c0_51 = arith.constant 0 : index
    %c0_52 = arith.constant 0 : index
    %43 = vector.load %arg4[%c0_49, %c1_50, %c0_51, %c0_52] : memref<1x2x9x32xbf16, #tpu.memory_space<vmem>>, vector<1x1x8x32xbf16>
    %44 = vector.shape_cast %43 : vector<1x1x8x32xbf16> to vector<8x32xbf16>
    %c7 = arith.constant 7 : index
    %c0_53 = arith.constant 0 : index
    %c0_54 = arith.constant 0 : index
    %45 = vector.load %arg5[%c7, %c0_53, %c0_54] : memref<9x32x32xbf16, #tpu.memory_space<vmem>>, vector<1x32x32xbf16>
    %46 = vector.shape_cast %45 : vector<1x32x32xbf16> to vector<32x32xbf16>
    %cst_55 = arith.constant dense<0.000000e+00> : vector<8x32xf32>
    %47 = tpu.matmul %44, %46, %cst_55 {dimension_numbers = #tpu.dot_dimension_numbers<[1], [0], [0], [1], [0, 0, 1, 1], [], []>} : vector<8x32xbf16>, vector<32x32xbf16>, vector<8x32xf32> -> vector<8x32xf32>
    %48 = arith.addf %42, %47 : vector<8x32xf32>
    %c0_56 = arith.constant 0 : index
    %c0_57 = arith.constant 0 : index
    %c1_58 = arith.constant 1 : index
    %c0_59 = arith.constant 0 : index
    %49 = vector.load %arg4[%c0_56, %c0_57, %c1_58, %c0_59] : memref<1x2x9x32xbf16, #tpu.memory_space<vmem>>, vector<1x1x8x32xbf16>
    %50 = vector.shape_cast %49 : vector<1x1x8x32xbf16> to vector<8x32xbf16>
    %c8 = arith.constant 8 : index
    %c0_60 = arith.constant 0 : index
    %c0_61 = arith.constant 0 : index
    %51 = vector.load %arg5[%c8, %c0_60, %c0_61] : memref<9x32x32xbf16, #tpu.memory_space<vmem>>, vector<1x32x32xbf16>
    %52 = vector.shape_cast %51 : vector<1x32x32xbf16> to vector<32x32xbf16>
    %cst_62 = arith.constant dense<0.000000e+00> : vector<8x32xf32>
    %53 = tpu.matmul %50, %52, %cst_62 {dimension_numbers = #tpu.dot_dimension_numbers<[1], [0], [0], [1], [0, 0, 1, 1], [], []>} : vector<8x32xbf16>, vector<32x32xbf16>, vector<8x32xf32> -> vector<8x32xf32>
    %54 = arith.addf %48, %53 : vector<8x32xf32>
    %c0_63 = arith.constant 0 : index
    %c0_64 = arith.constant 0 : index
    %55 = vector.load %arg6[%c0_63, %c0_64] : memref<1x32xf32, #tpu.memory_space<vmem>>, vector<1x32xf32>
    %56 = vector.broadcast %55 : vector<1x32xf32> to vector<8x32xf32>
    %57 = arith.addf %54, %56 : vector<8x32xf32>
    %cst_65 = arith.constant 0.000000e+00 : f32
    %58 = vector.broadcast %cst_65 : f32 to vector<8x32xf32>
    %59 = arith.maximumf %57, %58 : vector<8x32xf32>
    %c0_i32 = arith.constant 0 : i32
    %60 = arith.cmpi eq, %arg1, %c0_i32 : i32
    %61 = arith.extui %60 : i1 to i32
    %c0_i32_66 = arith.constant 0 : i32
    %62 = arith.cmpi ne, %61, %c0_i32_66 : i32
    scf.if %62 {
      %cst_73 = arith.constant 0.000000e+00 : f32
      %72 = vector.broadcast %cst_73 : f32 to vector<1x32xf32>
      %c0_74 = arith.constant 0 : index
      %c0_75 = arith.constant 0 : index
      %73 = vector.load %arg8[%c0_74, %c0_75] : memref<1x32xf32, #tpu.memory_space<vmem>>, vector<1x32xf32>
      tpu.vector_store %arg8[%c0_74, %c0_75], %72 {strides = array<i32>} : memref<1x32xf32, #tpu.memory_space<vmem>>, vector<1x32xf32>,
    } else {
    }
    %c0_67 = arith.constant 0 : index
    %c0_68 = arith.constant 0 : index
    %63 = vector.load %arg8[%c0_67, %c0_68] : memref<1x32xf32, #tpu.memory_space<vmem>>, vector<1x32xf32>
    %64 = vector.extract_strided_slice %59 {offsets = [0, 0], sizes = [2, 32], strides = [1, 1]} : vector<8x32xf32> to vector<2x32xf32>
    %cst_69 = arith.constant dense<0.000000e+00> : vector<32xf32>
    %65 = vector.multi_reduction <add>, %64, %cst_69 [0] : vector<2x32xf32> to vector<32xf32>
    %66 = vector.shape_cast %65 : vector<32xf32> to vector<1x32xf32>
    %67 = arith.addf %63, %66 : vector<1x32xf32>
    %c0_70 = arith.constant 0 : index
    %c0_71 = arith.constant 0 : index
    %68 = vector.load %arg8[%c0_70, %c0_71] : memref<1x32xf32, #tpu.memory_space<vmem>>, vector<1x32xf32>
    tpu.vector_store %arg8[%c0_70, %c0_71], %67 {strides = array<i32>} : memref<1x32xf32, #tpu.memory_space<vmem>>, vector<1x32xf32>,
    %c1_i32 = arith.constant 1 : i32
    %69 = arith.cmpi eq, %arg1, %c1_i32 : i32
    %70 = arith.extui %69 : i1 to i32
    %c0_i32_72 = arith.constant 0 : i32
    %71 = arith.cmpi ne, %70, %c0_i32_72 : i32
    scf.if %71 {
      %c0_73 = arith.constant 0 : index
      %c0_74 = arith.constant 0 : index
      %72 = vector.load %arg8[%c0_73, %c0_74] : memref<1x32xf32, #tpu.memory_space<vmem>>, vector<1x32xf32>
      %cst_75 = arith.constant 2.500000e-01 : f32
      %73 = vector.broadcast %cst_75 : f32 to vector<1x32xf32>
      %74 = arith.mulf %72, %73 : vector<1x32xf32>
      %c0_76 = arith.constant 0 : index
      %c0_77 = arith.constant 0 : index
      %c0_78 = arith.constant 0 : index
      %75 = vector.load %arg7[%c0_76, %c0_77, %c0_78] : memref<1x1x32xf32, #tpu.memory_space<vmem>>, vector<1x1x32xf32>
      %76 = vector.shape_cast %75 : vector<1x1x32xf32> to vector<1x32xf32>
      %77 = vector.shape_cast %74 : vector<1x32xf32> to vector<1x1x32xf32>
      tpu.vector_store %arg7[%c0_76, %c0_77, %c0_78], %77 {strides = array<i32>} : memref<1x1x32xf32, #tpu.memory_space<vmem>>, vector<1x1x32xf32>,
    } else {
    }
    return
  }
  func.func @transform_0(%arg0: i32, %arg1: i32) -> (i32, i32, i32, i32) {
    %c5_i32 = arith.constant 5 : i32
    %0 = arith.muli %arg0, %c5_i32 : i32
    %c2_i32 = arith.constant 2 : i32
    %1 = arith.muli %c2_i32, %arg1 : i32
    %2 = arith.addi %0, %1 : i32
    %c0_i32 = arith.constant 0 : i32
    %3 = arith.addi %2, %c0_i32 : i32
    %c0_i32_0 = arith.constant 0 : i32
    %c0_i32_1 = arith.constant 0 : i32
    %c0_i32_2 = arith.constant 0 : i32
    %c0_i32_3 = arith.constant 0 : i32
    return %3, %c0_i32_0, %c0_i32_1, %c0_i32_2 : i32, i32, i32, i32
  }
  func.func @transform_1(%arg0: i32, %arg1: i32) -> (i32, i32, i32, i32) {
    %c5_i32 = arith.constant 5 : i32
    %0 = arith.muli %arg0, %c5_i32 : i32
    %c2_i32 = arith.constant 2 : i32
    %1 = arith.muli %c2_i32, %arg1 : i32
    %2 = arith.addi %0, %1 : i32
    %c1_i32 = arith.constant 1 : i32
    %3 = arith.addi %2, %c1_i32 : i32
    %c0_i32 = arith.constant 0 : i32
    %c0_i32_0 = arith.constant 0 : i32
    %c0_i32_1 = arith.constant 0 : i32
    %c0_i32_2 = arith.constant 0 : i32
    return %3, %c0_i32, %c0_i32_0, %c0_i32_1 : i32, i32, i32, i32
  }
  func.func @transform_2(%arg0: i32, %arg1: i32) -> (i32, i32, i32, i32) {
    %c5_i32 = arith.constant 5 : i32
    %0 = arith.muli %arg0, %c5_i32 : i32
    %c2_i32 = arith.constant 2 : i32
    %1 = arith.muli %c2_i32, %arg1 : i32
    %2 = arith.addi %0, %1 : i32
    %c2_i32_0 = arith.constant 2 : i32
    %3 = arith.addi %2, %c2_i32_0 : i32
    %c0_i32 = arith.constant 0 : i32
    %c0_i32_1 = arith.constant 0 : i32
    %c0_i32_2 = arith.constant 0 : i32
    %c0_i32_3 = arith.constant 0 : i32
    return %3, %c0_i32, %c0_i32_1, %c0_i32_2 : i32, i32, i32, i32
  }
  func.func @transform_3(%arg0: i32, %arg1: i32) -> (i32, i32, i32) {
    %c0_i32 = arith.constant 0 : i32
    %c0_i32_0 = arith.constant 0 : i32
    %c0_i32_1 = arith.constant 0 : i32
    %c0_i32_2 = arith.constant 0 : i32
    return %c0_i32, %c0_i32_0, %c0_i32_1 : i32, i32, i32
  }
  func.func @transform_4(%arg0: i32, %arg1: i32) -> (i32, i32) {
    %c0_i32 = arith.constant 0 : i32
    %c0_i32_0 = arith.constant 0 : i32
    %c0_i32_1 = arith.constant 0 : i32
    return %c0_i32, %c0_i32_0 : i32, i32
  }
  func.func @transform_5(%arg0: i32, %arg1: i32) -> (i32, i32, i32) {
    %c0_i32 = arith.constant 0 : i32
    %c0_i32_0 = arith.constant 0 : i32
    %c0_i32_1 = arith.constant 0 : i32
    return %arg0, %c0_i32, %c0_i32_0 : i32, i32, i32
  }
}

</mosaic_0001>

<bundles_post_ra>
// kernel: style_encoder_norelu.4
= control target key start
LH: loop header
LB: loop body
LE: loop exit
PB: predicated region body
PF: predicated region fallthrough
CT: control target
= control target key end

     0   :  { %s1407_s18 = smov 0   ;;  %s1409_s19 = smov 0   ;;  %s1584_s0 = inlined_call_operand.vmem [shape: bf16[16,2,9,32], index: 0, kind: input, shape index: {}, may-alias: {0,1,2}]   ;;  %s1585_s1 = inlined_call_operand.vmem [shape: bf16[16,2,9,32], index: 1, kind: input, shape index: {}, may-alias: {0,1,2}]   ;;  %s1586_s2 = inlined_call_operand.vmem [shape: bf16[16,2,9,32], index: 2, kind: input, shape index: {}, may-alias: {0,1,2}]   ;;  %s1587_s3 = inlined_call_operand.vmem [shape: bf16[9,32,32], index: 3, kind: input, shape index: {}]   ;;  %s1588_s4 = inlined_call_operand.vmem [shape: f32[1,32], index: 4, kind: input, shape index: {}]   ;;  %s1589_s5 = inlined_call_operand.vmem [shape: bf16[6,3,32], index: 5, kind: output, shape index: {}]  }
   0x1   :  { %s1411_s20 = smov 0   ;;  %s1413_s21 = smov 0  }
   0x2   :  { %s1415_s22 = smov 0  }
   0x3 LB: > { %s24_s23 = sadd.s32 1, %s1365_s20  ;;  %s27_s24 = sadd.s32 1, %s1369_s21  ;;  %s1373_s22 = sphi %s1415_s22, %s15_s22   ;;  %s1369_s21 = sphi %s1413_s21, %s1593_s21   ;;  %s1365_s20 = sphi %s1411_s20, %s1592_s20   ;;  %s1361_s19 = sphi %s1409_s19, %s1591_s19   ;;  %s1357_s18 = sphi %s1407_s18, %s1590_s18  }
   0x4   : > { %p25_p0 = scmp.ge.s32.totalorder %s24_s23, 3  ;;  %p1088_p1 = scmp.ge.s32.totalorder %s1373_s22, 1 }
   0x5   : > { %p267_p2 = scmp.lt.s32.totalorder %s1373_s22, 7 }
   0x6   : > { %s1595_s23 = smov (%p25_p0, %s24_s23), 0  ;;  %s1597_s24 = smov (!%p25_p0, %s27_s24), %s1369_s21 }
   0x7   : > { %p268_p3 = pnand %p1088_p1, %p267_p2  ;;  %p29_p4 = scmp.ge.s32.totalorder %s1597_s24, 2 }
   0x8   : > { %v1314_v0 = vld [vmem:[%s1587_s3 + $0x10] sm:$0xff] (!%p268_p3)   ;;  %v1375_v1 = vmov (!%p268_p3), 0.0   ;;  %v1315_v2 = vld [vmem:[%s1587_s3] sm:$0xff] (!%p268_p3)   ;;  %v1316_v3 = vld [vmem:[%s1587_s3 + $0x18] sm:$0xff] (!%p268_p3)   ;;  %vm1376_vm0 = vmmov (!%p268_p3), 0   ;;  %s1089_s6 = sshll.u32 (!%p268_p3), %s1361_s19, 3 }
   0x9   : > { %s1599_s24 = smov (%p29_p4, %s1597_s24), 0  ;;  %271 = sbr.rel (%p268_p3) target bundleno = 275 (0x113), region = 40 }
   0xa   : > { %1200 = vmatprep.subr.bf16.mxu0 (!%p268_p3), %v1375_v1  ;;  %1208 = vmatprep.subr.bf16.mxu1 (!%p268_p3), %v1375_v1  ;;  %v1317_v4 = vld [vmem:[%s1587_s3 + $0x8] sm:$0xff] (!%p268_p3)   ;;  %s1090_s9 = sshll.u32 (!%p268_p3), %s1357_s18, 1  ;;  %vm387_vm1 = vcmask (!%p268_p3), 261120   ;;  %v1319_v5 = vld [vmem:[%s1587_s3 + $0x20] sm:$0xff] (!%p268_p3)   ;;  %v1320_v6 = vld [vmem:[%s1587_s3 + $0x30] sm:$0xff] (!%p268_p3)   ;;  %vm971_vm2 = vcmask (!%p268_p3), 254976  }
   0xb   : > { %1201 = vmatpush3.bf16.msra.mxu0 (!%p268_p3), %v1314_v0  ;;  %1204 = vmatprep.mubr.msk.bf16.mxu0 (!%p268_p3), %vm1376_vm0, %v1375_v1  ;;  %s1461_s10 = sadd.s32 (!%p268_p3), %s1090_s9, %s1089_s6  ;;  %v1321_v10 = vld [vmem:[%s1587_s3 + $0x28] sm:$0xff] (!%p268_p3)   ;;  %v1322_v11 = vld [vmem:[%s1587_s3 + $0x38] sm:$0xff] (!%p268_p3)   ;;  %v1323_v15 = vld [vmem:[%s1587_s3 + $0x40] sm:$0xff] (!%p268_p3)   ;;  %vm972_vm3 = vsmask.f32 (!%p268_p3), 1280 }
   0xc   : > { %1209 = vmatpush3.bf16.msra.mxu1 (!%p268_p3), %v1315_v2  ;;  %1202 = vmatprep.subr.bf16.mxu0 (!%p268_p3), %v1375_v1  ;;  %p320_p5 = scmp.lt.s32.totalorder (!%p268_p3), %s1461_s10, 15  ;;  %s331_s11 = sadd.s32 (!%p268_p3), 1, %s1461_s10  ;;  %v1325_v16 = vld [vmem:[%s1587_s3 + $0x50] sm:$0xff] (!%p268_p3)   ;;  %v1326_v21 = vld [vmem:[%s1587_s3 + $0x48] sm:$0xff] (!%p268_p3)   ;;  %v1327_v24 = vld [vmem:[%s1587_s3 + $0x58] sm:$0xff] (!%p268_p3)  }
   0xd   : > { %1210 = vmatprep.subr.bf16.mxu1 (!%p268_p3), %v1375_v1  ;;  %1212 = vmatprep.mubr.msk.bf16.mxu1 (!%p268_p3), %vm1376_vm0, %v1375_v1  ;;  %p332_p6 = scmp.lt.s32.totalorder (!%p268_p3), %s331_s11, 15  ;;  %s344_s28 = sadd.s32 (!%p268_p3), 2, %s1461_s10  ;;  %v1328_v26 = vld [vmem:[%s1587_s3 + $0x60] sm:$0xff] (!%p268_p3)   ;;  %v1329_v28 = vld [vmem:[%s1587_s3 + $0x70] sm:$0xff] (!%p268_p3)   ;;  %v1330_v30 = vld [vmem:[%s1587_s3 + $0x68] sm:$0xff] (!%p268_p3)  }
   0xe   : > { %p345_p7 = scmp.lt.s32.totalorder (!%p268_p3), %s344_s28, 15  ;;  %v1331_v31 = vld [vmem:[%s1587_s3 + $0x78] sm:$0xff] (!%p268_p3)   ;;  %v1333_v34 = vld [vmem:[%s1587_s3 + $0x80] sm:$0xff] (!%p268_p3)   ;;  %v1334_v38 = vld [vmem:[%s1587_s3 + $0x88] sm:$0xff] (!%p268_p3)  }
   0xf   : > { %1203 = vmatpush3.bf16.msra.mxu0 (!%p268_p3), %v1316_v3  ;;  %vm973_vm4 = vmand (!%p268_p3), %vm971_vm2, %vm972_vm3 }
  0x10   : > { %1211 = vmatpush3.bf16.msra.mxu1 %v1317_v4  ;;  %s321_s12 = scalar_select %p320_p5, %s1461_s10, 15  ;;  %1216 = vmatprep.subr.bf16.mxu0 %v1375_v1 }
  0x11   : > { %1224 = vmatprep.subr.bf16.mxu1 %v1375_v1  ;;  %s1601_s11 = smov (!%p332_p6, %s331_s11), 15  ;;  %s1603_s28 = smov (!%p345_p7, %s344_s28), 15 }
  0x12   : > { %s1170_s13 = sshll.u32 %s321_s12, 4  ;;  %s1171_s8 = sshll.u32 %s1601_s11, 4 }
  0x13   : > { %s324_s25 = scalar_lea.vmem %s1584_s0, %s1170_s13  ;;  %s336_s13 = scalar_lea.vmem %s1585_s1, %s1171_s8 }
  0x14   : > { %v1102_v7 = vld [vmem:[%s324_s25 + $0x8] sm:$0xf]  ;;  %v1318_v8 = vld [vmem:[%s324_s25] sm:$0x1f]   ;;  %s1172_s26 = sshll.u32 %s1603_s28, 4 }
  0x15   : > { %1205 = vmatmul.mubr.msk.bf16.vlgmr.msra.gmra.mrb[0].mxu0 %vm387_vm1, %v1102_v7  ;;  %v363_v9 = vld [vmem:[%s324_s25] sm:$0xf]  ;;  %v499_v12 = vshrl.u32 %v1318_v8, 16  ;;  %v501_v13 = vshll.u32 %v1318_v8, 16  ;;  %s349_s6 = scalar_lea.vmem %s1586_s2, %s1172_s26  ;;  %v1128_v25 = vld [vmem:[%s336_s13 + $0x8] sm:$0xf] }
  0x16   : > { %1213 = vmatmul.mubr.msk.bf16.vlgmr.msra.gmra.mrb[0].mxu1 %vm387_vm1, %v363_v9  ;;  %1217 = vmatpush3.bf16.msra.mxu0 %v1319_v5  ;;  %v561_v17 = vld [vmem:[%s336_s13] sm:$0xf]  ;;  %v1151_v35 = vld [vmem:[%s349_s6 + $0x8] sm:$0xf]  ;;  %s354_s26 = smul.u32 3, %s1361_s19 }
  0x17   : > { %1225 = vmatpush3.bf16.msra.mxu1 %v1320_v6  ;;  %1218 = vmatprep.subr.bf16.mxu0 %v1375_v1  ;;  %v503_v14 = vrot.slane %v501_v13, 1  ;;  %v1324_v18 = vld [vmem:[%s336_s13] sm:$0x1f]  }
  0x18   : > { %1226 = vmatprep.subr.bf16.mxu1 %v1375_v1  ;;  %1220 = vmatprep.mubr.msk.bf16.mxu0 %vm1376_vm0, %v1375_v1  ;;  %v701_v20 = vshll.u32 %v1324_v18, 16  ;;  %v699_v22 = vshrl.u32 %v1324_v18, 16  ;;  %v1332_v29 = vld [vmem:[%s349_s6] sm:$0x1f]   ;;  %s355_s27 = sadd.s32 %s1357_s18, %s354_s26 }
  0x19   : > { %1228 = vmatprep.mubr.msk.bf16.mxu1 %vm1376_vm0, %v1375_v1  ;;  %v504_v19 = vor.u32 %v503_v14, %v499_v12  ;;  %v901_v32 = vshll.u32 %v1332_v29, 16  ;;  %v761_v33 = vld [vmem:[%s349_s6] sm:$0xf]  ;;  %v899_v36 = vshrl.u32 %v1332_v29, 16  ;;  %p356_p8 = scmp.lt.s32.totalorder %s355_s27, 5 }
  0x1a   : > { %1219 = vmatpush3.bf16.msra.mxu0 %v1321_v10  ;;  %v703_v23 = vrot.slane %v701_v20, 1 }
  0x1b   : > { %1227 = vmatpush3.bf16.msra.mxu1 %v1322_v11  ;;  %1232 = vmatprep.subr.bf16.mxu0 %v1375_v1  ;;  %v903_v37 = vrot.slane %v901_v32, 1  ;;  %s1605_s27 = smov (!%p356_p8, %s355_s27), 5 }
  0x1c   : > { %1240 = vmatprep.subr.bf16.mxu1 %v1375_v1  ;;  %v704_v27 = vor.u32 %v703_v23, %v699_v22  ;;  %s1101_s19 = sshll.u32 %s1605_s27, 1 }
  0x1d   : > { %1221 = vmatmul.mubr.msk.bf16.vlgmr.msra.gmra.mrb[4].mxu0 %vm387_vm1, %v504_v19  ;;  %v904_v39 = vor.u32 %v903_v37, %v899_v36  ;;  %s359_s6 = scalar_lea.vmem %s1589_s5, %s1101_s19 }
  0x1e   : > { %1233 = vmatpush3.bf16.msra.mxu0 %v1323_v15  ;;  %1229 = vmatmul.mubr.msk.bf16.vlgmr.msra.gmra.mrb[4].mxu1 %vm387_vm1, %v561_v17  ;;  %v974_v23 = vld [vmem:[%s359_s6] sm:$0x3] }
  0x1f   : > { %1241 = vmatpush3.bf16.msra.mxu1 %v1325_v16  ;;  %1234 = vmatprep.subr.bf16.mxu0 %v1375_v1  ;;  %v1167_v16 = vld [vmem:[%s1588_s4] ss:$0 sm:$0xff] }
  0x20   : > { %1242 = vmatprep.subr.bf16.mxu1 %v1375_v1  ;;  %1236 = vmatprep.mubr.msk.bf16.mxu0 %vm1376_vm0, %v1375_v1 }
  0x21   : > { %1244 = vmatprep.mubr.msk.bf16.mxu1 %vm1376_vm0, %v1375_v1 }
  0x22   : > { %1235 = vmatpush3.bf16.msra.mxu0 %v1326_v21 }
  0x23   : > { %1243 = vmatpush3.bf16.msra.mxu1 %v1327_v24  ;;  %1248 = vmatprep.subr.bf16.mxu0 %v1375_v1 }
  0x24   : > { %1256 = vmatprep.subr.bf16.mxu1 %v1375_v1 }
  0x25   : > { %1237 = vmatmul.mubr.msk.bf16.vlgmr.msra.gmra.mrb[8].mxu0 %vm387_vm1, %v1128_v25 }
  0x26   : > { %1249 = vmatpush3.bf16.msra.mxu0 %v1328_v26  ;;  %1245 = vmatmul.mubr.msk.bf16.vlgmr.msra.gmra.mrb[8].mxu1 %vm387_vm1, %v704_v27 }
  0x27   : > { %1257 = vmatpush3.bf16.msra.mxu1 %v1329_v28  ;;  %1250 = vmatprep.subr.bf16.mxu0 %v1375_v1 }
  0x28   : > { %1258 = vmatprep.subr.bf16.mxu1 %v1375_v1  ;;  %1252 = vmatprep.mubr.msk.bf16.mxu0 %vm1376_vm0, %v1375_v1 }
  0x29   : > { %1260 = vmatprep.mubr.msk.bf16.mxu1 %vm1376_vm0, %v1375_v1 }
  0x2a   : > { %1251 = vmatpush3.bf16.msra.mxu0 %v1330_v30 }
  0x2b   : > { %1259 = vmatpush3.bf16.msra.mxu1 %v1331_v31  ;;  %1264 = vmatprep.subr.bf16.mxu0 %v1375_v1 }
  0x2d   : > { %1253 = vmatmul.mubr.msk.bf16.vlgmr.msra.gmra.mrb[12].mxu0 %vm387_vm1, %v761_v33 }
  0x2e   : > { %1265 = vmatpush3.bf16.msra.mxu0 %v1333_v34  ;;  %1261 = vmatmul.mubr.msk.bf16.vlgmr.msra.gmra.mrb[12].mxu1 %vm387_vm1, %v1151_v35 }
  0x2f   : > { %1266 = vmatprep.subr.bf16.mxu0 %v1375_v1  ;;  %1268 = vmatprep.mubr.msk.bf16.mxu0 %vm1376_vm0, %v1375_v1 }
  0x32   : > { %1267 = vmatpush3.bf16.msra.mxu0 %v1334_v38 }
  0x35   : > { %1269 = vmatmul.mubr.msk.bf16.vlgmr.msra.gmra.mrb[16].mxu0 %vm387_vm1, %v904_v39 }
  0xe8   : > { %v425_v40 = vpop.f32.mrb[0].mxu0 }
  0xe9   : > { %v1206_v41 = vpop.f32.mrb[1].mxu0  ;;  %v480_v42 = vpop.f32.mrb[0].mxu1 }
  0xea   : > { %v481_v43 = vadd.f32 %v480_v42, %v425_v40  ;;  %v428_v44 = vpop.f32.mrb[2].mxu0  ;;  %v1214_v45 = vpop.f32.mrb[1].mxu1 }
  0xeb   : > { %v1207_v46 = vpop.f32.mrb[3].mxu0  ;;  %v483_v47 = vpop.f32.mrb[2].mxu1 }
  0xec   : > { %v1215_v48 = vpop.f32.mrb[3].mxu1 }
  0xf0   : > { %v554_v49 = vpop.f32.mrb[4].mxu0 }
  0xf1   : > { %v560_v50 = vadd.f32 %v554_v49, %v481_v43  ;;  %v1222_v51 = vpop.f32.mrb[5].mxu0  ;;  %v616_v52 = vpop.f32.mrb[4].mxu1 }
  0xf2   : > { %v557_v53 = vpop.f32.mrb[6].mxu0  ;;  %v1230_v54 = vpop.f32.mrb[5].mxu1 }
  0xf3   : > { %v622_v55 = vadd.f32 %v616_v52, %v560_v50  ;;  %v1223_v56 = vpop.f32.mrb[7].mxu0  ;;  %v619_v57 = vpop.f32.mrb[6].mxu1 }
  0xf4   : > { %v1231_v58 = vpop.f32.mrb[7].mxu1 }
  0xf8   : > { %v679_v59 = vpop.f32.mrb[8].mxu0 }
  0xf9   : > { %v685_v60 = vadd.f32 %v679_v59, %v622_v55  ;;  %v1238_v61 = vpop.f32.mrb[9].mxu0  ;;  %v754_v62 = vpop.f32.mrb[8].mxu1 }
  0xfa   : > { %v682_v63 = vpop.f32.mrb[10].mxu0  ;;  %v1246_v0 = vpop.f32.mrb[9].mxu1 }
  0xfb   : > { %v760_v1 = vadd.f32 %v754_v62, %v685_v60  ;;  %v1239_v2 = vpop.f32.mrb[11].mxu0  ;;  %v757_v3 = vpop.f32.mrb[10].mxu1 }
  0xfc   : > { %v1247_v4 = vpop.f32.mrb[11].mxu1 }
 0x100   : > { %v816_v5 = vpop.f32.mrb[12].mxu0 }
 0x101   : > { %v822_v6 = vadd.f32 %v816_v5, %v760_v1  ;;  %v1254_v7 = vpop.f32.mrb[13].mxu0  ;;  %v879_v8 = vpop.f32.mrb[12].mxu1 }
 0x102   : > { %v819_v9 = vpop.f32.mrb[14].mxu0  ;;  %v1262_v10 = vpop.f32.mrb[13].mxu1 }
 0x103   : > { %v885_v11 = vadd.f32 %v879_v8, %v822_v6  ;;  %v1255_v12 = vpop.f32.mrb[15].mxu0  ;;  %v882_v13 = vpop.f32.mrb[14].mxu1 }
 0x104   : > { %v1263_v14 = vpop.f32.mrb[15].mxu1 }
 0x108   : > { %v954_v15 = vpop.f32.mrb[16].mxu0 }
 0x109   : > { %v960_v17 = vadd.f32 %v954_v15, %v885_v11  ;;  %v1270_v18 = vpop.f32.mrb[17].mxu0 }
 0x10a   : > { %v957_v19 = vpop.f32.mrb[18].mxu0 }
 0x10b   : > { %v968_v20 = vadd.f32 %v1167_v16, %v960_v17  ;;  %v1271_v21 = vpop.f32.mrb[19].mxu0 }
 0x10d   : > { %v969_v22 = vmax.f32 %v968_v20, 0.0 }
 0x10f   : > { %v970_v24 = vpack.c.bf16 %v969_v22, %v969_v22 }
 0x111   : > { %v975_v25 = vsel %vm973_vm4, %v970_v24, %v974_v23 }
 0x112   : > { %976 = vst [vmem:[%s359_s6] sm:$0x3] %v975_v25 }
 0x113 PF: > { %s15_s22 = sadd.s32 1, %s1373_s22   ;;  %s1590_s18 = smov %s1365_s20 }
 0x114   : > { %p12_p9 = scmp.ge.s32.totalorder %s15_s22, 8   ;;  %s1591_s19 = smov %s1369_s21 }
 0x115   : > { %s1592_s20 = smov %s1595_s23  ;;  %s1593_s21 = smov %s1599_s24 }
 0x116   :  { %14 = sbr.rel (!%p12_p9) target bundleno = 3 (0x3), region = 87 }

// kernel: style_encoder_norelu.3
= control target key start
LH: loop header
LB: loop body
LE: loop exit
PB: predicated region body
PF: predicated region fallthrough
CT: control target
= control target key end

     0   :  { %s4361_s30 = smov 0   ;;  %s4363_s10 = smov 0   ;;  %s4942_s0 = inlined_call_operand.vmem [shape: bf16[36,2,11,8], index: 0, kind: input, shape index: {}, may-alias: {0,1,2,3,4,5,6}]   ;;  %s4943_s1 = inlined_call_operand.vmem [shape: bf16[36,2,11,8], index: 1, kind: input, shape index: {}, may-alias: {0,1,2,3,4,5,6}]   ;;  %s4944_s2 = inlined_call_operand.vmem [shape: bf16[36,2,11,8], index: 2, kind: input, shape index: {}, may-alias: {0,1,2,3,4,5,6}]   ;;  %s4945_s3 = inlined_call_operand.vmem [shape: bf16[36,2,11,8], index: 3, kind: input, shape index: {}, may-alias: {0,1,2,3,4,5,6}]   ;;  %s4946_s4 = inlined_call_operand.vmem [shape: bf16[36,2,11,8], index: 4, kind: input, shape index: {}, may-alias: {0,1,2,3,4,5,6}]   ;;  %s4947_s5 = inlined_call_operand.vmem [shape: bf16[36,2,11,8], index: 5, kind: input, shape index: {}, may-alias: {0,1,2,3,4,5,6}]   ;;  %s4948_s6 = inlined_call_operand.vmem [shape: bf16[36,2,11,8], index: 6, kind: input, shape index: {}, may-alias: {0,1,2,3,4,5,6}]   ;;  %s4949_s7 = inlined_call_operand.vmem [shape: bf16[49,8,32], index: 7, kind: input, shape index: {}]   ;;  %s4950_s8 = inlined_call_operand.vmem [shape: f32[1,32], index: 8, kind: input, shape index: {}]   ;;  %s4951_s9 = inlined_call_operand.vmem [shape: bf16[12,6,32], index: 9, kind: output, shape index: {}]  }
   0x1   :  { %s4365_s11 = smov 0   ;;  %s4367_s12 = smov 0  }
   0x2   :  { %s4369_s13 = smov 0  }
   0x3 LB: > { %s28_s14 = sadd.s32 1, %s4299_s11  ;;  %s31_s15 = sadd.s32 1, %s4303_s12  ;;  %s4307_s13 = sphi %s4369_s13, %s19_s13   ;;  %s4303_s12 = sphi %s4367_s12, %s4958_s12   ;;  %s4299_s11 = sphi %s4365_s11, %s4957_s11   ;;  %s4295_s10 = sphi %s4363_s10, %s4956_s10   ;;  %s4291_s30 = sphi %s4361_s30, %s4955_s30  }
   0x4   : > { %p29_p0 = scmp.ge.s32.totalorder %s28_s14, 6  ;;  %p3607_p1 = scmp.ge.s32.totalorder %s4307_s13, 1 }
   0x5   : > { %p471_p2 = scmp.lt.s32.totalorder %s4307_s13, 13 }
   0x6   : > { %s4960_s14 = smov (%p29_p0, %s28_s14), 0  ;;  %s4962_s15 = smov (!%p29_p0, %s31_s15), %s4303_s12 }
   0x7   : > { %p472_p3 = pnand %p3607_p1, %p471_p2  ;;  %p33_p4 = scmp.ge.s32.totalorder %s4962_s15, 2 }
   0x8   : > { %v3631_v0 = vld [vmem:[%s4949_s7 + $0x4] sm:$0xf] (!%p472_p3)  ;;  %vm673_vm0 = vcmask (!%p472_p3), 1043456   ;;  %v664_v1 = vld [vmem:[%s4949_s7] sm:$0xf] (!%p472_p3)  ;;  %v4309_v2 = vmov (!%p472_p3), 0.0  }
   0x9   : > { %s4964_s15 = smov (%p33_p4, %s4962_s15), 0  ;;  %475 = sbr.rel (%p472_p3) target bundleno = 435 (0x1b3), region = 56 }
   0xa   : > { %3898 = vmatprep.subr.bf16.mxu0 (!%p472_p3), %v4309_v2  ;;  %v675_v3 = vsel (!%p472_p3), %vm673_vm0, %v3631_v0, 0  ;;  %3904 = vmatprep.subr.bf16.mxu1 (!%p472_p3), %v4309_v2  ;;  %v721_v4 = vsel (!%p472_p3), %vm673_vm0, %v664_v1, 0  ;;  %s565_s20 = smul.u32 (!%p472_p3), 18, %s4295_s10  ;;  %s3608_s21 = sshll.u32 (!%p472_p3), %s4291_s30, 1  ;;  %vm4310_vm1 = vmmov (!%p472_p3), 0   ;;  %vm669_vm2 = vcmask (!%p472_p3), 64512  }
   0xb   : > { %3899 = vmatpush3.bf16.msra.mxu0 (!%p472_p3), %v675_v3  ;;  %3905 = vmatpush3.bf16.msra.mxu1 (!%p472_p3), %v721_v4  ;;  %v3634_v5 = vld [vmem:[%s4949_s7 + $0x8] sm:$0xf] (!%p472_p3)  ;;  %v3639_v6 = vld [vmem:[%s4949_s7 + $0xc] sm:$0xf] (!%p472_p3)  ;;  %v3642_v21 = vld [vmem:[%s4949_s7 + $0x10] sm:$0xf] (!%p472_p3) }
   0xc   : > { %3900 = vmatprep.mubr.msk.bf16.mxu0 (!%p472_p3), %vm4310_vm1, %v4309_v2  ;;  %3906 = vmatprep.mubr.msk.bf16.mxu1 (!%p472_p3), %vm4310_vm1, %v4309_v2  ;;  %s4411_s22 = sadd.s32 (!%p472_p3), %s3608_s21, %s565_s20  ;;  %v783_v7 = vsel (!%p472_p3), %vm673_vm0, %v3634_v5, 0  ;;  %v846_v8 = vsel (!%p472_p3), %vm673_vm0, %v3639_v6, 0  ;;  %v3646_v22 = vld [vmem:[%s4949_s7 + $0x14] sm:$0xf] (!%p472_p3)  ;;  %v900_v29 = vsel (!%p472_p3), %vm673_vm0, %v3642_v21, 0  ;;  %vm3444_vm3 = vcmask (!%p472_p3), 256000  }
   0xd   : > { %3910 = vmatprep.subr.bf16.mxu0 (!%p472_p3), %v4309_v2  ;;  %p568_p5 = scmp.lt.s32.totalorder (!%p472_p3), %s4411_s22, 35  ;;  %3916 = vmatprep.subr.bf16.mxu1 (!%p472_p3), %v4309_v2  ;;  %s579_s23 = sadd.s32 (!%p472_p3), 1, %s4411_s22  ;;  %v954_v31 = vsel (!%p472_p3), %vm673_vm0, %v3646_v22, 0  ;;  %v3649_v35 = vld [vmem:[%s4949_s7 + $0x18] sm:$0xf] (!%p472_p3) }
   0xe   : > { %p4433_p6 = scmp.lt.s32.totalorder (!%p472_p3), %s579_s23, 35  ;;  %v3652_v36 = vld [vmem:[%s4949_s7 + $0x1c] sm:$0xf] (!%p472_p3)  ;;  %v1015_v43 = vsel (!%p472_p3), %vm673_vm0, %v3649_v35, 0  ;;  %v3655_v48 = vld [vmem:[%s4949_s7 + $0x20] sm:$0xf] (!%p472_p3) }
   0xf   : > { %v1065_v44 = vsel (!%p472_p3), %vm673_vm0, %v3652_v36, 0  ;;  %v3657_v49 = vld [vmem:[%s4949_s7 + $0x24] sm:$0xf] (!%p472_p3)  ;;  %v1116_v55 = vsel (!%p472_p3), %vm673_vm0, %v3655_v48, 0  ;;  %v3662_v60 = vld [vmem:[%s4949_s7 + $0x28] sm:$0xf] (!%p472_p3) }
  0x10   : > { %s569_s24 = scalar_select %p568_p5, %s4411_s22, 35  ;;  %v1179_v56 = vsel %vm673_vm0, %v3657_v49, 0  ;;  %v3665_v61 = vld [vmem:[%s4949_s7 + $0x2c] sm:$0xf]  ;;  %v1242_v4 = vsel %vm673_vm0, %v3662_v60, 0 }
  0x11   : > { %s4966_s23 = smov (!%p4433_p6, %s579_s23), 35  ;;  %v1296_v5 = vsel %vm673_vm0, %v3665_v61, 0  ;;  %v3675_v22 = vld [vmem:[%s4949_s7 + $0x38] sm:$0xf]  ;;  %v3685_v35 = vld [vmem:[%s4949_s7 + $0x44] sm:$0xf] }
  0x12   : > { %s3793_s29 = sshll.u32 %s569_s24, 4  ;;  %s3794_s26 = sshll.u32 %s4966_s23, 4 }
  0x13   : > { %s4427_s18 = scalar_lea.vmem %s4942_s0, %s3793_s29  ;;  %s4474_s29 = scalar_lea.vmem %s4943_s1, %s3794_s26 }
  0x14   : > { %v3630_v9 = vld [vmem:[%s4427_s18 + $0x8] sm:$0xf]  ;;  %v663_v10 = vld [vmem:[%s4427_s18] sm:$0xf]  ;;  %v764_v12 = vld [vmem:[%s4427_s18 + $0x4] sm:$0x1] }
  0x15   : > { %v763_v11 = vld [vmem:[%s4427_s18] sm:$0xf]  ;;  %3901 = vmatmul.mubr.msk.bf16.vlgmr.msra.gmra.mrb[0].mxu0 %vm669_vm2, %v3630_v9  ;;  %3907 = vmatmul.mubr.msk.bf16.vlgmr.msra.gmra.mrb[0].mxu1 %vm669_vm2, %v663_v10  ;;  %v3637_v13 = vld [vmem:[%s4427_s18 + $0x8] sm:$0xf]  ;;  %v3638_v14 = vld [vmem:[%s4427_s18 + $0xc] sm:$0x1] }
  0x16   : > { %3911 = vmatpush3.bf16.msra.mxu0 %v783_v7  ;;  %3917 = vmatpush3.bf16.msra.mxu1 %v846_v8  ;;  %v3635_v15 = vcombine.low %v763_v11, %v764_v12  ;;  %v3640_v16 = vcombine.low %v3637_v13, %v3638_v14  ;;  %v889_v25 = vld [vmem:[%s4427_s18] sm:$0xe]  ;;  %v997_v26 = vld [vmem:[%s4427_s18 + $0x4] sm:$0x3]  ;;  %v3645_v27 = vld [vmem:[%s4427_s18 + $0x8] sm:$0xe] }
  0x17   : > { %3912 = vmatprep.mubr.msk.bf16.mxu0 %vm4310_vm1, %v4309_v2  ;;  %3922 = vmatprep.subr.bf16.mxu0 %v4309_v2  ;;  %v3643_v32 = vcombine.low %v889_v25, %v764_v12  ;;  %v3650_v33 = vcombine.low %v889_v25, %v997_v26  ;;  %v3647_v34 = vcombine.low %v3645_v27, %v3638_v14  ;;  %v1159_v41 = vld [vmem:[%s4474_s29] sm:$0xf]  ;;  %v1160_v42 = vld [vmem:[%s4474_s29 + $0x4] sm:$0x1]  ;;  %v3660_v53 = vld [vmem:[%s4474_s29 + $0x8] sm:$0xf] }
  0x18   : > { %v773_v17 = vshrl.u32 %v3635_v15, 16  ;;  %v775_v18 = vshll.u32 %v3635_v15, 16  ;;  %3918 = vmatprep.mubr.msk.bf16.mxu1 %vm4310_vm1, %v4309_v2  ;;  %v836_v19 = vshrl.u32 %v3640_v16, 16  ;;  %v838_v20 = vshll.u32 %v3640_v16, 16  ;;  %3928 = vmatprep.subr.bf16.mxu1 %v4309_v2  ;;  %v1058_v52 = vld [vmem:[%s4474_s29] sm:$0xf] }
  0x19   : > { %v895_v37 = vrot.slane %v3643_v32, 1  ;;  %v949_v38 = vrot.slane %v3647_v34, 1  ;;  %v1004_v39 = vshrl.u32 %v3650_v33, 16  ;;  %v1007_v40 = vshll.u32 %v3650_v33, 16  ;;  %v3661_v54 = vld [vmem:[%s4474_s29 + $0xc] sm:$0x1] }
  0x1a   : > { %v777_v23 = vrot.slane %v775_v18, 1  ;;  %v840_v24 = vrot.slane %v838_v20, 1  ;;  %v3658_v47 = vcombine.low %v1159_v41, %v1160_v42  ;;  %v3663_v59 = vcombine.low %v3660_v53, %v3661_v54  ;;  %s592_s23 = sadd.s32 2, %s4411_s22  ;;  %v3654_v0 = vld [vmem:[%s4474_s29 + $0x8] sm:$0xf]  ;;  %s605_s19 = sadd.s32 3, %s4411_s22 }
  0x1b   : > { %v1006_v45 = vrot.slane %v1004_v39, 1  ;;  %v1009_v46 = vrot.slane %v1007_v40, 2  ;;  %v1285_v1 = vld [vmem:[%s4474_s29] sm:$0xe]  ;;  %v1393_v3 = vld [vmem:[%s4474_s29 + $0x4] sm:$0x3] }
  0x1c   : > { %v778_v28 = vor.u32 %v777_v23, %v773_v17  ;;  %v841_v30 = vor.u32 %v840_v24, %v836_v19  ;;  %v1171_v51 = vshll.u32 %v3658_v47, 16  ;;  %v1169_v57 = vshrl.u32 %v3658_v47, 16  ;;  %p593_p7 = scmp.lt.s32.totalorder %s592_s23, 35  ;;  %v3669_v10 = vld [vmem:[%s4949_s7 + $0x30] sm:$0xf]  ;;  %p4589_p8 = scmp.lt.s32.totalorder %s605_s19, 35 }
  0x1d   : > { %v1010_v50 = vor.u32 %v1009_v46, %v1006_v45  ;;  %v1234_v63 = vshll.u32 %v3663_v59, 16  ;;  %v1232_v6 = vshrl.u32 %v3663_v59, 16  ;;  %v3666_v8 = vcombine.low %v1285_v1, %v1160_v42  ;;  %v3672_v11 = vld [vmem:[%s4949_s7 + $0x34] sm:$0xf]  ;;  %v3668_v16 = vld [vmem:[%s4474_s29 + $0x8] sm:$0xe] }
  0x1e   : > { %3913 = vmatmul.mubr.msk.bf16.vlgmr.msra.gmra.mrb[4].mxu0 %vm669_vm2, %v778_v28  ;;  %3919 = vmatmul.mubr.msk.bf16.vlgmr.msra.gmra.mrb[4].mxu1 %vm669_vm2, %v841_v30  ;;  %v1173_v58 = vrot.slane %v1171_v51, 1  ;;  %v3673_v9 = vcombine.low %v1285_v1, %v1393_v3  ;;  %s4968_s23 = smov (!%p593_p7, %s592_s23), 35  ;;  %v1350_v17 = vsel %vm673_vm0, %v3669_v10, 0  ;;  %v1411_v18 = vsel %vm673_vm0, %v3672_v11, 0  ;;  %v3678_v23 = vld [vmem:[%s4949_s7 + $0x3c] sm:$0xf] }
  0x1f   : > { %3923 = vmatpush3.bf16.msra.mxu0 %v900_v29  ;;  %3929 = vmatpush3.bf16.msra.mxu1 %v954_v31  ;;  %v1236_v7 = vrot.slane %v1234_v63, 1  ;;  %v1291_v13 = vrot.slane %v3666_v8, 1  ;;  %s3795_s20 = sshll.u32 %s4968_s23, 4  ;;  %v3670_v19 = vcombine.low %v3668_v16, %v3661_v54  ;;  %v1461_v30 = vsel %vm673_vm0, %v3675_v22, 0  ;;  %v3680_v34 = vld [vmem:[%s4949_s7 + $0x40] sm:$0xf] }
  0x20   : > { %3924 = vmatprep.mubr.msk.bf16.mxu0 %vm4310_vm1, %v4309_v2  ;;  %3934 = vmatprep.subr.bf16.mxu0 %v4309_v2  ;;  %v1174_v62 = vor.u32 %v1173_v58, %v1169_v57  ;;  %v1400_v14 = vshrl.u32 %v3673_v9, 16  ;;  %v1403_v15 = vshll.u32 %v3673_v9, 16  ;;  %s4550_s25 = scalar_lea.vmem %s4944_s2, %s3795_s20  ;;  %v1512_v31 = vsel %vm673_vm0, %v3678_v23, 0  ;;  %v3688_v46 = vld [vmem:[%s4949_s7 + $0x48] sm:$0xf]  ;;  %s4970_s19 = smov (!%p4589_p8, %s605_s19), 35 }
  0x21   : > { %3930 = vmatprep.mubr.msk.bf16.mxu1 %vm4310_vm1, %v4309_v2  ;;  %3940 = vmatprep.subr.bf16.mxu1 %v4309_v2  ;;  %v1237_v12 = vor.u32 %v1236_v7, %v1232_v6  ;;  %v1345_v24 = vrot.slane %v3670_v19, 1  ;;  %v1555_v26 = vld [vmem:[%s4550_s25] sm:$0xf]  ;;  %v1556_v27 = vld [vmem:[%s4550_s25 + $0x4] sm:$0x1]  ;;  %v1575_v40 = vsel %vm673_vm0, %v3680_v34, 0 }
  0x22   : > { %v1402_v20 = vrot.slane %v1400_v14, 1  ;;  %v1405_v21 = vrot.slane %v1403_v15, 2  ;;  %v3683_v28 = vld [vmem:[%s4550_s25 + $0x8] sm:$0xf]  ;;  %v3684_v29 = vld [vmem:[%s4550_s25 + $0xc] sm:$0x1]  ;;  %v3681_v32 = vcombine.low %v1555_v26, %v1556_v27 }
  0x23   : > { %v3686_v33 = vcombine.low %v3683_v28, %v3684_v29  ;;  %v3677_v39 = vld [vmem:[%s4550_s25 + $0x8] sm:$0xf]  ;;  %v1638_v41 = vsel %vm673_vm0, %v3685_v35, 0  ;;  %v3692_v47 = vld [vmem:[%s4949_s7 + $0x4c] sm:$0xf]  ;;  %v1692_v53 = vsel %vm673_vm0, %v3688_v46, 0 }
  0x24   : > { %v1406_v25 = vor.u32 %v1405_v21, %v1402_v20  ;;  %v1567_v36 = vshll.u32 %v3681_v32, 16  ;;  %v1565_v42 = vshrl.u32 %v3681_v32, 16  ;;  %v1789_v51 = vld [vmem:[%s4550_s25 + $0x4] sm:$0x3]  ;;  %v1746_v54 = vsel %vm673_vm0, %v3692_v47, 0  ;;  %s3796_s27 = sshll.u32 %s4970_s19, 4 }
  0x25   : > { %s4622_s23 = scalar_lea.vmem %s4945_s3, %s3796_s27  ;;  %v3695_v58 = vld [vmem:[%s4949_s7 + $0x50] sm:$0xf]  ;;  %v3698_v59 = vld [vmem:[%s4949_s7 + $0x54] sm:$0xf]  ;;  %v3701_v8 = vld [vmem:[%s4949_s7 + $0x58] sm:$0xf] }
  0x26   : > { %3925 = vmatmul.mubr.msk.bf16.vlgmr.msra.gmra.mrb[8].mxu0 %vm669_vm2, %v895_v37  ;;  %3931 = vmatmul.mubr.msk.bf16.vlgmr.msra.gmra.mrb[8].mxu1 %vm669_vm2, %v949_v38  ;;  %v1630_v37 = vshll.u32 %v3686_v33, 16  ;;  %v1454_v38 = vld [vmem:[%s4550_s25] sm:$0xf]  ;;  %v1952_v1 = vld [vmem:[%s4622_s23 + $0x4] sm:$0x1]  ;;  %v1807_v3 = vsel %vm673_vm0, %v3695_v58, 0 }
  0x27   : > { %3935 = vmatpush3.bf16.msra.mxu0 %v1015_v43  ;;  %3941 = vmatpush3.bf16.msra.mxu1 %v1065_v44  ;;  %v1569_v43 = vrot.slane %v1567_v36, 1  ;;  %v1628_v44 = vshrl.u32 %v3686_v33, 16  ;;  %v3703_v9 = vld [vmem:[%s4949_s7 + $0x5c] sm:$0xf]  ;;  %v3707_v14 = vld [vmem:[%s4622_s23 + $0xc] sm:$0x1] }
  0x28   : > { %3936 = vmatprep.mubr.msk.bf16.mxu0 %vm4310_vm1, %v4309_v2  ;;  %3946 = vmatprep.subr.bf16.mxu0 %v4309_v2  ;;  %v1632_v45 = vrot.slane %v1630_v37, 1  ;;  %v1908_v15 = vsel %vm673_vm0, %v3701_v8, 0  ;;  %v1971_v16 = vsel %vm673_vm0, %v3703_v9, 0  ;;  %v3708_v20 = vld [vmem:[%s4949_s7 + $0x60] sm:$0xf]  ;;  %s618_s16 = sadd.s32 4, %s4411_s22 }
  0x29   : > { %3942 = vmatprep.mubr.msk.bf16.mxu1 %vm4310_vm1, %v4309_v2  ;;  %3952 = vmatprep.subr.bf16.mxu1 %v4309_v2  ;;  %v1570_v48 = vor.u32 %v1569_v43, %v1565_v42  ;;  %v3711_v21 = vld [vmem:[%s4949_s7 + $0x64] sm:$0xf]  ;;  %p619_p9 = scmp.lt.s32.totalorder %s618_s16, 35  ;;  %v3715_v33 = vld [vmem:[%s4949_s7 + $0x68] sm:$0xf]  ;;  %s631_s20 = sadd.s32 5, %s4411_s22 }
  0x2a   : > { %v1633_v49 = vor.u32 %v1632_v45, %v1628_v44  ;;  %v2185_v26 = vld [vmem:[%s4622_s23 + $0x4] sm:$0x3]  ;;  %v2088_v28 = vsel %vm673_vm0, %v3711_v21, 0  ;;  %v3718_v34 = vld [vmem:[%s4949_s7 + $0x6c] sm:$0xf]  ;;  %p4737_p10 = scmp.lt.s32.totalorder %s631_s20, 35 }
  0x2b   : > { %s4972_s16 = smov (!%p619_p9, %s618_s16), 35  ;;  %v3721_v45 = vld [vmem:[%s4949_s7 + $0x70] sm:$0xf]  ;;  %v3724_v46 = vld [vmem:[%s4949_s7 + $0x74] sm:$0xf]  ;;  %s644_s17 = sadd.s32 6, %s4411_s22 }
  0x2c   : > { %s3797_s21 = sshll.u32 %s4972_s16, 4  ;;  %v3731_v58 = vld [vmem:[%s4949_s7 + $0x7c] sm:$0xf]  ;;  %s4974_s20 = smov (!%p4737_p10, %s631_s20), 35 }
  0x2d   : > { %s4698_s26 = scalar_lea.vmem %s4946_s4, %s3797_s21  ;;  %p645_p11 = scmp.lt.s32.totalorder %s644_s17, 35 }
  0x2e   : > { %3937 = vmatmul.mubr.msk.bf16.vlgmr.msra.gmra.mrb[12].mxu0 %vm669_vm2, %v1010_v50  ;;  %3943 = vmatmul.mubr.msk.bf16.vlgmr.msra.gmra.mrb[12].mxu1 %vm669_vm2, %v1058_v52  ;;  %v1681_v50 = vld [vmem:[%s4550_s25] sm:$0xe]  ;;  %v3691_v52 = vld [vmem:[%s4550_s25 + $0x8] sm:$0xe]  ;;  %s3798_s25 = sshll.u32 %s4974_s20, 4 }
  0x2f   : > { %3947 = vmatpush3.bf16.msra.mxu0 %v1116_v55  ;;  %3953 = vmatpush3.bf16.msra.mxu1 %v1179_v56  ;;  %v3689_v55 = vcombine.low %v1681_v50, %v1556_v27  ;;  %v3696_v56 = vcombine.low %v1681_v50, %v1789_v51  ;;  %v3693_v57 = vcombine.low %v3691_v52, %v3684_v29  ;;  %v2034_v27 = vsel %vm673_vm0, %v3708_v20, 0  ;;  %v2348_v50 = vld [vmem:[%s4698_s26 + $0x4] sm:$0x1]  ;;  %v3729_v51 = vld [vmem:[%s4698_s26 + $0x8] sm:$0xf]  ;;  %s4770_s16 = scalar_lea.vmem %s4947_s5, %s3798_s25  ;;  %s4976_s17 = smov (!%p645_p11, %s644_s17), 35 }
  0x30   : > { %3948 = vmatprep.mubr.msk.bf16.mxu0 %vm4310_vm1, %v4309_v2  ;;  %3958 = vmatprep.subr.bf16.mxu0 %v4309_v2  ;;  %v3730_v52 = vld [vmem:[%s4698_s26 + $0xc] sm:$0x1]  ;;  %s3799_s21 = sshll.u32 %s4976_s17, 4 }
  0x31   : > { %3954 = vmatprep.mubr.msk.bf16.mxu1 %vm4310_vm1, %v4309_v2  ;;  %3964 = vmatprep.subr.bf16.mxu1 %v4309_v2  ;;  %v1687_v60 = vrot.slane %v3689_v55, 1  ;;  %v1741_v61 = vrot.slane %v3693_v57, 1  ;;  %v1799_v63 = vshll.u32 %v3696_v56, 16  ;;  %v3726_v57 = vld [vmem:[%s4949_s7 + $0x78] sm:$0xf] }
  0x33   : > { %v1801_v6 = vrot.slane %v1799_v63, 2  ;;  %v2367_v63 = vsel %vm673_vm0, %v3726_v57, 0  ;;  %v3764_v57 = vld [vmem:[%s4949_s7 + $0xa4] sm:$0xf] }
  0x36   : > { %3949 = vmatmul.mubr.msk.bf16.vlgmr.msra.gmra.mrb[16].mxu0 %vm669_vm2, %v3654_v0  ;;  %3955 = vmatmul.mubr.msk.bf16.vlgmr.msra.gmra.mrb[16].mxu1 %vm669_vm2, %v1174_v62  ;;  %v1796_v62 = vshrl.u32 %v3696_v56, 16  ;;  %v1951_v0 = vld [vmem:[%s4622_s23] sm:$0xf]  ;;  %v3732_v56 = vcombine.low %v3729_v51, %v3730_v52 }
  0x37   : > { %3959 = vmatpush3.bf16.msra.mxu0 %v1242_v4  ;;  %3965 = vmatpush3.bf16.msra.mxu1 %v1296_v5  ;;  %v1857_v4 = vsel %vm673_vm0, %v3698_v59, 0  ;;  %v3704_v7 = vcombine.low %v1951_v0, %v1952_v1  ;;  %v2430_v0 = vsel %vm673_vm0, %v3731_v58, 0 }
  0x38   : > { %3960 = vmatprep.mubr.msk.bf16.mxu0 %vm4310_vm1, %v4309_v2  ;;  %3970 = vmatprep.subr.bf16.mxu0 %v4309_v2  ;;  %v1798_v5 = vrot.slane %v1796_v62, 1  ;;  %v3723_v62 = vld [vmem:[%s4698_s26 + $0x8] sm:$0xf] }
  0x39   : > { %3966 = vmatprep.mubr.msk.bf16.mxu1 %vm4310_vm1, %v4309_v2  ;;  %3976 = vmatprep.subr.bf16.mxu1 %v4309_v2  ;;  %v1963_v11 = vshll.u32 %v3704_v7, 16 }
  0x3a   : > { %v1802_v10 = vor.u32 %v1801_v6, %v1798_v5  ;;  %v3734_v6 = vld [vmem:[%s4949_s7 + $0x80] sm:$0xf] }
  0x3e   : > { %3961 = vmatmul.mubr.msk.bf16.vlgmr.msra.gmra.mrb[20].mxu0 %vm669_vm2, %v1237_v12  ;;  %3967 = vmatmul.mubr.msk.bf16.vlgmr.msra.gmra.mrb[20].mxu1 %vm669_vm2, %v1291_v13  ;;  %v1850_v12 = vld [vmem:[%s4622_s23] sm:$0xf]  ;;  %v3706_v13 = vld [vmem:[%s4622_s23 + $0x8] sm:$0xf] }
  0x3f   : > { %3971 = vmatpush3.bf16.msra.mxu0 %v1350_v17  ;;  %3977 = vmatpush3.bf16.msra.mxu1 %v1411_v18  ;;  %v1961_v17 = vshrl.u32 %v3704_v7, 16  ;;  %v1965_v18 = vrot.slane %v1963_v11, 1  ;;  %v3709_v19 = vcombine.low %v3706_v13, %v3707_v14  ;;  %v3738_v7 = vld [vmem:[%s4949_s7 + $0x84] sm:$0xf]  ;;  %v2484_v13 = vsel %vm673_vm0, %v3734_v6, 0 }
  0x40   : > { %3972 = vmatprep.mubr.msk.bf16.mxu0 %vm4310_vm1, %v4309_v2  ;;  %3982 = vmatprep.subr.bf16.mxu0 %v4309_v2  ;;  %v2581_v11 = vld [vmem:[%s4698_s26 + $0x4] sm:$0x3]  ;;  %v3770_v6 = vld [vmem:[%s4949_s7 + $0xac] sm:$0xf] }
  0x41   : > { %3978 = vmatprep.mubr.msk.bf16.mxu1 %vm4310_vm1, %v4309_v2  ;;  %3988 = vmatprep.subr.bf16.mxu1 %v4309_v2  ;;  %v1966_v22 = vor.u32 %v1965_v18, %v1961_v17  ;;  %v2026_v23 = vshll.u32 %v3709_v19, 16  ;;  %v2024_v29 = vshrl.u32 %v3709_v19, 16  ;;  %v3741_v18 = vld [vmem:[%s4949_s7 + $0x88] sm:$0xf]  ;;  %v3744_v19 = vld [vmem:[%s4949_s7 + $0x8c] sm:$0xf] }
  0x46   : > { %3973 = vmatmul.mubr.msk.bf16.vlgmr.msra.gmra.mrb[24].mxu0 %vm669_vm2, %v1345_v24  ;;  %3979 = vmatmul.mubr.msk.bf16.vlgmr.msra.gmra.mrb[24].mxu1 %vm669_vm2, %v1406_v25  ;;  %v3700_v24 = vld [vmem:[%s4622_s23 + $0x8] sm:$0xf]  ;;  %v2077_v25 = vld [vmem:[%s4622_s23] sm:$0xe] }
  0x47   : > { %3983 = vmatpush3.bf16.msra.mxu0 %v1461_v30  ;;  %3989 = vmatpush3.bf16.msra.mxu1 %v1512_v31  ;;  %v2028_v30 = vrot.slane %v2026_v23, 1  ;;  %v3712_v31 = vcombine.low %v2077_v25, %v1952_v1  ;;  %v3719_v32 = vcombine.low %v2077_v25, %v2185_v26  ;;  %v2744_v25 = vld [vmem:[%s4770_s16 + $0x4] sm:$0x1]  ;;  %v2599_v26 = vsel %vm673_vm0, %v3741_v18, 0  ;;  %v3777_v18 = vld [vmem:[%s4949_s7 + $0xb4] sm:$0xf] }
  0x48   : > { %3984 = vmatprep.mubr.msk.bf16.mxu0 %vm4310_vm1, %v4309_v2  ;;  %3994 = vmatprep.subr.bf16.mxu0 %v4309_v2 }
  0x49   : > { %3990 = vmatprep.mubr.msk.bf16.mxu1 %vm4310_vm1, %v4309_v2  ;;  %4000 = vmatprep.subr.bf16.mxu1 %v4309_v2  ;;  %v2029_v35 = vor.u32 %v2028_v30, %v2024_v29  ;;  %v2083_v36 = vrot.slane %v3712_v31, 1  ;;  %v2192_v37 = vshrl.u32 %v3719_v32, 16  ;;  %v3747_v31 = vld [vmem:[%s4949_s7 + $0x90] sm:$0xf] }
  0x4b   : > { %v2194_v43 = vrot.slane %v2192_v37, 1  ;;  %v3753_v37 = vld [vmem:[%s4770_s16 + $0xc] sm:$0x1] }
  0x4e   : > { %3985 = vmatmul.mubr.msk.bf16.vlgmr.msra.gmra.mrb[28].mxu0 %vm669_vm2, %v1454_v38  ;;  %3991 = vmatmul.mubr.msk.bf16.vlgmr.msra.gmra.mrb[28].mxu1 %vm669_vm2, %v3677_v39  ;;  %v2195_v38 = vshll.u32 %v3719_v32, 16  ;;  %v3714_v39 = vld [vmem:[%s4622_s23 + $0x8] sm:$0xe]  ;;  %v3749_v32 = vld [vmem:[%s4949_s7 + $0x94] sm:$0xf]  ;;  %s4846_s23 = scalar_lea.vmem %s4948_s6, %s3799_s21 }
  0x4f   : > { %3995 = vmatpush3.bf16.msra.mxu0 %v1575_v40  ;;  %4001 = vmatpush3.bf16.msra.mxu1 %v1638_v41  ;;  %v2142_v40 = vsel %vm673_vm0, %v3715_v33, 0  ;;  %v2203_v41 = vsel %vm673_vm0, %v3718_v34, 0  ;;  %v3716_v42 = vcombine.low %v3714_v39, %v3707_v14  ;;  %v2538_v14 = vsel %vm673_vm0, %v3738_v7, 0 }
  0x50   : > { %3996 = vmatprep.mubr.msk.bf16.mxu0 %vm4310_vm1, %v4309_v2  ;;  %4006 = vmatprep.subr.bf16.mxu0 %v4309_v2  ;;  %v2197_v44 = vrot.slane %v2195_v38, 2  ;;  %v2700_v38 = vsel %vm673_vm0, %v3747_v31, 0  ;;  %v2763_v39 = vsel %vm673_vm0, %v3749_v32, 0 }
  0x51   : > { %4002 = vmatprep.mubr.msk.bf16.mxu1 %vm4310_vm1, %v4309_v2  ;;  %4012 = vmatprep.subr.bf16.mxu1 %v4309_v2  ;;  %v2137_v47 = vrot.slane %v3716_v42, 1 }
  0x56   : > { %3997 = vmatmul.mubr.msk.bf16.vlgmr.msra.gmra.mrb[32].mxu0 %vm669_vm2, %v1570_v48  ;;  %4003 = vmatmul.mubr.msk.bf16.vlgmr.msra.gmra.mrb[32].mxu1 %vm669_vm2, %v1633_v49  ;;  %v2198_v48 = vor.u32 %v2197_v44, %v2194_v43  ;;  %v2347_v49 = vld [vmem:[%s4698_s26] sm:$0xf]  ;;  %v3754_v43 = vld [vmem:[%s4949_s7 + $0x98] sm:$0xf]  ;;  %v3757_v44 = vld [vmem:[%s4949_s7 + $0x9c] sm:$0xf] }
  0x57   : > { %4007 = vmatpush3.bf16.msra.mxu0 %v1692_v53  ;;  %4013 = vmatpush3.bf16.msra.mxu1 %v1746_v54  ;;  %v2253_v53 = vsel %vm673_vm0, %v3721_v45, 0  ;;  %v2304_v54 = vsel %vm673_vm0, %v3724_v46, 0  ;;  %v3727_v55 = vcombine.low %v2347_v49, %v2348_v50  ;;  %v2977_v49 = vld [vmem:[%s4770_s16 + $0x4] sm:$0x3]  ;;  %v2880_v51 = vsel %vm673_vm0, %v3757_v44, 0 }
  0x58   : > { %4008 = vmatprep.mubr.msk.bf16.mxu0 %vm4310_vm1, %v4309_v2  ;;  %4018 = vmatprep.subr.bf16.mxu0 %v4309_v2 }
  0x59   : > { %4014 = vmatprep.mubr.msk.bf16.mxu1 %vm4310_vm1, %v4309_v2  ;;  %4024 = vmatprep.subr.bf16.mxu1 %v4309_v2  ;;  %v2359_v59 = vshll.u32 %v3727_v55, 16  ;;  %v2357_v1 = vshrl.u32 %v3727_v55, 16 }
  0x5e   : > { %4009 = vmatmul.mubr.msk.bf16.vlgmr.msra.gmra.mrb[36].mxu0 %vm669_vm2, %v1687_v60  ;;  %4015 = vmatmul.mubr.msk.bf16.vlgmr.msra.gmra.mrb[36].mxu1 %vm669_vm2, %v1741_v61  ;;  %v2422_v60 = vshll.u32 %v3732_v56, 16  ;;  %v2246_v61 = vld [vmem:[%s4698_s26] sm:$0xf] }
  0x5f   : > { %4019 = vmatpush3.bf16.msra.mxu0 %v1807_v3  ;;  %4025 = vmatpush3.bf16.msra.mxu1 %v1857_v4  ;;  %v2361_v3 = vrot.slane %v2359_v59, 1  ;;  %v2420_v4 = vshrl.u32 %v3732_v56, 16  ;;  %v3761_v56 = vld [vmem:[%s4949_s7 + $0xa0] sm:$0xf] }
  0x60   : > { %4020 = vmatprep.mubr.msk.bf16.mxu0 %vm4310_vm1, %v4309_v2  ;;  %4030 = vmatprep.subr.bf16.mxu0 %v4309_v2  ;;  %v2424_v5 = vrot.slane %v2422_v60, 1 }
  0x61   : > { %4026 = vmatprep.mubr.msk.bf16.mxu1 %vm4310_vm1, %v4309_v2  ;;  %4036 = vmatprep.subr.bf16.mxu1 %v4309_v2  ;;  %v2362_v8 = vor.u32 %v2361_v3, %v2357_v1 }
  0x62   : > { %v2425_v9 = vor.u32 %v2424_v5, %v2420_v4  ;;  %v3767_v5 = vld [vmem:[%s4949_s7 + $0xa8] sm:$0xf] }
  0x66   : > { %4021 = vmatmul.mubr.msk.bf16.vlgmr.msra.gmra.mrb[40].mxu0 %vm669_vm2, %v1802_v10  ;;  %4027 = vmatmul.mubr.msk.bf16.vlgmr.msra.gmra.mrb[40].mxu1 %vm669_vm2, %v1850_v12  ;;  %v2473_v10 = vld [vmem:[%s4698_s26] sm:$0xe]  ;;  %v3737_v12 = vld [vmem:[%s4698_s26 + $0x8] sm:$0xe] }
  0x67   : > { %4031 = vmatpush3.bf16.msra.mxu0 %v1908_v15  ;;  %4037 = vmatpush3.bf16.msra.mxu1 %v1971_v16  ;;  %v3735_v15 = vcombine.low %v2473_v10, %v2348_v50  ;;  %v3742_v16 = vcombine.low %v2473_v10, %v2581_v11  ;;  %v3739_v17 = vcombine.low %v3737_v12, %v3730_v52  ;;  %v2826_v50 = vsel %vm673_vm0, %v3754_v43, 0  ;;  %v3140_v10 = vld [vmem:[%s4846_s23 + $0x4] sm:$0x1]  ;;  %v3775_v11 = vld [vmem:[%s4846_s23 + $0x8] sm:$0xf] }
  0x68   : > { %4032 = vmatprep.mubr.msk.bf16.mxu0 %vm4310_vm1, %v4309_v2  ;;  %4042 = vmatprep.subr.bf16.mxu0 %v4309_v2  ;;  %v3776_v12 = vld [vmem:[%s4846_s23 + $0xc] sm:$0x1] }
  0x69   : > { %4038 = vmatprep.mubr.msk.bf16.mxu1 %vm4310_vm1, %v4309_v2  ;;  %4048 = vmatprep.subr.bf16.mxu1 %v4309_v2  ;;  %v2479_v20 = vrot.slane %v3735_v15, 1  ;;  %v2533_v21 = vrot.slane %v3739_v17, 1  ;;  %v2591_v23 = vshll.u32 %v3742_v16, 16  ;;  %v3772_v17 = vld [vmem:[%s4949_s7 + $0xb0] sm:$0xf] }
  0x6b   : > { %v2593_v29 = vrot.slane %v2591_v23, 2  ;;  %v3159_v23 = vsel %vm673_vm0, %v3772_v17, 0 }
  0x6e   : > { %4033 = vmatmul.mubr.msk.bf16.vlgmr.msra.gmra.mrb[44].mxu0 %vm669_vm2, %v3700_v24  ;;  %4039 = vmatmul.mubr.msk.bf16.vlgmr.msra.gmra.mrb[44].mxu1 %vm669_vm2, %v1966_v22  ;;  %v2588_v22 = vshrl.u32 %v3742_v16, 16  ;;  %v2743_v24 = vld [vmem:[%s4770_s16] sm:$0xf]  ;;  %v3778_v16 = vcombine.low %v3775_v11, %v3776_v12 }
  0x6f   : > { %4043 = vmatpush3.bf16.msra.mxu0 %v2034_v27  ;;  %4049 = vmatpush3.bf16.msra.mxu1 %v2088_v28  ;;  %v2649_v27 = vsel %vm673_vm0, %v3744_v19, 0  ;;  %v3750_v30 = vcombine.low %v2743_v24, %v2744_v25  ;;  %v3222_v24 = vsel %vm673_vm0, %v3777_v18, 0 }
  0x70   : > { %4044 = vmatprep.mubr.msk.bf16.mxu0 %vm4310_vm1, %v4309_v2  ;;  %4054 = vmatprep.subr.bf16.mxu0 %v4309_v2  ;;  %v2590_v28 = vrot.slane %v2588_v22, 1  ;;  %v3769_v22 = vld [vmem:[%s4846_s23 + $0x8] sm:$0xf] }
  0x71   : > { %4050 = vmatprep.mubr.msk.bf16.mxu1 %vm4310_vm1, %v4309_v2  ;;  %4060 = vmatprep.subr.bf16.mxu1 %v4309_v2  ;;  %v2755_v34 = vshll.u32 %v3750_v30, 16 }
  0x72   : > { %v2594_v33 = vor.u32 %v2593_v29, %v2590_v28  ;;  %v3780_v29 = vld [vmem:[%s4949_s7 + $0xb8] sm:$0xf] }
  0x76   : > { %4045 = vmatmul.mubr.msk.bf16.vlgmr.msra.gmra.mrb[48].mxu0 %vm669_vm2, %v2029_v35  ;;  %4051 = vmatmul.mubr.msk.bf16.vlgmr.msra.gmra.mrb[48].mxu1 %vm669_vm2, %v2083_v36  ;;  %v2642_v35 = vld [vmem:[%s4770_s16] sm:$0xf]  ;;  %v3752_v36 = vld [vmem:[%s4770_s16 + $0x8] sm:$0xf] }
  0x77   : > { %4055 = vmatpush3.bf16.msra.mxu0 %v2142_v40  ;;  %4061 = vmatpush3.bf16.msra.mxu1 %v2203_v41  ;;  %v2753_v40 = vshrl.u32 %v3750_v30, 16  ;;  %v2757_v41 = vrot.slane %v2755_v34, 1  ;;  %v3755_v42 = vcombine.low %v3752_v36, %v3753_v37  ;;  %v3784_v30 = vld [vmem:[%s4949_s7 + $0xbc] sm:$0xf]  ;;  %v3373_v34 = vld [vmem:[%s4846_s23 + $0x4] sm:$0x3] }
  0x78   : > { %4056 = vmatprep.mubr.msk.bf16.mxu0 %vm4310_vm1, %v4309_v2  ;;  %4066 = vmatprep.subr.bf16.mxu0 %v4309_v2  ;;  %v3276_v36 = vsel %vm673_vm0, %v3780_v29, 0 }
  0x79   : > { %4062 = vmatprep.mubr.msk.bf16.mxu1 %vm4310_vm1, %v4309_v2  ;;  %4072 = vmatprep.subr.bf16.mxu1 %v4309_v2  ;;  %v2758_v45 = vor.u32 %v2757_v41, %v2753_v40  ;;  %v2818_v46 = vshll.u32 %v3755_v42, 16  ;;  %v2816_v52 = vshrl.u32 %v3755_v42, 16  ;;  %v3787_v41 = vld [vmem:[%s4949_s7 + $0xc0] sm:$0xf] }
  0x7e   : > { %4057 = vmatmul.mubr.msk.bf16.vlgmr.msra.gmra.mrb[52].mxu0 %vm669_vm2, %v2137_v47  ;;  %4063 = vmatmul.mubr.msk.bf16.vlgmr.msra.gmra.mrb[52].mxu1 %vm669_vm2, %v2198_v48  ;;  %v3746_v47 = vld [vmem:[%s4770_s16 + $0x8] sm:$0xf]  ;;  %v2869_v48 = vld [vmem:[%s4770_s16] sm:$0xe] }
  0x7f   : > { %4067 = vmatpush3.bf16.msra.mxu0 %v2253_v53  ;;  %4073 = vmatpush3.bf16.msra.mxu1 %v2304_v54  ;;  %v2820_v53 = vrot.slane %v2818_v46, 1  ;;  %v3758_v54 = vcombine.low %v2869_v48, %v2744_v25  ;;  %v3765_v55 = vcombine.low %v2869_v48, %v2977_v49  ;;  %v3391_v46 = vsel %vm673_vm0, %v3787_v41, 0 }
  0x80   : > { %4068 = vmatprep.mubr.msk.bf16.mxu0 %vm4310_vm1, %v4309_v2  ;;  %4078 = vmatprep.subr.bf16.mxu0 %v4309_v2 }
  0x81   : > { %4074 = vmatprep.mubr.msk.bf16.mxu1 %vm4310_vm1, %v4309_v2  ;;  %4084 = vmatprep.subr.bf16.mxu1 %v4309_v2  ;;  %v2821_v58 = vor.u32 %v2820_v53, %v2816_v52  ;;  %v2875_v59 = vrot.slane %v3758_v54, 1  ;;  %v2984_v60 = vshrl.u32 %v3765_v55, 16 }
  0x83   : > { %v2986_v3 = vrot.slane %v2984_v60, 1 }
  0x86   : > { %4069 = vmatmul.mubr.msk.bf16.vlgmr.msra.gmra.mrb[56].mxu0 %vm669_vm2, %v2246_v61  ;;  %4075 = vmatmul.mubr.msk.bf16.vlgmr.msra.gmra.mrb[56].mxu1 %vm669_vm2, %v3723_v62  ;;  %v2987_v61 = vshll.u32 %v3765_v55, 16  ;;  %v3760_v62 = vld [vmem:[%s4770_s16 + $0x8] sm:$0xe]  ;;  %s654_s16 = smul.u32 6, %s4295_s10 }
  0x87   : > { %4079 = vmatpush3.bf16.msra.mxu0 %v2367_v63  ;;  %4085 = vmatpush3.bf16.msra.mxu1 %v2430_v0  ;;  %v2934_v63 = vsel %vm673_vm0, %v3761_v56, 0  ;;  %v2995_v0 = vsel %vm673_vm0, %v3764_v57, 0  ;;  %v3762_v1 = vcombine.low %v3760_v62, %v3753_v37  ;;  %v3330_v37 = vsel %vm673_vm0, %v3784_v30, 0 }
  0x88   : > { %4080 = vmatprep.mubr.msk.bf16.mxu0 %vm4310_vm1, %v4309_v2  ;;  %4090 = vmatprep.subr.bf16.mxu0 %v4309_v2  ;;  %v2989_v4 = vrot.slane %v2987_v61, 2  ;;  %s655_s27 = sadd.s32 %s4291_s30, %s654_s16 }
  0x89   : > { %4086 = vmatprep.mubr.msk.bf16.mxu1 %vm4310_vm1, %v4309_v2  ;;  %4096 = vmatprep.subr.bf16.mxu1 %v4309_v2  ;;  %v2929_v7 = vrot.slane %v3762_v1, 1  ;;  %p656_p12 = scmp.lt.s32.totalorder %s655_s27, 11 }
  0x8b   : > { %s4978_s27 = smov (!%p656_p12, %s655_s27), 11 }
  0x8c   : > { %s3629_s10 = sshll.u32 %s4978_s27, 2 }
  0x8d   : > { %s659_s17 = scalar_lea.vmem %s4951_s9, %s3629_s10 }
  0x8e   : > { %4081 = vmatmul.mubr.msk.bf16.vlgmr.msra.gmra.mrb[60].mxu0 %vm669_vm2, %v2362_v8  ;;  %4087 = vmatmul.mubr.msk.bf16.vlgmr.msra.gmra.mrb[60].mxu1 %vm669_vm2, %v2425_v9  ;;  %v2990_v8 = vor.u32 %v2989_v4, %v2986_v3  ;;  %v3139_v9 = vld [vmem:[%s4846_s23] sm:$0xf] }
  0x8f   : > { %4091 = vmatpush3.bf16.msra.mxu0 %v2484_v13  ;;  %4097 = vmatpush3.bf16.msra.mxu1 %v2538_v14  ;;  %v3045_v13 = vsel %vm673_vm0, %v3767_v5, 0  ;;  %v3096_v14 = vsel %vm673_vm0, %v3770_v6, 0  ;;  %v3773_v15 = vcombine.low %v3139_v9, %v3140_v10 }
  0x90   : > { %4092 = vmatprep.mubr.msk.bf16.mxu0 %vm4310_vm1, %v4309_v2  ;;  %4102 = vmatprep.subr.bf16.mxu0 %v4309_v2 }
  0x91   : > { %4098 = vmatprep.mubr.msk.bf16.mxu1 %vm4310_vm1, %v4309_v2  ;;  %4108 = vmatprep.subr.bf16.mxu1 %v4309_v2  ;;  %v3151_v19 = vshll.u32 %v3773_v15, 16  ;;  %v3149_v25 = vshrl.u32 %v3773_v15, 16 }
  0x96   : > { %4093 = vmatmul.mubr.msk.bf16.vlgmr.msra.gmra.mrb[64].mxu0 %vm669_vm2, %v2479_v20  ;;  %4099 = vmatmul.mubr.msk.bf16.vlgmr.msra.gmra.mrb[64].mxu1 %vm669_vm2, %v2533_v21  ;;  %v3214_v20 = vshll.u32 %v3778_v16, 16  ;;  %v3038_v21 = vld [vmem:[%s4846_s23] sm:$0xf] }
  0x97   : > { %4103 = vmatpush3.bf16.msra.mxu0 %v2599_v26  ;;  %4109 = vmatpush3.bf16.msra.mxu1 %v2649_v27  ;;  %v3153_v26 = vrot.slane %v3151_v19, 1  ;;  %v3212_v27 = vshrl.u32 %v3778_v16, 16 }
  0x98   : > { %4104 = vmatprep.mubr.msk.bf16.mxu0 %vm4310_vm1, %v4309_v2  ;;  %4114 = vmatprep.subr.bf16.mxu0 %v4309_v2  ;;  %v3216_v28 = vrot.slane %v3214_v20, 1 }
  0x99   : > { %4110 = vmatprep.mubr.msk.bf16.mxu1 %vm4310_vm1, %v4309_v2  ;;  %4120 = vmatprep.subr.bf16.mxu1 %v4309_v2  ;;  %v3154_v31 = vor.u32 %v3153_v26, %v3149_v25 }
  0x9a   : > { %v3217_v32 = vor.u32 %v3216_v28, %v3212_v27 }
  0x9e   : > { %4105 = vmatmul.mubr.msk.bf16.vlgmr.msra.gmra.mrb[68].mxu0 %vm669_vm2, %v2594_v33  ;;  %4111 = vmatmul.mubr.msk.bf16.vlgmr.msra.gmra.mrb[68].mxu1 %vm669_vm2, %v2642_v35  ;;  %v3265_v33 = vld [vmem:[%s4846_s23] sm:$0xe]  ;;  %v3783_v35 = vld [vmem:[%s4846_s23 + $0x8] sm:$0xe] }
  0x9f   : > { %4115 = vmatpush3.bf16.msra.mxu0 %v2700_v38  ;;  %4121 = vmatpush3.bf16.msra.mxu1 %v2763_v39  ;;  %v3781_v38 = vcombine.low %v3265_v33, %v3140_v10  ;;  %v3788_v39 = vcombine.low %v3265_v33, %v3373_v34  ;;  %v3785_v40 = vcombine.low %v3783_v35, %v3776_v12 }
  0xa0   : > { %4116 = vmatprep.mubr.msk.bf16.mxu0 %vm4310_vm1, %v4309_v2  ;;  %4126 = vmatprep.subr.bf16.mxu0 %v4309_v2 }
  0xa1   : > { %4122 = vmatprep.mubr.msk.bf16.mxu1 %vm4310_vm1, %v4309_v2  ;;  %4132 = vmatprep.subr.bf16.mxu1 %v4309_v2  ;;  %v3271_v42 = vrot.slane %v3781_v38, 1  ;;  %v3325_v43 = vrot.slane %v3785_v40, 1  ;;  %v3380_v44 = vshrl.u32 %v3788_v39, 16 }
  0xa6   : > { %4117 = vmatmul.mubr.msk.bf16.vlgmr.msra.gmra.mrb[72].mxu0 %vm669_vm2, %v3746_v47  ;;  %4123 = vmatmul.mubr.msk.bf16.vlgmr.msra.gmra.mrb[72].mxu1 %vm669_vm2, %v2758_v45  ;;  %v3383_v45 = vshll.u32 %v3788_v39, 16  ;;  %v3382_v47 = vrot.slane %v3380_v44, 1 }
  0xa7   : > { %4127 = vmatpush3.bf16.msra.mxu0 %v2826_v50  ;;  %4133 = vmatpush3.bf16.msra.mxu1 %v2880_v51 }
  0xa8   : > { %4128 = vmatprep.mubr.msk.bf16.mxu0 %vm4310_vm1, %v4309_v2  ;;  %4138 = vmatprep.subr.bf16.mxu0 %v4309_v2  ;;  %v3385_v48 = vrot.slane %v3383_v45, 2 }
  0xa9   : > { %4134 = vmatprep.mubr.msk.bf16.mxu1 %vm4310_vm1, %v4309_v2  ;;  %4144 = vmatprep.subr.bf16.mxu1 %v4309_v2 }
  0xaa   : > { %v3386_v49 = vor.u32 %v3385_v48, %v3382_v47 }
  0xae   : > { %4129 = vmatmul.mubr.msk.bf16.vlgmr.msra.gmra.mrb[76].mxu0 %vm669_vm2, %v2821_v58  ;;  %4135 = vmatmul.mubr.msk.bf16.vlgmr.msra.gmra.mrb[76].mxu1 %vm669_vm2, %v2875_v59 }
  0xaf   : > { %4139 = vmatpush3.bf16.msra.mxu0 %v2934_v63  ;;  %4145 = vmatpush3.bf16.msra.mxu1 %v2995_v0 }
  0xb0   : > { %4140 = vmatprep.mubr.msk.bf16.mxu0 %vm4310_vm1, %v4309_v2  ;;  %4150 = vmatprep.subr.bf16.mxu0 %v4309_v2 }
  0xb1   : > { %4146 = vmatprep.mubr.msk.bf16.mxu1 %vm4310_vm1, %v4309_v2  ;;  %4156 = vmatprep.subr.bf16.mxu1 %v4309_v2 }
  0xb6   : > { %4141 = vmatmul.mubr.msk.bf16.vlgmr.msra.gmra.mrb[80].mxu0 %vm669_vm2, %v2929_v7  ;;  %4147 = vmatmul.mubr.msk.bf16.vlgmr.msra.gmra.mrb[80].mxu1 %vm669_vm2, %v2990_v8 }
  0xb7   : > { %4151 = vmatpush3.bf16.msra.mxu0 %v3045_v13  ;;  %4157 = vmatpush3.bf16.msra.mxu1 %v3096_v14 }
  0xb8   : > { %4152 = vmatprep.mubr.msk.bf16.mxu0 %vm4310_vm1, %v4309_v2  ;;  %4162 = vmatprep.subr.bf16.mxu0 %v4309_v2 }
  0xb9   : > { %4158 = vmatprep.mubr.msk.bf16.mxu1 %vm4310_vm1, %v4309_v2  ;;  %4168 = vmatprep.subr.bf16.mxu1 %v4309_v2 }
  0xbe   : > { %4153 = vmatmul.mubr.msk.bf16.vlgmr.msra.gmra.mrb[84].mxu0 %vm669_vm2, %v3038_v21  ;;  %4159 = vmatmul.mubr.msk.bf16.vlgmr.msra.gmra.mrb[84].mxu1 %vm669_vm2, %v3769_v22 }
  0xbf   : > { %4163 = vmatpush3.bf16.msra.mxu0 %v3159_v23  ;;  %4169 = vmatpush3.bf16.msra.mxu1 %v3222_v24 }
  0xc0   : > { %4164 = vmatprep.mubr.msk.bf16.mxu0 %vm4310_vm1, %v4309_v2  ;;  %4174 = vmatprep.subr.bf16.mxu0 %v4309_v2 }
  0xc1   : > { %4170 = vmatprep.mubr.msk.bf16.mxu1 %vm4310_vm1, %v4309_v2  ;;  %4180 = vmatprep.subr.bf16.mxu1 %v4309_v2 }
  0xc6   : > { %4165 = vmatmul.mubr.msk.bf16.vlgmr.msra.gmra.mrb[88].mxu0 %vm669_vm2, %v3154_v31  ;;  %4171 = vmatmul.mubr.msk.bf16.vlgmr.msra.gmra.mrb[88].mxu1 %vm669_vm2, %v3217_v32 }
  0xc7   : > { %4175 = vmatpush3.bf16.msra.mxu0 %v3276_v36  ;;  %4181 = vmatpush3.bf16.msra.mxu1 %v3330_v37 }
  0xc8   : > { %4176 = vmatprep.mubr.msk.bf16.mxu0 %vm4310_vm1, %v4309_v2  ;;  %4186 = vmatprep.subr.bf16.mxu0 %v4309_v2 }
  0xc9   : > { %4182 = vmatprep.mubr.msk.bf16.mxu1 %vm4310_vm1, %v4309_v2 }
  0xce   : > { %4177 = vmatmul.mubr.msk.bf16.vlgmr.msra.gmra.mrb[92].mxu0 %vm669_vm2, %v3271_v42  ;;  %4183 = vmatmul.mubr.msk.bf16.vlgmr.msra.gmra.mrb[92].mxu1 %vm669_vm2, %v3325_v43 }
  0xcf   : > { %4187 = vmatpush3.bf16.msra.mxu0 %v3391_v46  ;;  %4188 = vmatprep.mubr.msk.bf16.mxu0 %vm4310_vm1, %v4309_v2 }
  0xd6   : > { %4189 = vmatmul.mubr.msk.bf16.vlgmr.msra.gmra.mrb[96].mxu0 %vm669_vm2, %v3386_v49 }
  0xe8   : > { %v711_v50 = vpop.f32.mrb[0].mxu0  ;;  %v757_v51 = vpop.f32.mrb[0].mxu1 }
  0xe9   : > { %v758_v52 = vadd.f32 %v757_v51, %v711_v50  ;;  %v3902_v53 = vpop.f32.mrb[1].mxu0  ;;  %v3908_v54 = vpop.f32.mrb[1].mxu1 }
  0xea   : > { %v714_v55 = vpop.f32.mrb[2].mxu0  ;;  %v760_v56 = vpop.f32.mrb[2].mxu1 }
  0xeb   : > { %v3903_v57 = vpop.f32.mrb[3].mxu0  ;;  %v3909_v58 = vpop.f32.mrb[3].mxu1 }
  0xf1   : > { %v819_v59 = vpop.f32.mrb[4].mxu0  ;;  %v882_v60 = vpop.f32.mrb[4].mxu1 }
  0xf2   : > { %v825_v61 = vadd.f32 %v819_v59, %v758_v52  ;;  %v3914_v62 = vpop.f32.mrb[5].mxu0  ;;  %v3920_v63 = vpop.f32.mrb[5].mxu1 }
  0xf3   : > { %v822_v0 = vpop.f32.mrb[6].mxu0  ;;  %v885_v1 = vpop.f32.mrb[6].mxu1 }
  0xf4   : > { %v888_v2 = vadd.f32 %v882_v60, %v825_v61  ;;  %v3915_v3 = vpop.f32.mrb[7].mxu0  ;;  %v3921_v4 = vpop.f32.mrb[7].mxu1 }
  0xf9   : > { %v936_v5 = vpop.f32.mrb[8].mxu0  ;;  %v990_v6 = vpop.f32.mrb[8].mxu1 }
  0xfa   : > { %v942_v7 = vadd.f32 %v936_v5, %v888_v2  ;;  %v3926_v8 = vpop.f32.mrb[9].mxu0  ;;  %v3932_v9 = vpop.f32.mrb[9].mxu1 }
  0xfb   : > { %v939_v10 = vpop.f32.mrb[10].mxu0  ;;  %v993_v11 = vpop.f32.mrb[10].mxu1 }
  0xfc   : > { %v996_v12 = vadd.f32 %v990_v6, %v942_v7  ;;  %v3927_v13 = vpop.f32.mrb[11].mxu0  ;;  %v3933_v14 = vpop.f32.mrb[11].mxu1 }
 0x101   : > { %v1051_v15 = vpop.f32.mrb[12].mxu0  ;;  %v1101_v16 = vpop.f32.mrb[12].mxu1 }
 0x102   : > { %v1057_v17 = vadd.f32 %v1051_v15, %v996_v12  ;;  %v3938_v18 = vpop.f32.mrb[13].mxu0  ;;  %v3944_v19 = vpop.f32.mrb[13].mxu1 }
 0x103   : > { %v1054_v20 = vpop.f32.mrb[14].mxu0  ;;  %v1104_v21 = vpop.f32.mrb[14].mxu1 }
 0x104   : > { %v1107_v22 = vadd.f32 %v1101_v16, %v1057_v17  ;;  %v3939_v23 = vpop.f32.mrb[15].mxu0  ;;  %v3945_v24 = vpop.f32.mrb[15].mxu1 }
 0x109   : > { %v1152_v25 = vpop.f32.mrb[16].mxu0  ;;  %v1215_v26 = vpop.f32.mrb[16].mxu1 }
 0x10a   : > { %v1158_v27 = vadd.f32 %v1152_v25, %v1107_v22  ;;  %v3950_v28 = vpop.f32.mrb[17].mxu0  ;;  %v3956_v29 = vpop.f32.mrb[17].mxu1 }
 0x10b   : > { %v1155_v30 = vpop.f32.mrb[18].mxu0  ;;  %v1218_v31 = vpop.f32.mrb[18].mxu1 }
 0x10c   : > { %v1221_v32 = vadd.f32 %v1215_v26, %v1158_v27  ;;  %v3951_v33 = vpop.f32.mrb[19].mxu0  ;;  %v3957_v34 = vpop.f32.mrb[19].mxu1 }
 0x111   : > { %v1278_v35 = vpop.f32.mrb[20].mxu0  ;;  %v1332_v36 = vpop.f32.mrb[20].mxu1 }
 0x112   : > { %v1284_v37 = vadd.f32 %v1278_v35, %v1221_v32  ;;  %v3962_v38 = vpop.f32.mrb[21].mxu0  ;;  %v3968_v39 = vpop.f32.mrb[21].mxu1 }
 0x113   : > { %v1281_v40 = vpop.f32.mrb[22].mxu0  ;;  %v1335_v41 = vpop.f32.mrb[22].mxu1 }
 0x114   : > { %v1338_v42 = vadd.f32 %v1332_v36, %v1284_v37  ;;  %v3963_v43 = vpop.f32.mrb[23].mxu0  ;;  %v3969_v44 = vpop.f32.mrb[23].mxu1 }
 0x119   : > { %v1386_v45 = vpop.f32.mrb[24].mxu0  ;;  %v1447_v46 = vpop.f32.mrb[24].mxu1 }
 0x11a   : > { %v1392_v47 = vadd.f32 %v1386_v45, %v1338_v42  ;;  %v3974_v48 = vpop.f32.mrb[25].mxu0  ;;  %v3980_v49 = vpop.f32.mrb[25].mxu1 }
 0x11b   : > { %v1389_v50 = vpop.f32.mrb[26].mxu0  ;;  %v1450_v51 = vpop.f32.mrb[26].mxu1 }
 0x11c   : > { %v1453_v52 = vadd.f32 %v1447_v46, %v1392_v47  ;;  %v3975_v53 = vpop.f32.mrb[27].mxu0  ;;  %v3981_v54 = vpop.f32.mrb[27].mxu1 }
 0x121   : > { %v1497_v55 = vpop.f32.mrb[28].mxu0  ;;  %v1548_v56 = vpop.f32.mrb[28].mxu1 }
 0x122   : > { %v1503_v57 = vadd.f32 %v1497_v55, %v1453_v52  ;;  %v3986_v58 = vpop.f32.mrb[29].mxu0  ;;  %v3992_v59 = vpop.f32.mrb[29].mxu1 }
 0x123   : > { %v1500_v60 = vpop.f32.mrb[30].mxu0  ;;  %v1551_v61 = vpop.f32.mrb[30].mxu1 }
 0x124   : > { %v1554_v62 = vadd.f32 %v1548_v56, %v1503_v57  ;;  %v3987_v63 = vpop.f32.mrb[31].mxu0  ;;  %v3993_v0 = vpop.f32.mrb[31].mxu1 }
 0x129   : > { %v1611_v1 = vpop.f32.mrb[32].mxu0  ;;  %v1674_v2 = vpop.f32.mrb[32].mxu1 }
 0x12a   : > { %v1617_v3 = vadd.f32 %v1611_v1, %v1554_v62  ;;  %v3998_v4 = vpop.f32.mrb[33].mxu0  ;;  %v4004_v5 = vpop.f32.mrb[33].mxu1 }
 0x12b   : > { %v1614_v6 = vpop.f32.mrb[34].mxu0  ;;  %v1677_v7 = vpop.f32.mrb[34].mxu1 }
 0x12c   : > { %v1680_v8 = vadd.f32 %v1674_v2, %v1617_v3  ;;  %v3999_v9 = vpop.f32.mrb[35].mxu0  ;;  %v4005_v10 = vpop.f32.mrb[35].mxu1 }
 0x131   : > { %v1728_v11 = vpop.f32.mrb[36].mxu0  ;;  %v1782_v12 = vpop.f32.mrb[36].mxu1 }
 0x132   : > { %v1734_v13 = vadd.f32 %v1728_v11, %v1680_v8  ;;  %v4010_v14 = vpop.f32.mrb[37].mxu0  ;;  %v4016_v15 = vpop.f32.mrb[37].mxu1 }
 0x133   : > { %v1731_v16 = vpop.f32.mrb[38].mxu0  ;;  %v1785_v17 = vpop.f32.mrb[38].mxu1 }
 0x134   : > { %v1788_v18 = vadd.f32 %v1782_v12, %v1734_v13  ;;  %v4011_v19 = vpop.f32.mrb[39].mxu0  ;;  %v4017_v20 = vpop.f32.mrb[39].mxu1 }
 0x139   : > { %v1843_v21 = vpop.f32.mrb[40].mxu0  ;;  %v1893_v22 = vpop.f32.mrb[40].mxu1 }
 0x13a   : > { %v1849_v23 = vadd.f32 %v1843_v21, %v1788_v18  ;;  %v4022_v24 = vpop.f32.mrb[41].mxu0  ;;  %v4028_v25 = vpop.f32.mrb[41].mxu1 }
 0x13b   : > { %v1846_v26 = vpop.f32.mrb[42].mxu0  ;;  %v1896_v27 = vpop.f32.mrb[42].mxu1 }
 0x13c   : > { %v1899_v28 = vadd.f32 %v1893_v22, %v1849_v23  ;;  %v4023_v29 = vpop.f32.mrb[43].mxu0  ;;  %v4029_v30 = vpop.f32.mrb[43].mxu1 }
 0x141   : > { %v1944_v31 = vpop.f32.mrb[44].mxu0  ;;  %v2007_v32 = vpop.f32.mrb[44].mxu1 }
 0x142   : > { %v1950_v33 = vadd.f32 %v1944_v31, %v1899_v28  ;;  %v4034_v34 = vpop.f32.mrb[45].mxu0  ;;  %v4040_v35 = vpop.f32.mrb[45].mxu1 }
 0x143   : > { %v1947_v36 = vpop.f32.mrb[46].mxu0  ;;  %v2010_v37 = vpop.f32.mrb[46].mxu1 }
 0x144   : > { %v2013_v38 = vadd.f32 %v2007_v32, %v1950_v33  ;;  %v4035_v39 = vpop.f32.mrb[47].mxu0  ;;  %v4041_v40 = vpop.f32.mrb[47].mxu1 }
 0x149   : > { %v2070_v41 = vpop.f32.mrb[48].mxu0  ;;  %v2124_v42 = vpop.f32.mrb[48].mxu1 }
 0x14a   : > { %v2076_v43 = vadd.f32 %v2070_v41, %v2013_v38  ;;  %v4046_v44 = vpop.f32.mrb[49].mxu0  ;;  %v4052_v45 = vpop.f32.mrb[49].mxu1 }
 0x14b   : > { %v2073_v46 = vpop.f32.mrb[50].mxu0  ;;  %v2127_v47 = vpop.f32.mrb[50].mxu1 }
 0x14c   : > { %v2130_v48 = vadd.f32 %v2124_v42, %v2076_v43  ;;  %v4047_v49 = vpop.f32.mrb[51].mxu0  ;;  %v4053_v50 = vpop.f32.mrb[51].mxu1 }
 0x151   : > { %v2178_v51 = vpop.f32.mrb[52].mxu0  ;;  %v2239_v52 = vpop.f32.mrb[52].mxu1 }
 0x152   : > { %v2184_v53 = vadd.f32 %v2178_v51, %v2130_v48  ;;  %v4058_v54 = vpop.f32.mrb[53].mxu0  ;;  %v4064_v55 = vpop.f32.mrb[53].mxu1 }
 0x153   : > { %v2181_v56 = vpop.f32.mrb[54].mxu0  ;;  %v2242_v57 = vpop.f32.mrb[54].mxu1 }
 0x154   : > { %v2245_v58 = vadd.f32 %v2239_v52, %v2184_v53  ;;  %v4059_v59 = vpop.f32.mrb[55].mxu0  ;;  %v4065_v60 = vpop.f32.mrb[55].mxu1 }
 0x159   : > { %v2289_v61 = vpop.f32.mrb[56].mxu0  ;;  %v2340_v62 = vpop.f32.mrb[56].mxu1 }
 0x15a   : > { %v2295_v63 = vadd.f32 %v2289_v61, %v2245_v58  ;;  %v4070_v0 = vpop.f32.mrb[57].mxu0  ;;  %v4076_v1 = vpop.f32.mrb[57].mxu1 }
 0x15b   : > { %v2292_v2 = vpop.f32.mrb[58].mxu0  ;;  %v2343_v3 = vpop.f32.mrb[58].mxu1 }
 0x15c   : > { %v2346_v4 = vadd.f32 %v2340_v62, %v2295_v63  ;;  %v4071_v5 = vpop.f32.mrb[59].mxu0  ;;  %v4077_v6 = vpop.f32.mrb[59].mxu1 }
 0x161   : > { %v2403_v7 = vpop.f32.mrb[60].mxu0  ;;  %v2466_v8 = vpop.f32.mrb[60].mxu1 }
 0x162   : > { %v2409_v9 = vadd.f32 %v2403_v7, %v2346_v4  ;;  %v4082_v10 = vpop.f32.mrb[61].mxu0  ;;  %v4088_v11 = vpop.f32.mrb[61].mxu1 }
 0x163   : > { %v2406_v12 = vpop.f32.mrb[62].mxu0  ;;  %v2469_v13 = vpop.f32.mrb[62].mxu1 }
 0x164   : > { %v2472_v14 = vadd.f32 %v2466_v8, %v2409_v9  ;;  %v4083_v15 = vpop.f32.mrb[63].mxu0  ;;  %v4089_v16 = vpop.f32.mrb[63].mxu1 }
 0x169   : > { %v2520_v17 = vpop.f32.mrb[64].mxu0  ;;  %v2574_v18 = vpop.f32.mrb[64].mxu1 }
 0x16a   : > { %v2526_v19 = vadd.f32 %v2520_v17, %v2472_v14  ;;  %v4094_v20 = vpop.f32.mrb[65].mxu0  ;;  %v4100_v21 = vpop.f32.mrb[65].mxu1 }
 0x16b   : > { %v2523_v22 = vpop.f32.mrb[66].mxu0  ;;  %v2577_v23 = vpop.f32.mrb[66].mxu1 }
 0x16c   : > { %v2580_v24 = vadd.f32 %v2574_v18, %v2526_v19  ;;  %v4095_v25 = vpop.f32.mrb[67].mxu0  ;;  %v4101_v26 = vpop.f32.mrb[67].mxu1 }
 0x171   : > { %v2635_v27 = vpop.f32.mrb[68].mxu0  ;;  %v2685_v28 = vpop.f32.mrb[68].mxu1 }
 0x172   : > { %v2641_v29 = vadd.f32 %v2635_v27, %v2580_v24  ;;  %v4106_v30 = vpop.f32.mrb[69].mxu0  ;;  %v4112_v31 = vpop.f32.mrb[69].mxu1 }
 0x173   : > { %v2638_v32 = vpop.f32.mrb[70].mxu0  ;;  %v2688_v33 = vpop.f32.mrb[70].mxu1 }
 0x174   : > { %v2691_v34 = vadd.f32 %v2685_v28, %v2641_v29  ;;  %v4107_v35 = vpop.f32.mrb[71].mxu0  ;;  %v4113_v36 = vpop.f32.mrb[71].mxu1 }
 0x179   : > { %v2736_v37 = vpop.f32.mrb[72].mxu0  ;;  %v2799_v38 = vpop.f32.mrb[72].mxu1 }
 0x17a   : > { %v2742_v39 = vadd.f32 %v2736_v37, %v2691_v34  ;;  %v4118_v40 = vpop.f32.mrb[73].mxu0  ;;  %v4124_v41 = vpop.f32.mrb[73].mxu1  ;;  %v3790_v34 = vld [vmem:[%s4950_s8] ss:$0 sm:$0xff] }
 0x17b   : > { %v2739_v42 = vpop.f32.mrb[74].mxu0  ;;  %v2802_v43 = vpop.f32.mrb[74].mxu1 }
 0x17c   : > { %v2805_v44 = vadd.f32 %v2799_v38, %v2742_v39  ;;  %v4119_v45 = vpop.f32.mrb[75].mxu0  ;;  %v4125_v46 = vpop.f32.mrb[75].mxu1 }
 0x181   : > { %v2862_v47 = vpop.f32.mrb[76].mxu0  ;;  %v2916_v48 = vpop.f32.mrb[76].mxu1 }
 0x182   : > { %v2868_v49 = vadd.f32 %v2862_v47, %v2805_v44  ;;  %v4130_v50 = vpop.f32.mrb[77].mxu0  ;;  %v4136_v51 = vpop.f32.mrb[77].mxu1 }
 0x183   : > { %v2865_v52 = vpop.f32.mrb[78].mxu0  ;;  %v2919_v53 = vpop.f32.mrb[78].mxu1 }
 0x184   : > { %v2922_v54 = vadd.f32 %v2916_v48, %v2868_v49  ;;  %v4131_v55 = vpop.f32.mrb[79].mxu0  ;;  %v4137_v56 = vpop.f32.mrb[79].mxu1 }
 0x189   : > { %v2970_v57 = vpop.f32.mrb[80].mxu0  ;;  %v3031_v58 = vpop.f32.mrb[80].mxu1 }
 0x18a   : > { %v2976_v59 = vadd.f32 %v2970_v57, %v2922_v54  ;;  %v4142_v60 = vpop.f32.mrb[81].mxu0  ;;  %v4148_v61 = vpop.f32.mrb[81].mxu1 }
 0x18b   : > { %v2973_v62 = vpop.f32.mrb[82].mxu0  ;;  %v3034_v63 = vpop.f32.mrb[82].mxu1 }
 0x18c   : > { %v3037_v0 = vadd.f32 %v3031_v58, %v2976_v59  ;;  %v4143_v1 = vpop.f32.mrb[83].mxu0  ;;  %v4149_v2 = vpop.f32.mrb[83].mxu1 }
 0x191   : > { %v3081_v3 = vpop.f32.mrb[84].mxu0  ;;  %v3132_v4 = vpop.f32.mrb[84].mxu1 }
 0x192   : > { %v3087_v5 = vadd.f32 %v3081_v3, %v3037_v0  ;;  %v4154_v6 = vpop.f32.mrb[85].mxu0  ;;  %v4160_v7 = vpop.f32.mrb[85].mxu1 }
 0x193   : > { %v3084_v8 = vpop.f32.mrb[86].mxu0  ;;  %v3135_v9 = vpop.f32.mrb[86].mxu1 }
 0x194   : > { %v3138_v10 = vadd.f32 %v3132_v4, %v3087_v5  ;;  %v4155_v11 = vpop.f32.mrb[87].mxu0  ;;  %v4161_v12 = vpop.f32.mrb[87].mxu1 }
 0x199   : > { %v3195_v13 = vpop.f32.mrb[88].mxu0  ;;  %v3258_v14 = vpop.f32.mrb[88].mxu1 }
 0x19a   : > { %v3201_v15 = vadd.f32 %v3195_v13, %v3138_v10  ;;  %v4166_v16 = vpop.f32.mrb[89].mxu0  ;;  %v4172_v17 = vpop.f32.mrb[89].mxu1 }
 0x19b   : > { %v3198_v18 = vpop.f32.mrb[90].mxu0  ;;  %v3261_v19 = vpop.f32.mrb[90].mxu1 }
 0x19c   : > { %v3264_v20 = vadd.f32 %v3258_v14, %v3201_v15  ;;  %v4167_v21 = vpop.f32.mrb[91].mxu0  ;;  %v4173_v22 = vpop.f32.mrb[91].mxu1 }
 0x1a1   : > { %v3312_v23 = vpop.f32.mrb[92].mxu0  ;;  %v3366_v24 = vpop.f32.mrb[92].mxu1 }
 0x1a2   : > { %v3318_v25 = vadd.f32 %v3312_v23, %v3264_v20  ;;  %v4178_v26 = vpop.f32.mrb[93].mxu0  ;;  %v4184_v27 = vpop.f32.mrb[93].mxu1 }
 0x1a3   : > { %v3315_v28 = vpop.f32.mrb[94].mxu0  ;;  %v3369_v29 = vpop.f32.mrb[94].mxu1 }
 0x1a4   : > { %v3372_v30 = vadd.f32 %v3366_v24, %v3318_v25  ;;  %v4179_v31 = vpop.f32.mrb[95].mxu0  ;;  %v4185_v32 = vpop.f32.mrb[95].mxu1 }
 0x1a9   : > { %v3427_v33 = vpop.f32.mrb[96].mxu0 }
 0x1aa   : > { %v3433_v35 = vadd.f32 %v3427_v33, %v3372_v30  ;;  %v4190_v36 = vpop.f32.mrb[97].mxu0 }
 0x1ab   : > { %v3430_v37 = vpop.f32.mrb[98].mxu0 }
 0x1ac   : > { %v3441_v38 = vadd.f32 %v3790_v34, %v3433_v35  ;;  %v4191_v39 = vpop.f32.mrb[99].mxu0 }
 0x1ae   : > { %v3442_v40 = vmax.f32 %v3441_v38, 0.0 }
 0x1b0   : > { %v3443_v41 = vpack.c.bf16 %v3442_v40, %v3442_v40 }
 0x1b2   : > { %3445 = vst.msk [vmem:[%s659_s17] sm:$0x7] %vm3444_vm3, %v3443_v41 }
 0x1b3 PF: > { %s19_s13 = sadd.s32 1, %s4307_s13   ;;  %s4955_s30 = smov %s4299_s11 }
 0x1b4   : > { %p16_p13 = scmp.ge.s32.totalorder %s19_s13, 14   ;;  %s4956_s10 = smov %s4303_s12 }
 0x1b5   : > { %s4957_s11 = smov %s4960_s14  ;;  %s4958_s12 = smov %s4964_s15 }
 0x1b6   :  { %18 = sbr.rel (!%p16_p13) target bundleno = 3 (0x3), region = 159 }

// kernel: style_encoder_norelu.5
= control target key start
LH: loop header
LB: loop body
LE: loop exit
PB: predicated region body
PF: predicated region fallthrough
CT: control target
= control target key end

     0   :  { %10 = vsyncpa [#allocation4], 0  ;;  %s1762_s0 = inlined_call_operand.vmem [shape: bf16[10,2,9,32], index: 0, kind: input, shape index: {}, may-alias: {0,1,2}]   ;;  %s1763_s1 = inlined_call_operand.vmem [shape: bf16[10,2,9,32], index: 1, kind: input, shape index: {}, may-alias: {0,1,2}]   ;;  %s1764_s2 = inlined_call_operand.vmem [shape: bf16[10,2,9,32], index: 2, kind: input, shape index: {}, may-alias: {0,1,2}]   ;;  %s1765_s3 = inlined_call_operand.vmem [shape: bf16[9,32,32], index: 3, kind: input, shape index: {}]   ;;  %s1766_s4 = inlined_call_operand.vmem [shape: f32[1,32], index: 4, kind: input, shape index: {}]   ;;  %s1767_s5 = inlined_call_operand.hbm [shape: f32[2,1,32], index: 5, kind: output, shape index: {}]  }
   0x1   :  { %12 = vsyncpa [#allocation4 + $0x1], 0  ;;  %s1505_s18 = smov 0   ;;  %s1507_s19 = smov 0  }
   0x2   :  { %s1509_s20 = smov 0   ;;  %s1511_s21 = smov 0  }
   0x3   :  { %s1513_s22 = smov 0   ;;  %s1515_s23 = smov 0  }
   0x4   :  { %s1517_s24 = smov 0   ;;  %s1519_s25 = smov 0  }
   0x5 LB: > { %s1087_s26 = sadd.s32 4294967295, %s1469_s25   ;;  %s1088_s27 = sadd.s32 4294967294, %s1469_s25   ;;  %s1469_s25 = sphi %s1519_s25, %s18_s25   ;;  %s1465_s24 = sphi %s1517_s24, %s1782_s24   ;;  %s1461_s23 = sphi %s1515_s23, %s1781_s23   ;;  %s1457_s22 = sphi %s1513_s22, %s1780_s22   ;;  %s1453_s21 = sphi %s1511_s21, %s1779_s21   ;;  %s1449_s20 = sphi %s1509_s20, %s1778_s20   ;;  %s1445_s19 = sphi %s1507_s19, %s1777_s19   ;;  %s1441_s18 = sphi %s1505_s18, %s1776_s18  }
   0x6   : > { %s27_s28 = sadd.s32 1, %s1461_s23  ;;  %s30_s29 = sadd.s32 1, %s1465_s24 }
   0x7   : > { %p28_p0 = scmp.ge.s32.totalorder %s27_s28, 2  ;;  %p189_p1 = scmp.ne.s32.totalorder %s1449_s20, %s1445_s19 }
   0x8   : > { %p190_p2 = scmp.eq.s32.totalorder %s1087_s26, 3  ;;  %p195_p4 = scmp.ne.s32.totalorder %s1445_s19, %s1441_s18 }
   0x9   : > { %s1784_s28 = smov (%p28_p0, %s27_s28), 0  ;;  %s1786_s29 = smov (!%p28_p0, %s30_s29), %s1465_s24 }
   0xa   : > { %p1554_p3 = por %p190_p2, %p189_p1  ;;  %p32_p5 = scmp.ge.s32.totalorder %s1786_s29, 2 }
   0xb   : > { %p196_p6 = scmp.eq.s32.totalorder %s1088_s27, 3  ;;  %p1097_p7 = scmp.ge.s32.totalorder %s1469_s25, 1 }
   0xc   : > { %p266_p8 = scmp.lt.s32.totalorder %s1469_s25, 5  ;;  %s1788_s29 = smov (%p32_p5, %s1786_s29), 0 }
   0xd   : > { %1770 = sst [smem:[#allocation6_spill]] %s1788_s29  ;;  %p1564_p9 = por %p196_p6, %p195_p4 }
   0xe   : > { %p267_p10 = pnand %p1097_p7, %p266_p8  ;;  %s176_s7 = ssub.s32 %s1465_s24, %s1788_s29 }
   0xf   : > { %s179_s8 = sadd.s32 1, %s1449_s20  ;;  %p177_p11 = scmp.eq.s32.totalorder %s176_s7, 0  ;;  %v1471_v0 = vmov (!%p267_p10), 0.0   ;;  %v1354_v1 = vld [vmem:[%s1765_s3 + $0x10] sm:$0xff] (!%p267_p10)   ;;  %v1355_v2 = vld [vmem:[%s1765_s3] sm:$0xff] (!%p267_p10)   ;;  %v1356_v3 = vld [vmem:[%s1765_s3 + $0x18] sm:$0xff] (!%p267_p10)  }
  0x10   : > { %270 = sbr.rel (%p267_p10) target bundleno = 329 (0x149), region = 40  ;;  %1208 = vmatprep.subr.bf16.mxu0 (!%p267_p10), %v1471_v0  ;;  %1216 = vmatprep.subr.bf16.mxu1 (!%p267_p10), %v1471_v0  ;;  %vm1472_vm0 = vmmov (!%p267_p10), 0   ;;  %v1357_v4 = vld [vmem:[%s1765_s3 + $0x8] sm:$0xff] (!%p267_p10)   ;;  %s1098_s7 = sshll.u32 (!%p267_p10), %s1453_s21, 1  ;;  %vm376_vm1 = vcmask (!%p267_p10), 261120   ;;  %v1359_v5 = vld [vmem:[%s1765_s3 + $0x20] sm:$0xff] (!%p267_p10)  }
  0x11   : > { %s1572_s9 = scalar_select %p177_p11, %s1449_s20, %s179_s8  }
  0x12   : > { %1209 = vmatpush3.bf16.msra.mxu0 (!%p267_p10), %v1354_v1  ;;  %1212 = vmatprep.mubr.msk.bf16.mxu0 (!%p267_p10), %vm1472_vm0, %v1471_v0  ;;  %s314_s17 = smul.u32 (!%p267_p10), 5, %s1457_s22  ;;  %v1360_v6 = vld [vmem:[%s1765_s3 + $0x30] sm:$0xff] (!%p267_p10)   ;;  %v1361_v10 = vld [vmem:[%s1765_s3 + $0x28] sm:$0xff] (!%p267_p10)   ;;  %v1362_v11 = vld [vmem:[%s1765_s3 + $0x38] sm:$0xff] (!%p267_p10)   ;;  %p1173_p1 = scmp.ne.s32.totalorder (!%p267_p10), %s1453_s21, 0 }
  0x13   : > { %1217 = vmatpush3.bf16.msra.mxu1 (!%p267_p10), %v1355_v2  ;;  %1210 = vmatprep.subr.bf16.mxu0 (!%p267_p10), %v1471_v0  ;;  %v1363_v15 = vld [vmem:[%s1765_s3 + $0x40] sm:$0xff] (!%p267_p10)   ;;  %v1365_v19 = vld [vmem:[%s1765_s3 + $0x50] sm:$0xff] (!%p267_p10)   ;;  %v1366_v21 = vld [vmem:[%s1765_s3 + $0x48] sm:$0xff] (!%p267_p10)  }
  0x14   : > { %1218 = vmatprep.subr.bf16.mxu1 (!%p267_p10), %v1471_v0  ;;  %s1595_s8 = sadd.s32 (!%p267_p10), %s1098_s7, %s314_s17  ;;  %1220 = vmatprep.mubr.msk.bf16.mxu1 (!%p267_p10), %vm1472_vm0, %v1471_v0  ;;  %v1367_v24 = vld [vmem:[%s1765_s3 + $0x58] sm:$0xff] (!%p267_p10)   ;;  %v1368_v26 = vld [vmem:[%s1765_s3 + $0x60] sm:$0xff] (!%p267_p10)   ;;  %v1369_v28 = vld [vmem:[%s1765_s3 + $0x70] sm:$0xff] (!%p267_p10)  }
  0x15   : > { %p317_p12 = scmp.lt.s32.totalorder (!%p267_p10), %s1595_s8, 9  ;;  %s328_s11 = sadd.s32 (!%p267_p10), 1, %s1595_s8  ;;  %v1370_v30 = vld [vmem:[%s1765_s3 + $0x68] sm:$0xff] (!%p267_p10)   ;;  %v1371_v31 = vld [vmem:[%s1765_s3 + $0x78] sm:$0xff] (!%p267_p10)   ;;  %v1373_v34 = vld [vmem:[%s1765_s3 + $0x80] sm:$0xff] (!%p267_p10)  }
  0x16   : > { %1211 = vmatpush3.bf16.msra.mxu0 (!%p267_p10), %v1356_v3  ;;  %p329_p13 = scmp.lt.s32.totalorder (!%p267_p10), %s328_s11, 9  ;;  %s341_s10 = sadd.s32 (!%p267_p10), 2, %s1595_s8  ;;  %v1374_v38 = vld [vmem:[%s1765_s3 + $0x88] sm:$0xff] (!%p267_p10)  }
  0x17   : > { %1219 = vmatpush3.bf16.msra.mxu1 %v1357_v4  ;;  %s318_s12 = scalar_select %p317_p12, %s1595_s8, 9  ;;  %1224 = vmatprep.subr.bf16.mxu0 %v1471_v0 }
  0x18   : > { %1232 = vmatprep.subr.bf16.mxu1 %v1471_v0  ;;  %s1790_s11 = smov (!%p329_p13, %s328_s11), 9  ;;  %p1623_p0 = scmp.lt.s32.totalorder %s341_s10, 9  ;;  %vm963_vm2 = vcmask (!%p1173_p1), 253952  }
  0x19   : > { %s1178_s13 = sshll.u32 %s318_s12, 4  ;;  %s1179_s8 = sshll.u32 %s1790_s11, 4 }
  0x1a   : > { %s321_s26 = scalar_lea.vmem %s1762_s0, %s1178_s13  ;;  %s333_s17 = scalar_lea.vmem %s1763_s1, %s1179_s8 }
  0x1b   : > { %v1107_v7 = vld [vmem:[%s321_s26 + $0x8] sm:$0xf]  ;;  %v1358_v8 = vld [vmem:[%s321_s26] sm:$0x1f]   ;;  %s1792_s10 = smov (!%p1623_p0, %s341_s10), 9  ;;  %s1773_s11 = sand.u32 1, %s1445_s19  }
  0x1c   : > { %1213 = vmatmul.mubr.msk.bf16.vlgmr.msra.gmra.mrb[0].mxu0 %vm376_vm1, %v1107_v7  ;;  %v352_v9 = vld [vmem:[%s321_s26] sm:$0xf]  ;;  %v488_v12 = vshrl.u32 %v1358_v8, 16  ;;  %v490_v13 = vshll.u32 %v1358_v8, 16  ;;  %s1180_s12 = sshll.u32 %s1792_s10, 4  ;;  %s313_s27 = scalar_lea.vmem [#allocation3], %s1773_s11 }
  0x1d   : > { %1221 = vmatmul.mubr.msk.bf16.vlgmr.msra.gmra.mrb[0].mxu1 %vm376_vm1, %v352_v9  ;;  %1225 = vmatpush3.bf16.msra.mxu0 %v1359_v5  ;;  %v550_v16 = vld [vmem:[%s333_s17] sm:$0xf]  ;;  %s1653_s15 = scalar_lea.vmem %s1764_s2, %s1180_s12  ;;  %v1133_v25 = vld [vmem:[%s333_s17 + $0x8] sm:$0xf] }
  0x1e   : > { %1233 = vmatpush3.bf16.msra.mxu1 %v1360_v6  ;;  %1226 = vmatprep.subr.bf16.mxu0 %v1471_v0  ;;  %v492_v14 = vrot.slane %v490_v13, 1  ;;  %v1364_v17 = vld [vmem:[%s333_s17] sm:$0x1f]   ;;  %v1156_v35 = vld [vmem:[%s1653_s15 + $0x8] sm:$0xf] }
  0x1f   : > { %1234 = vmatprep.subr.bf16.mxu1 %v1471_v0  ;;  %1228 = vmatprep.mubr.msk.bf16.mxu0 %vm1472_vm0, %v1471_v0  ;;  %v690_v20 = vshll.u32 %v1364_v17, 16  ;;  %v688_v22 = vshrl.u32 %v1364_v17, 16  ;;  %v1372_v29 = vld [vmem:[%s1653_s15] sm:$0x1f]  }
  0x20   : > { %1236 = vmatprep.mubr.msk.bf16.mxu1 %vm1472_vm0, %v1471_v0  ;;  %v493_v18 = vor.u32 %v492_v14, %v488_v12  ;;  %v890_v32 = vshll.u32 %v1372_v29, 16  ;;  %v750_v33 = vld [vmem:[%s1653_s15] sm:$0xf]  ;;  %v888_v36 = vshrl.u32 %v1372_v29, 16 }
  0x21   : > { %1227 = vmatpush3.bf16.msra.mxu0 %v1361_v10  ;;  %v692_v23 = vrot.slane %v690_v20, 1 }
  0x22   : > { %1235 = vmatpush3.bf16.msra.mxu1 %v1362_v11  ;;  %1240 = vmatprep.subr.bf16.mxu0 %v1471_v0  ;;  %v892_v37 = vrot.slane %v890_v32, 1 }
  0x23   : > { %1248 = vmatprep.subr.bf16.mxu1 %v1471_v0  ;;  %v693_v27 = vor.u32 %v692_v23, %v688_v22  ;;  %v1473_v23 = vmov (!%p1173_p1), 0.0  }
  0x24   : > { %1229 = vmatmul.mubr.msk.bf16.vlgmr.msra.gmra.mrb[4].mxu0 %vm376_vm1, %v493_v18  ;;  %v893_v39 = vor.u32 %v892_v37, %v888_v36  ;;  %964 = vst.msk [vmem:[#allocation2] sm:$0x1] (!%p1173_p1), %vm963_vm2, %v1473_v23 }
  0x25   : > { %1241 = vmatpush3.bf16.msra.mxu0 %v1363_v15  ;;  %1237 = vmatmul.mubr.msk.bf16.vlgmr.msra.gmra.mrb[4].mxu1 %vm376_vm1, %v550_v16  ;;  %v1172_v16 = vld [vmem:[%s1766_s4] ss:$0 sm:$0xff] }
  0x26   : > { %1249 = vmatpush3.bf16.msra.mxu1 %v1365_v19  ;;  %1242 = vmatprep.subr.bf16.mxu0 %v1471_v0 }
  0x27   : > { %1250 = vmatprep.subr.bf16.mxu1 %v1471_v0  ;;  %1244 = vmatprep.mubr.msk.bf16.mxu0 %vm1472_vm0, %v1471_v0 }
  0x28   : > { %1252 = vmatprep.mubr.msk.bf16.mxu1 %vm1472_vm0, %v1471_v0 }
  0x29   : > { %1243 = vmatpush3.bf16.msra.mxu0 %v1366_v21 }
  0x2a   : > { %1251 = vmatpush3.bf16.msra.mxu1 %v1367_v24  ;;  %1256 = vmatprep.subr.bf16.mxu0 %v1471_v0 }
  0x2b   : > { %1264 = vmatprep.subr.bf16.mxu1 %v1471_v0 }
  0x2c   : > { %1245 = vmatmul.mubr.msk.bf16.vlgmr.msra.gmra.mrb[8].mxu0 %vm376_vm1, %v1133_v25 }
  0x2d   : > { %1257 = vmatpush3.bf16.msra.mxu0 %v1368_v26  ;;  %1253 = vmatmul.mubr.msk.bf16.vlgmr.msra.gmra.mrb[8].mxu1 %vm376_vm1, %v693_v27 }
  0x2e   : > { %1265 = vmatpush3.bf16.msra.mxu1 %v1369_v28  ;;  %1258 = vmatprep.subr.bf16.mxu0 %v1471_v0 }
  0x2f   : > { %1266 = vmatprep.subr.bf16.mxu1 %v1471_v0  ;;  %1260 = vmatprep.mubr.msk.bf16.mxu0 %vm1472_vm0, %v1471_v0 }
  0x30   : > { %1268 = vmatprep.mubr.msk.bf16.mxu1 %vm1472_vm0, %v1471_v0 }
  0x31   : > { %1259 = vmatpush3.bf16.msra.mxu0 %v1370_v30 }
  0x32   : > { %1267 = vmatpush3.bf16.msra.mxu1 %v1371_v31  ;;  %1272 = vmatprep.subr.bf16.mxu0 %v1471_v0 }
  0x34   : > { %1261 = vmatmul.mubr.msk.bf16.vlgmr.msra.gmra.mrb[12].mxu0 %vm376_vm1, %v750_v33 }
  0x35   : > { %1273 = vmatpush3.bf16.msra.mxu0 %v1373_v34  ;;  %1269 = vmatmul.mubr.msk.bf16.vlgmr.msra.gmra.mrb[12].mxu1 %vm376_vm1, %v1156_v35 }
  0x36   : > { %1274 = vmatprep.subr.bf16.mxu0 %v1471_v0  ;;  %1276 = vmatprep.mubr.msk.bf16.mxu0 %vm1472_vm0, %v1471_v0 }
  0x39   : > { %1275 = vmatpush3.bf16.msra.mxu0 %v1374_v38 }
  0x3c   : > { %1277 = vmatmul.mubr.msk.bf16.vlgmr.msra.gmra.mrb[16].mxu0 %vm376_vm1, %v893_v39 }
  0xef   : > { %v414_v40 = vpop.f32.mrb[0].mxu0 }
  0xf0   : > { %v1214_v41 = vpop.f32.mrb[1].mxu0  ;;  %v469_v42 = vpop.f32.mrb[0].mxu1 }
  0xf1   : > { %v470_v43 = vadd.f32 %v469_v42, %v414_v40  ;;  %v417_v44 = vpop.f32.mrb[2].mxu0  ;;  %v1222_v45 = vpop.f32.mrb[1].mxu1 }
  0xf2   : > { %v1215_v46 = vpop.f32.mrb[3].mxu0  ;;  %v472_v47 = vpop.f32.mrb[2].mxu1 }
  0xf3   : > { %v1223_v48 = vpop.f32.mrb[3].mxu1 }
  0xf7   : > { %v543_v49 = vpop.f32.mrb[4].mxu0 }
  0xf8   : > { %v549_v50 = vadd.f32 %v543_v49, %v470_v43  ;;  %v1230_v51 = vpop.f32.mrb[5].mxu0  ;;  %v605_v52 = vpop.f32.mrb[4].mxu1 }
  0xf9   : > { %v546_v53 = vpop.f32.mrb[6].mxu0  ;;  %v1238_v54 = vpop.f32.mrb[5].mxu1 }
  0xfa   : > { %v611_v55 = vadd.f32 %v605_v52, %v549_v50  ;;  %v1231_v56 = vpop.f32.mrb[7].mxu0  ;;  %v608_v57 = vpop.f32.mrb[6].mxu1 }
  0xfb   : > { %v1239_v58 = vpop.f32.mrb[7].mxu1 }
  0xff   : > { %v668_v59 = vpop.f32.mrb[8].mxu0 }
 0x100   : > { %v674_v60 = vadd.f32 %v668_v59, %v611_v55  ;;  %v1246_v61 = vpop.f32.mrb[9].mxu0  ;;  %v743_v62 = vpop.f32.mrb[8].mxu1 }
 0x101   : > { %v671_v63 = vpop.f32.mrb[10].mxu0  ;;  %v1254_v0 = vpop.f32.mrb[9].mxu1 }
 0x102   : > { %v749_v1 = vadd.f32 %v743_v62, %v674_v60  ;;  %v1247_v2 = vpop.f32.mrb[11].mxu0  ;;  %v746_v3 = vpop.f32.mrb[10].mxu1 }
 0x103   : > { %v1255_v4 = vpop.f32.mrb[11].mxu1 }
 0x107   : > { %v805_v5 = vpop.f32.mrb[12].mxu0 }
 0x108   : > { %v811_v6 = vadd.f32 %v805_v5, %v749_v1  ;;  %v1262_v7 = vpop.f32.mrb[13].mxu0  ;;  %v868_v8 = vpop.f32.mrb[12].mxu1 }
 0x109   : > { %v808_v9 = vpop.f32.mrb[14].mxu0  ;;  %v1270_v10 = vpop.f32.mrb[13].mxu1 }
 0x10a   : > { %v874_v11 = vadd.f32 %v868_v8, %v811_v6  ;;  %v1263_v12 = vpop.f32.mrb[15].mxu0  ;;  %v871_v13 = vpop.f32.mrb[14].mxu1 }
 0x10b   : > { %v1271_v14 = vpop.f32.mrb[15].mxu1 }
 0x10e   : > { %962 = sbr.rel (%p1173_p1) target bundleno = 277 (0x115), region = 44 }
 0x10f   : > { %v943_v15 = vpop.f32.mrb[16].mxu0 }
 0x110   : > { %v949_v17 = vadd.f32 %v943_v15, %v874_v11  ;;  %v1278_v18 = vpop.f32.mrb[17].mxu0 }
 0x111   : > { %v946_v19 = vpop.f32.mrb[18].mxu0 }
 0x112   : > { %v957_v20 = vadd.f32 %v1172_v16, %v949_v17  ;;  %v1279_v21 = vpop.f32.mrb[19].mxu0 }
 0x114   : > { %v958_v22 = vmax.f32 %v957_v20, 0.0 }
 0x115 PF: > { %vm966_vm3 = vcmask 254976   ;;  %v965_v30 = vld [vmem:[#allocation2] sm:$0x1]  ;;  %vm975_vm4 = vcmask 253952   ;;  %p1174_p2 = scmp.ne.s32.totalorder %s1453_s21, 1 }
 0x116   : > { %v967_v24 = vsel %vm966_vm3, %v958_v22, 0.0 }
 0x117   : > { %v968_v25 = vrot.slane %v967_v24, 4 }
 0x119   : > { %v969_v26 = vadd.f32 %v968_v25, %v967_v24 }
 0x11b   : > { %v970_v27 = vrot.slane %v969_v26, 2 }
 0x11d   : > { %v971_v28 = vadd.f32 %v970_v27, %v969_v26 }
 0x11f   : > { %v972_v29 = vrot.slane %v971_v28, 1  ;;  %980 = sbr.rel (%p1174_p2) target bundleno = 304 (0x130), region = 48 }
 0x121   : > { %v973_v31 = vadd.f32 %v972_v29, %v971_v28 }
 0x123   : > { %v974_v32 = vadd.f32 %v973_v31, %v965_v30 }
 0x125   : > { %976 = vst.msk [vmem:[#allocation2] sm:$0x1] %vm975_vm4, %v974_v32 }
 0x12c   : > { %v981_v33 = vld [vmem:[#allocation2] sm:$0x1] }
 0x12d   : > { %v982_v34 = vmul.f32 0.25, %v981_v33 }
 0x12f   : > { %983 = vst.msk [vmem:[%s313_s27] sm:$0x1] %vm975_vm4, %v982_v34 }
 0x130 PF: > { %s1175_s7 = sshll.u32 %s1457_s22, 4  ;;  %s997_s13 = sshll.u32 %s313_s27, 4  ;;  %s998_s13 = int_to_ptr.vmem [resolvable:$true] %s997_s13 }
 0x131   : > { %s1713_s14 = scalar_lea.hbm %s1767_s5, %s1175_s7  ;;  %s1774_s8 = sand.u32 1, %s1445_s19  }
 0x132   : > { %s985_s29 = scalar_lea.sflag [#allocation4], %s1774_s8  ;;  %s1375_s16 = scalar_lea.vmem %s998_s13, 16 }
 0x133   : > { %p1376_p4 = scmp.ne.s32.totalorder %s998_s13, %s1375_s16  ;;  %s1474_s21 = smov [#allocation3]  }
 0x134   : > { %s1379_s10 = sshll.u32 %s1474_s21, 4  ;;  %s1380_s10 = int_to_ptr.vmem [resolvable:$false] %s1379_s10 }
 0x135   : > { %p1377_p5 = pnand %p1376_p4, %p1554_p3  ;;  %s1381_s15 = scalar_lea.vmem %s1380_s10, 32 }
 0x136   : > { %p1382_p7 = scmp.lt.s32.totalorder %s998_s13, %s1380_s10  ;;  %p1383_p8 = scmp.lt.s32.totalorder %s1381_s15, %s1375_s16 }
 0x137   : > { %p1378_p6 = pneg %p1377_p5 }
 0x138   : > { %p1384_p10 = por %p1383_p8, %p1382_p7 }
 0x13a   : > { %p1385_p11 = pnand %p1384_p10, %p1378_p6 }
 0x13c   : > { %1388 = shalt.err (!%p1385_p11)
}
 0x13d   : > { %s1389_s22 = scalar_lea.hbm %s1713_s14, 16  ;;  %s1393_s27 = scalar_lea.hbm %s1767_s5, 32 }
 0x13e   : > { %p1390_p12 = scmp.ne.s32.totalorder %s1713_s14, %s1389_s22  ;;  %p1394_p1 = scmp.lt.u32.totalorder %s1713_s14, %s1767_s5 }
 0x13f   : > { %p1395_p2 = scmp.lt.u32.totalorder %s1393_s27, %s1389_s22  ;;  %p1397_p5 = scmp.lt.u32.totalorder %s1389_s22, %s1713_s14 }
 0x140   : > { %p1391_p13 = pnand %p1390_p12, %p1554_p3 }
 0x141   : > { %p1396_p4 = por %p1395_p2, %p1394_p1 }
 0x142   : > { %p1392_p0 = pneg %p1391_p13 }
 0x143   : > { %p1398_p6 = por %p1397_p5, %p1396_p4 }
 0x145   : > { %p1399_p7 = pnand %p1398_p6, %p1392_p0 }
 0x147   : > { %1402 = shalt.err (!%p1399_p7)
}
 0x148   : > { %1280 = dma.vmem_to_hbm [thread:$0]  (%p1554_p3), %s998_s13, 16, %s1713_s14, %s985_s29  }
 0x149 PF: > { %p1286_p8 = scmp.ge.s32.totalorder %s1469_s25, 2  ;;  %s1009_s12 = sand.u32 1, %s1441_s18  }
 0x14a   : > { %s1010_s8 = scalar_lea.sflag [#allocation4], %s1009_s12 }
 0x14b   : > { %p1283_p10 = pnand %p1286_p8, %p1564_p9 }
 0x14d   : > { %1436 = dma.done.wait (!%p1283_p10), %s1010_s8, 16  }
 0x14e   : > { %1438 = vsyncadd (!%p1283_p10), %s1010_s8, 4294967280  ;;  %s18_s25 = sadd.s32 1, %s1469_s25   ;;  %s1775_s30 = sld [smem:[#allocation6_spill]] }
 0x14f   : > { %p15_p11 = scmp.ge.s32.totalorder %s18_s25, 6   ;;  %s1776_s18 = smov %s1445_s19 }
 0x150   : > { %s1777_s19 = smov %s1449_s20  ;;  %s1778_s20 = smov %s1572_s9 }
 0x151   : > { %s1779_s21 = smov %s1461_s23  ;;  %s1780_s22 = smov %s1465_s24 }
 0x152   : > { %s1781_s23 = smov %s1784_s28  ;;  %17 = sbr.rel (!%p15_p11) target bundleno = 5 (0x5), region = 100 }
 0x154   : > { %s1782_s24 = smov %s1775_s30 }
 0x159   :  { %1014 = vsyncpa [#allocation4], 1 }
 0x15a   :  { %1016 = vsyncpa [#allocation4 + $0x1], 1 }

</bundles_post_ra>
